<compile_context>
chip_gen: v5e
topology: v5e:2x2
jax: 0.10.0
libtpu: 0.0.40
codegen_flags: <defaults>
</compile_context>

<pallas_src>
import math

import jax
import jax.numpy as jnp
from jax import lax
from jax.experimental import pallas as pl
from jax.experimental.pallas import tpu as pltpu


# ----------------------------------------------------------------------------
# Padding helper (plain JAX / XLA glue) - PadSequence equivalent along one axis.
# ----------------------------------------------------------------------------
def pad_axis(x, p, mode, axis):
    if p == 0:
        return x
    axis = axis % x.ndim
    widths = [(0, 0)] * x.ndim
    widths[axis] = (p, p)
    if mode == "constant":
        return jnp.pad(x, widths)
    if mode == "circular":
        return jnp.pad(x, widths, mode="wrap")
    if mode == "replicate":
        return jnp.pad(x, widths, mode="edge")
    if mode == "reflect":
        return jnp.pad(x, widths, mode="reflect")
    if mode == "antireflect":
        n = x.shape[axis]
        x0 = lax.slice_in_dim(x, 0, 1, axis=axis)
        xl = lax.slice_in_dim(x, 1, p + 1, axis=axis)
        left = 2.0 * x0 - jnp.flip(xl, axis=axis)
        xn = lax.slice_in_dim(x, n - 1, n, axis=axis)
        xr = lax.slice_in_dim(x, n - 1 - p, n - 1, axis=axis)
        right = 2.0 * xn - jnp.flip(xr, axis=axis)
        return jnp.concatenate([left, x, right], axis=axis)
    raise ValueError(f"unknown padding mode {mode}")


# ----------------------------------------------------------------------------
# Pallas kernel: one full 2-D DWT level on a tile of images.
# ----------------------------------------------------------------------------
def _dwt2d_level_kernel(hn_ref, g_ref, xph_ref,
                        ss_ref, sd_ref, ds_ref, dd_ref,
                        as_e, as_o, ad_e, ad_o):
    # hn_ref / g_ref : (1, K) filters in SMEM (hn already carries the norm).
    # xph_ref        : (TB, 4, HpH, WpH) polyphase input block
    #                  phase 0=(even row, even col) 1=(even,odd)
    #                        2=(odd,even)           3=(odd,odd)
    # ss/sd/ds/dd    : (TB, H2, W2) subbands, already in final orientation.
    # as_*/ad_*      : (TB, HpH, W2) VMEM scratch: row-pass result split by
    #                  row parity for the scaling (s) / wavelet (d) branch.
    K = hn_ref.shape[1]
    Kh = K // 2
    _, H2, W2 = ss_ref.shape

    # Hoist all filter taps out of the MAC chains (one SMEM read each).
    hv = [hn_ref[0, t] for t in range(K)]
    gv = [g_ref[0, t] for t in range(K)]

    def row_pass(rphase):
        # conv along W, stride 2, rows of parity `rphase`; both filters share loads.
        acc_s = None
        acc_d = None
        for m in range(Kh):
            e = xph_ref[:, 2 * rphase + 0, :, m:m + W2]
            o = xph_ref[:, 2 * rphase + 1, :, m:m + W2]
            ts = e * hv[2 * m] + o * hv[2 * m + 1]
            td = e * gv[2 * m] + o * gv[2 * m + 1]
            acc_s = ts if acc_s is None else acc_s + ts
            acc_d = td if acc_d is None else acc_d + td
        return acc_s, acc_d

    s_e, d_e = row_pass(0)
    s_o, d_o = row_pass(1)
    as_e[...] = s_e
    as_o[...] = s_o
    ad_e[...] = d_e
    ad_o[...] = d_o

    def col_pass(e_ref, o_ref):
        # conv along H, stride 2, using the even/odd row phases; both filters.
        acc_h = None
        acc_g = None
        for m in range(Kh):
            e = e_ref[:, m:m + H2, :]
            o = o_ref[:, m:m + H2, :]
            th = e * hv[2 * m] + o * hv[2 * m + 1]
            tg = e * gv[2 * m] + o * gv[2 * m + 1]
            acc_h = th if acc_h is None else acc_h + th
            acc_g = tg if acc_g is None else acc_g + tg
        return acc_h, acc_g

    ss_v, sd_v = col_pass(as_e, as_o)
    ds_v, dd_v = col_pass(ad_e, ad_o)
    ss_ref[...] = ss_v
    sd_ref[...] = sd_v
    ds_ref[...] = ds_v
    dd_ref[...] = dd_v


_VMEM_BLOCK_BUDGET = 4 * 1024 * 1024   # per-block working-set target (bytes)


def _dwt2d_level_pallas(x, h, g, norm, p, mode):
    """One full 2-D DWT level -> (ss, sd, ds, dd), each (B, C, H/2, W/2)."""
    B, C, H, W = x.shape
    K = int(h.shape[-1])
    Kh = K // 2
    assert H % 2 == 0 and W % 2 == 0, "spatial dims must be even"
    assert 2 * p == K - 2
    H2, W2 = H // 2, W // 2
    HpH, WpH = H2 + Kh - 1, W2 + Kh - 1        # per-phase padded extents
    N = B * C

    # --- glue: pad W then H (mirrors the module) + 2x2 polyphase split -------
    xf = x.astype(jnp.float32)
    xp = pad_axis(pad_axis(xf, p, mode, -1), p, mode, -2)   # (B, C, H+2p, W+2p)
    xp = xp.reshape(N, 2 * HpH, 2 * WpH)
    xph = jnp.transpose(xp.reshape(N, HpH, 2, WpH, 2), (0, 2, 4, 1, 3))
    xph = xph.reshape(N, 4, HpH, WpH)

    # Filters: fold the approximation normalisation into the scaling filter.
    hn = (h.astype(jnp.float32) * norm).reshape(1, K)
    gg = g.astype(jnp.float32).reshape(1, K)

    # --- tile the flattened image axis to fit the VMEM budget ----------------
    per_img_bytes = 4 * (4 * HpH * WpH + 4 * HpH * W2 + 4 * H2 * W2)
    TB = int(max(1, min(N, _VMEM_BLOCK_BUDGET // max(per_img_bytes, 1))))
    while N % TB:
        TB -= 1
    grid = (N // TB,)

    out_shape = tuple(jax.ShapeDtypeStruct((N, H2, W2), jnp.float32)
                      for _ in range(4))
    in_specs = [
        pl.BlockSpec(memory_space=pltpu.MemorySpace.SMEM),            # hn
        pl.BlockSpec(memory_space=pltpu.MemorySpace.SMEM),            # g
        pl.BlockSpec((TB, 4, HpH, WpH), lambda i: (i, 0, 0, 0)),       # polyphase
    ]
    out_specs = tuple(pl.BlockSpec((TB, H2, W2), lambda i: (i, 0, 0))
                      for _ in range(4))
    scratch_shapes = [pltpu.VMEM((TB, HpH, W2), jnp.float32) for _ in range(4)]

    flops = 2 * K * 4 * N * (HpH * W2 + H2 * W2)
    bytes_accessed = 4 * N * (4 * HpH * WpH + 4 * H2 * W2) + 2 * 4 * K

    ss, sd, ds, dd = pl.pallas_call(
        _dwt2d_level_kernel,
        grid=grid,
        out_shape=out_shape,
        in_specs=in_specs,
        out_specs=out_specs,
        scratch_shapes=scratch_shapes,
        compiler_params=pltpu.CompilerParams(
            dimension_semantics=("parallel",),
            vmem_limit_bytes=32 * 1024 * 1024,
        ),
        cost_estimate=pl.CostEstimate(
            flops=flops, transcendentals=0, bytes_accessed=bytes_accessed),
    )(hn, gg, xph)

    def back(t):
        return t.reshape(B, C, H2, W2)

    return back(ss), back(sd), back(ds), back(dd)


# jit the whole level so the glue (pad + polyphase) fuses; p/mode are static.
dwt2d_level_pallas = jax.jit(_dwt2d_level_pallas, static_argnums=(4, 5))


# ----------------------------------------------------------------------------
# Pure-JAX reference, structured exactly like the PyTorch module.
# ----------------------------------------------------------------------------
def _dwt1d_ref(xpad, f):
    """Cross-correlation along the last axis, stride 2."""
    K = f.shape[-1]
    Lout = (xpad.shape[-1] - K) // 2 + 1
    out = jnp.zeros(xpad.shape[:-1] + (Lout,), jnp.float32)
    for k in range(K):
        out = out + xpad[..., k:k + 2 * Lout:2] * f[k]
    return out


def dwt2d_level_ref(x, h, g, norm, p, mode):
    xp = pad_axis(x.astype(jnp.float32), p, mode, -1)        # pad W
    s = jnp.swapaxes(_dwt1d_ref(xp, h), -1, -2)              # conv W, .mT
    d = jnp.swapaxes(_dwt1d_ref(xp, g), -1, -2)
    s = pad_axis(s, p, mode, -1) * norm                      # pad H, / h.sum()
    d = pad_axis(d, p, mode, -1)
    ss = jnp.swapaxes(_dwt1d_ref(s, h), -1, -2) * norm
    sd = jnp.swapaxes(_dwt1d_ref(s, g), -1, -2)
    ds = jnp.swapaxes(_dwt1d_ref(d, h), -1, -2) * norm
    dd = jnp.swapaxes(_dwt1d_ref(d, g), -1, -2)
    return ss, sd, ds, dd


# ----------------------------------------------------------------------------
# OrthonormalWaveletBlock2D (forward only)
# ----------------------------------------------------------------------------
class OrthonormalWaveletBlock2D:
    def __init__(self, kernel_size, levels=1, padding_mode="antireflect",
                 scaling_kernel=None, normalize_approximation=False, key=None):
        assert (kernel_size - 2) % 2 == 0, "Kernel size should be even"
        self.kernel_size = kernel_size
        self.levels = levels
        self.padding = (kernel_size - 2) // 2
        self.padding_mode = padding_mode
        self.normalize_approximation = normalize_approximation
        if scaling_kernel is None:
            # kaiming_uniform_(a=sqrt(5)) on a (1,1,K) tensor: bound = 1/sqrt(K)
            if key is None:
                key = jax.random.PRNGKey(0)
            bound = 1.0 / math.sqrt(kernel_size)
            scaling_kernel = jax.random.uniform(
                key, (kernel_size,), jnp.float32, minval=-bound, maxval=bound)
        self.h = jnp.asarray(scaling_kernel, jnp.float32).reshape(-1)
        signs = jnp.where(jnp.arange(kernel_size) % 2 == 0, 1.0, -1.0)
        self.g = jnp.flip(self.h) * signs.astype(jnp.float32)  # g = flip(h)*(-1)^r

    def _norm(self):
        if self.normalize_approximation:
            return 1.0 / jnp.sum(self.h)
        return jnp.float32(1.0)

    def _forward(self, signal, level_fn):
        assert signal.ndim == 4
        norm = self._norm()
        x = signal.astype(jnp.float32)
        ss, sd, ds, dd = [], [], [], []
        for _ in range(self.levels):
            a, b, c, d = level_fn(x, self.h, self.g, norm,
                                  self.padding, self.padding_mode)
            ss.append(a); sd.append(b); ds.append(c); dd.append(d)
            x = a                                   # next level uses ss
        return ss, sd, ds, dd

    def __call__(self, signal):
        return self._forward(signal, dwt2d_level_pallas)

    def reference(self, signal):
        return self._forward(signal, dwt2d_level_ref)


if __name__ == "__main__":
    key = jax.random.PRNGKey(0)
    kkey, xkey = jax.random.split(key)

    block = OrthonormalWaveletBlock2D(kernel_size=6, levels=2, key=kkey)
    x = jax.random.normal(xkey, (2, 4, 16, 16), dtype=jnp.float32)

    out = block(x)                       # fused Pallas level kernels
    jax.block_until_ready(out)

    ref = block.reference(x)             # pure-JAX reference (PyTorch structure)
    jax.block_until_ready(ref)

    for a_list, b_list in zip(out, ref):
        for a, b in zip(a_list, b_list):
            assert a.shape == b.shape
            assert jnp.allclose(a, b, rtol=1e-5, atol=1e-5), \
                "Pallas output mismatch vs reference"
    # level-1 subbands are (2,4,8,8), level-2 subbands are (2,4,4,4)
    assert out[0][0].shape == (2, 4, 8, 8) and out[0][1].shape == (2, 4, 4, 4)
    print("KERNEL_OK")
</pallas_src>

<mosaic_0001>
module attributes {stable_mosaic.version = 11 : i64} {
  func.func @_dwt2d_level_kernel(%arg0: i32, %arg1: memref<1x6xf32, #tpu.memory_space<smem>>, %arg2: memref<1x6xf32, #tpu.memory_space<smem>>, %arg3: memref<8x4x10x10xf32, #tpu.memory_space<vmem>>, %arg4: memref<8x8x8xf32, #tpu.memory_space<vmem>>, %arg5: memref<8x8x8xf32, #tpu.memory_space<vmem>>, %arg6: memref<8x8x8xf32, #tpu.memory_space<vmem>>, %arg7: memref<8x8x8xf32, #tpu.memory_space<vmem>>, %arg8: memref<8x10x8xf32, #tpu.memory_space<vmem>>, %arg9: memref<8x10x8xf32, #tpu.memory_space<vmem>>, %arg10: memref<8x10x8xf32, #tpu.memory_space<vmem>>, %arg11: memref<8x10x8xf32, #tpu.memory_space<vmem>>) attributes {dimension_semantics = [#tpu.dimension_semantics<parallel>], iteration_bounds = array<i64: 1>, scalar_prefetch = 0 : i64, scratch_operands = 4 : i64, tpu.core_type = #tpu.core_type<tc>, window_params = [{transform_indices = @transform_0, window_bounds = array<i64: 1, 6>}, {transform_indices = @transform_1, window_bounds = array<i64: 1, 6>}, {transform_indices = @transform_2, window_bounds = array<i64: 8, 4, 10, 10>}, {transform_indices = @transform_3, window_bounds = array<i64: 8, 8, 8>}, {transform_indices = @transform_4, window_bounds = array<i64: 8, 8, 8>}, {transform_indices = @transform_5, window_bounds = array<i64: 8, 8, 8>}, {transform_indices = @transform_6, window_bounds = array<i64: 8, 8, 8>}]} {
    %c0 = arith.constant 0 : index
    %c0_0 = arith.constant 0 : index
    %0 = memref.load %arg1[%c0, %c0_0] : memref<1x6xf32, #tpu.memory_space<smem>>
    %c0_1 = arith.constant 0 : index
    %c1 = arith.constant 1 : index
    %1 = memref.load %arg1[%c0_1, %c1] : memref<1x6xf32, #tpu.memory_space<smem>>
    %c0_2 = arith.constant 0 : index
    %c2 = arith.constant 2 : index
    %2 = memref.load %arg1[%c0_2, %c2] : memref<1x6xf32, #tpu.memory_space<smem>>
    %c0_3 = arith.constant 0 : index
    %c3 = arith.constant 3 : index
    %3 = memref.load %arg1[%c0_3, %c3] : memref<1x6xf32, #tpu.memory_space<smem>>
    %c0_4 = arith.constant 0 : index
    %c4 = arith.constant 4 : index
    %4 = memref.load %arg1[%c0_4, %c4] : memref<1x6xf32, #tpu.memory_space<smem>>
    %c0_5 = arith.constant 0 : index
    %c5 = arith.constant 5 : index
    %5 = memref.load %arg1[%c0_5, %c5] : memref<1x6xf32, #tpu.memory_space<smem>>
    %c0_6 = arith.constant 0 : index
    %c0_7 = arith.constant 0 : index
    %6 = memref.load %arg2[%c0_6, %c0_7] : memref<1x6xf32, #tpu.memory_space<smem>>
    %c0_8 = arith.constant 0 : index
    %c1_9 = arith.constant 1 : index
    %7 = memref.load %arg2[%c0_8, %c1_9] : memref<1x6xf32, #tpu.memory_space<smem>>
    %c0_10 = arith.constant 0 : index
    %c2_11 = arith.constant 2 : index
    %8 = memref.load %arg2[%c0_10, %c2_11] : memref<1x6xf32, #tpu.memory_space<smem>>
    %c0_12 = arith.constant 0 : index
    %c3_13 = arith.constant 3 : index
    %9 = memref.load %arg2[%c0_12, %c3_13] : memref<1x6xf32, #tpu.memory_space<smem>>
    %c0_14 = arith.constant 0 : index
    %c4_15 = arith.constant 4 : index
    %10 = memref.load %arg2[%c0_14, %c4_15] : memref<1x6xf32, #tpu.memory_space<smem>>
    %c0_16 = arith.constant 0 : index
    %c5_17 = arith.constant 5 : index
    %11 = memref.load %arg2[%c0_16, %c5_17] : memref<1x6xf32, #tpu.memory_space<smem>>
    %c0_18 = arith.constant 0 : index
    %c0_19 = arith.constant 0 : index
    %c0_20 = arith.constant 0 : index
    %c0_21 = arith.constant 0 : index
    %12 = vector.load %arg3[%c0_18, %c0_19, %c0_20, %c0_21] : memref<8x4x10x10xf32, #tpu.memory_space<vmem>>, vector<8x1x10x8xf32>
    %13 = vector.shape_cast %12 : vector<8x1x10x8xf32> to vector<8x10x8xf32>
    %c0_22 = arith.constant 0 : index
    %c1_23 = arith.constant 1 : index
    %c0_24 = arith.constant 0 : index
    %c0_25 = arith.constant 0 : index
    %14 = vector.load %arg3[%c0_22, %c1_23, %c0_24, %c0_25] : memref<8x4x10x10xf32, #tpu.memory_space<vmem>>, vector<8x1x10x8xf32>
    %15 = vector.shape_cast %14 : vector<8x1x10x8xf32> to vector<8x10x8xf32>
    %16 = vector.broadcast %0 : f32 to vector<8x10x8xf32>
    %17 = arith.mulf %13, %16 : vector<8x10x8xf32>
    %18 = vector.broadcast %1 : f32 to vector<8x10x8xf32>
    %19 = arith.mulf %15, %18 : vector<8x10x8xf32>
    %20 = arith.addf %17, %19 : vector<8x10x8xf32>
    %21 = vector.broadcast %6 : f32 to vector<8x10x8xf32>
    %22 = arith.mulf %13, %21 : vector<8x10x8xf32>
    %23 = vector.broadcast %7 : f32 to vector<8x10x8xf32>
    %24 = arith.mulf %15, %23 : vector<8x10x8xf32>
    %25 = arith.addf %22, %24 : vector<8x10x8xf32>
    %c0_26 = arith.constant 0 : index
    %c0_27 = arith.constant 0 : index
    %c0_28 = arith.constant 0 : index
    %c1_29 = arith.constant 1 : index
    %26 = vector.load %arg3[%c0_26, %c0_27, %c0_28, %c1_29] : memref<8x4x10x10xf32, #tpu.memory_space<vmem>>, vector<8x1x10x8xf32>
    %27 = vector.shape_cast %26 : vector<8x1x10x8xf32> to vector<8x10x8xf32>
    %c0_30 = arith.constant 0 : index
    %c1_31 = arith.constant 1 : index
    %c0_32 = arith.constant 0 : index
    %c1_33 = arith.constant 1 : index
    %28 = vector.load %arg3[%c0_30, %c1_31, %c0_32, %c1_33] : memref<8x4x10x10xf32, #tpu.memory_space<vmem>>, vector<8x1x10x8xf32>
    %29 = vector.shape_cast %28 : vector<8x1x10x8xf32> to vector<8x10x8xf32>
    %30 = vector.broadcast %2 : f32 to vector<8x10x8xf32>
    %31 = arith.mulf %27, %30 : vector<8x10x8xf32>
    %32 = vector.broadcast %3 : f32 to vector<8x10x8xf32>
    %33 = arith.mulf %29, %32 : vector<8x10x8xf32>
    %34 = arith.addf %31, %33 : vector<8x10x8xf32>
    %35 = vector.broadcast %8 : f32 to vector<8x10x8xf32>
    %36 = arith.mulf %27, %35 : vector<8x10x8xf32>
    %37 = vector.broadcast %9 : f32 to vector<8x10x8xf32>
    %38 = arith.mulf %29, %37 : vector<8x10x8xf32>
    %39 = arith.addf %36, %38 : vector<8x10x8xf32>
    %40 = arith.addf %20, %34 : vector<8x10x8xf32>
    %41 = arith.addf %25, %39 : vector<8x10x8xf32>
    %c0_34 = arith.constant 0 : index
    %c0_35 = arith.constant 0 : index
    %c0_36 = arith.constant 0 : index
    %c2_37 = arith.constant 2 : index
    %42 = vector.load %arg3[%c0_34, %c0_35, %c0_36, %c2_37] : memref<8x4x10x10xf32, #tpu.memory_space<vmem>>, vector<8x1x10x8xf32>
    %43 = vector.shape_cast %42 : vector<8x1x10x8xf32> to vector<8x10x8xf32>
    %c0_38 = arith.constant 0 : index
    %c1_39 = arith.constant 1 : index
    %c0_40 = arith.constant 0 : index
    %c2_41 = arith.constant 2 : index
    %44 = vector.load %arg3[%c0_38, %c1_39, %c0_40, %c2_41] : memref<8x4x10x10xf32, #tpu.memory_space<vmem>>, vector<8x1x10x8xf32>
    %45 = vector.shape_cast %44 : vector<8x1x10x8xf32> to vector<8x10x8xf32>
    %46 = vector.broadcast %4 : f32 to vector<8x10x8xf32>
    %47 = arith.mulf %43, %46 : vector<8x10x8xf32>
    %48 = vector.broadcast %5 : f32 to vector<8x10x8xf32>
    %49 = arith.mulf %45, %48 : vector<8x10x8xf32>
    %50 = arith.addf %47, %49 : vector<8x10x8xf32>
    %51 = vector.broadcast %10 : f32 to vector<8x10x8xf32>
    %52 = arith.mulf %43, %51 : vector<8x10x8xf32>
    %53 = vector.broadcast %11 : f32 to vector<8x10x8xf32>
    %54 = arith.mulf %45, %53 : vector<8x10x8xf32>
    %55 = arith.addf %52, %54 : vector<8x10x8xf32>
    %56 = arith.addf %40, %50 : vector<8x10x8xf32>
    %57 = arith.addf %41, %55 : vector<8x10x8xf32>
    %c0_42 = arith.constant 0 : index
    %c2_43 = arith.constant 2 : index
    %c0_44 = arith.constant 0 : index
    %c0_45 = arith.constant 0 : index
    %58 = vector.load %arg3[%c0_42, %c2_43, %c0_44, %c0_45] : memref<8x4x10x10xf32, #tpu.memory_space<vmem>>, vector<8x1x10x8xf32>
    %59 = vector.shape_cast %58 : vector<8x1x10x8xf32> to vector<8x10x8xf32>
    %c0_46 = arith.constant 0 : index
    %c3_47 = arith.constant 3 : index
    %c0_48 = arith.constant 0 : index
    %c0_49 = arith.constant 0 : index
    %60 = vector.load %arg3[%c0_46, %c3_47, %c0_48, %c0_49] : memref<8x4x10x10xf32, #tpu.memory_space<vmem>>, vector<8x1x10x8xf32>
    %61 = vector.shape_cast %60 : vector<8x1x10x8xf32> to vector<8x10x8xf32>
    %62 = vector.broadcast %0 : f32 to vector<8x10x8xf32>
    %63 = arith.mulf %59, %62 : vector<8x10x8xf32>
    %64 = vector.broadcast %1 : f32 to vector<8x10x8xf32>
    %65 = arith.mulf %61, %64 : vector<8x10x8xf32>
    %66 = arith.addf %63, %65 : vector<8x10x8xf32>
    %67 = vector.broadcast %6 : f32 to vector<8x10x8xf32>
    %68 = arith.mulf %59, %67 : vector<8x10x8xf32>
    %69 = vector.broadcast %7 : f32 to vector<8x10x8xf32>
    %70 = arith.mulf %61, %69 : vector<8x10x8xf32>
    %71 = arith.addf %68, %70 : vector<8x10x8xf32>
    %c0_50 = arith.constant 0 : index
    %c2_51 = arith.constant 2 : index
    %c0_52 = arith.constant 0 : index
    %c1_53 = arith.constant 1 : index
    %72 = vector.load %arg3[%c0_50, %c2_51, %c0_52, %c1_53] : memref<8x4x10x10xf32, #tpu.memory_space<vmem>>, vector<8x1x10x8xf32>
    %73 = vector.shape_cast %72 : vector<8x1x10x8xf32> to vector<8x10x8xf32>
    %c0_54 = arith.constant 0 : index
    %c3_55 = arith.constant 3 : index
    %c0_56 = arith.constant 0 : index
    %c1_57 = arith.constant 1 : index
    %74 = vector.load %arg3[%c0_54, %c3_55, %c0_56, %c1_57] : memref<8x4x10x10xf32, #tpu.memory_space<vmem>>, vector<8x1x10x8xf32>
    %75 = vector.shape_cast %74 : vector<8x1x10x8xf32> to vector<8x10x8xf32>
    %76 = vector.broadcast %2 : f32 to vector<8x10x8xf32>
    %77 = arith.mulf %73, %76 : vector<8x10x8xf32>
    %78 = vector.broadcast %3 : f32 to vector<8x10x8xf32>
    %79 = arith.mulf %75, %78 : vector<8x10x8xf32>
    %80 = arith.addf %77, %79 : vector<8x10x8xf32>
    %81 = vector.broadcast %8 : f32 to vector<8x10x8xf32>
    %82 = arith.mulf %73, %81 : vector<8x10x8xf32>
    %83 = vector.broadcast %9 : f32 to vector<8x10x8xf32>
    %84 = arith.mulf %75, %83 : vector<8x10x8xf32>
    %85 = arith.addf %82, %84 : vector<8x10x8xf32>
    %86 = arith.addf %66, %80 : vector<8x10x8xf32>
    %87 = arith.addf %71, %85 : vector<8x10x8xf32>
    %c0_58 = arith.constant 0 : index
    %c2_59 = arith.constant 2 : index
    %c0_60 = arith.constant 0 : index
    %c2_61 = arith.constant 2 : index
    %88 = vector.load %arg3[%c0_58, %c2_59, %c0_60, %c2_61] : memref<8x4x10x10xf32, #tpu.memory_space<vmem>>, vector<8x1x10x8xf32>
    %89 = vector.shape_cast %88 : vector<8x1x10x8xf32> to vector<8x10x8xf32>
    %c0_62 = arith.constant 0 : index
    %c3_63 = arith.constant 3 : index
    %c0_64 = arith.constant 0 : index
    %c2_65 = arith.constant 2 : index
    %90 = vector.load %arg3[%c0_62, %c3_63, %c0_64, %c2_65] : memref<8x4x10x10xf32, #tpu.memory_space<vmem>>, vector<8x1x10x8xf32>
    %91 = vector.shape_cast %90 : vector<8x1x10x8xf32> to vector<8x10x8xf32>
    %92 = vector.broadcast %4 : f32 to vector<8x10x8xf32>
    %93 = arith.mulf %89, %92 : vector<8x10x8xf32>
    %94 = vector.broadcast %5 : f32 to vector<8x10x8xf32>
    %95 = arith.mulf %91, %94 : vector<8x10x8xf32>
    %96 = arith.addf %93, %95 : vector<8x10x8xf32>
    %97 = vector.broadcast %10 : f32 to vector<8x10x8xf32>
    %98 = arith.mulf %89, %97 : vector<8x10x8xf32>
    %99 = vector.broadcast %11 : f32 to vector<8x10x8xf32>
    %100 = arith.mulf %91, %99 : vector<8x10x8xf32>
    %101 = arith.addf %98, %100 : vector<8x10x8xf32>
    %102 = arith.addf %86, %96 : vector<8x10x8xf32>
    %103 = arith.addf %87, %101 : vector<8x10x8xf32>
    %c0_66 = arith.constant 0 : index
    %c0_67 = arith.constant 0 : index
    %c0_68 = arith.constant 0 : index
    %104 = vector.load %arg8[%c0_66, %c0_67, %c0_68] : memref<8x10x8xf32, #tpu.memory_space<vmem>>, vector<8x10x8xf32>
    tpu.vector_store %arg8[%c0_66, %c0_67, %c0_68], %56 {strides = array<i32>} : memref<8x10x8xf32, #tpu.memory_space<vmem>>, vector<8x10x8xf32>,
    %c0_69 = arith.constant 0 : index
    %c0_70 = arith.constant 0 : index
    %c0_71 = arith.constant 0 : index
    %105 = vector.load %arg9[%c0_69, %c0_70, %c0_71] : memref<8x10x8xf32, #tpu.memory_space<vmem>>, vector<8x10x8xf32>
    tpu.vector_store %arg9[%c0_69, %c0_70, %c0_71], %102 {strides = array<i32>} : memref<8x10x8xf32, #tpu.memory_space<vmem>>, vector<8x10x8xf32>,
    %c0_72 = arith.constant 0 : index
    %c0_73 = arith.constant 0 : index
    %c0_74 = arith.constant 0 : index
    %106 = vector.load %arg10[%c0_72, %c0_73, %c0_74] : memref<8x10x8xf32, #tpu.memory_space<vmem>>, vector<8x10x8xf32>
    tpu.vector_store %arg10[%c0_72, %c0_73, %c0_74], %57 {strides = array<i32>} : memref<8x10x8xf32, #tpu.memory_space<vmem>>, vector<8x10x8xf32>,
    %c0_75 = arith.constant 0 : index
    %c0_76 = arith.constant 0 : index
    %c0_77 = arith.constant 0 : index
    %107 = vector.load %arg11[%c0_75, %c0_76, %c0_77] : memref<8x10x8xf32, #tpu.memory_space<vmem>>, vector<8x10x8xf32>
    tpu.vector_store %arg11[%c0_75, %c0_76, %c0_77], %103 {strides = array<i32>} : memref<8x10x8xf32, #tpu.memory_space<vmem>>, vector<8x10x8xf32>,
    %c0_78 = arith.constant 0 : index
    %c0_79 = arith.constant 0 : index
    %c0_80 = arith.constant 0 : index
    %108 = vector.load %arg8[%c0_78, %c0_79, %c0_80] : memref<8x10x8xf32, #tpu.memory_space<vmem>>, vector<8x8x8xf32>
    %c0_81 = arith.constant 0 : index
    %c0_82 = arith.constant 0 : index
    %c0_83 = arith.constant 0 : index
    %109 = vector.load %arg9[%c0_81, %c0_82, %c0_83] : memref<8x10x8xf32, #tpu.memory_space<vmem>>, vector<8x8x8xf32>
    %110 = vector.broadcast %0 : f32 to vector<8x8x8xf32>
    %111 = arith.mulf %108, %110 : vector<8x8x8xf32>
    %112 = vector.broadcast %1 : f32 to vector<8x8x8xf32>
    %113 = arith.mulf %109, %112 : vector<8x8x8xf32>
    %114 = arith.addf %111, %113 : vector<8x8x8xf32>
    %115 = vector.broadcast %6 : f32 to vector<8x8x8xf32>
    %116 = arith.mulf %108, %115 : vector<8x8x8xf32>
    %117 = vector.broadcast %7 : f32 to vector<8x8x8xf32>
    %118 = arith.mulf %109, %117 : vector<8x8x8xf32>
    %119 = arith.addf %116, %118 : vector<8x8x8xf32>
    %c0_84 = arith.constant 0 : index
    %c1_85 = arith.constant 1 : index
    %c0_86 = arith.constant 0 : index
    %120 = vector.load %arg8[%c0_84, %c1_85, %c0_86] : memref<8x10x8xf32, #tpu.memory_space<vmem>>, vector<8x8x8xf32>
    %c0_87 = arith.constant 0 : index
    %c1_88 = arith.constant 1 : index
    %c0_89 = arith.constant 0 : index
    %121 = vector.load %arg9[%c0_87, %c1_88, %c0_89] : memref<8x10x8xf32, #tpu.memory_space<vmem>>, vector<8x8x8xf32>
    %122 = vector.broadcast %2 : f32 to vector<8x8x8xf32>
    %123 = arith.mulf %120, %122 : vector<8x8x8xf32>
    %124 = vector.broadcast %3 : f32 to vector<8x8x8xf32>
    %125 = arith.mulf %121, %124 : vector<8x8x8xf32>
    %126 = arith.addf %123, %125 : vector<8x8x8xf32>
    %127 = vector.broadcast %8 : f32 to vector<8x8x8xf32>
    %128 = arith.mulf %120, %127 : vector<8x8x8xf32>
    %129 = vector.broadcast %9 : f32 to vector<8x8x8xf32>
    %130 = arith.mulf %121, %129 : vector<8x8x8xf32>
    %131 = arith.addf %128, %130 : vector<8x8x8xf32>
    %132 = arith.addf %114, %126 : vector<8x8x8xf32>
    %133 = arith.addf %119, %131 : vector<8x8x8xf32>
    %c0_90 = arith.constant 0 : index
    %c2_91 = arith.constant 2 : index
    %c0_92 = arith.constant 0 : index
    %134 = vector.load %arg8[%c0_90, %c2_91, %c0_92] : memref<8x10x8xf32, #tpu.memory_space<vmem>>, vector<8x8x8xf32>
    %c0_93 = arith.constant 0 : index
    %c2_94 = arith.constant 2 : index
    %c0_95 = arith.constant 0 : index
    %135 = vector.load %arg9[%c0_93, %c2_94, %c0_95] : memref<8x10x8xf32, #tpu.memory_space<vmem>>, vector<8x8x8xf32>
    %136 = vector.broadcast %4 : f32 to vector<8x8x8xf32>
    %137 = arith.mulf %134, %136 : vector<8x8x8xf32>
    %138 = vector.broadcast %5 : f32 to vector<8x8x8xf32>
    %139 = arith.mulf %135, %138 : vector<8x8x8xf32>
    %140 = arith.addf %137, %139 : vector<8x8x8xf32>
    %141 = vector.broadcast %10 : f32 to vector<8x8x8xf32>
    %142 = arith.mulf %134, %141 : vector<8x8x8xf32>
    %143 = vector.broadcast %11 : f32 to vector<8x8x8xf32>
    %144 = arith.mulf %135, %143 : vector<8x8x8xf32>
    %145 = arith.addf %142, %144 : vector<8x8x8xf32>
    %146 = arith.addf %132, %140 : vector<8x8x8xf32>
    %147 = arith.addf %133, %145 : vector<8x8x8xf32>
    %c0_96 = arith.constant 0 : index
    %c0_97 = arith.constant 0 : index
    %c0_98 = arith.constant 0 : index
    %148 = vector.load %arg10[%c0_96, %c0_97, %c0_98] : memref<8x10x8xf32, #tpu.memory_space<vmem>>, vector<8x8x8xf32>
    %c0_99 = arith.constant 0 : index
    %c0_100 = arith.constant 0 : index
    %c0_101 = arith.constant 0 : index
    %149 = vector.load %arg11[%c0_99, %c0_100, %c0_101] : memref<8x10x8xf32, #tpu.memory_space<vmem>>, vector<8x8x8xf32>
    %150 = vector.broadcast %0 : f32 to vector<8x8x8xf32>
    %151 = arith.mulf %148, %150 : vector<8x8x8xf32>
    %152 = vector.broadcast %1 : f32 to vector<8x8x8xf32>
    %153 = arith.mulf %149, %152 : vector<8x8x8xf32>
    %154 = arith.addf %151, %153 : vector<8x8x8xf32>
    %155 = vector.broadcast %6 : f32 to vector<8x8x8xf32>
    %156 = arith.mulf %148, %155 : vector<8x8x8xf32>
    %157 = vector.broadcast %7 : f32 to vector<8x8x8xf32>
    %158 = arith.mulf %149, %157 : vector<8x8x8xf32>
    %159 = arith.addf %156, %158 : vector<8x8x8xf32>
    %c0_102 = arith.constant 0 : index
    %c1_103 = arith.constant 1 : index
    %c0_104 = arith.constant 0 : index
    %160 = vector.load %arg10[%c0_102, %c1_103, %c0_104] : memref<8x10x8xf32, #tpu.memory_space<vmem>>, vector<8x8x8xf32>
    %c0_105 = arith.constant 0 : index
    %c1_106 = arith.constant 1 : index
    %c0_107 = arith.constant 0 : index
    %161 = vector.load %arg11[%c0_105, %c1_106, %c0_107] : memref<8x10x8xf32, #tpu.memory_space<vmem>>, vector<8x8x8xf32>
    %162 = vector.broadcast %2 : f32 to vector<8x8x8xf32>
    %163 = arith.mulf %160, %162 : vector<8x8x8xf32>
    %164 = vector.broadcast %3 : f32 to vector<8x8x8xf32>
    %165 = arith.mulf %161, %164 : vector<8x8x8xf32>
    %166 = arith.addf %163, %165 : vector<8x8x8xf32>
    %167 = vector.broadcast %8 : f32 to vector<8x8x8xf32>
    %168 = arith.mulf %160, %167 : vector<8x8x8xf32>
    %169 = vector.broadcast %9 : f32 to vector<8x8x8xf32>
    %170 = arith.mulf %161, %169 : vector<8x8x8xf32>
    %171 = arith.addf %168, %170 : vector<8x8x8xf32>
    %172 = arith.addf %154, %166 : vector<8x8x8xf32>
    %173 = arith.addf %159, %171 : vector<8x8x8xf32>
    %c0_108 = arith.constant 0 : index
    %c2_109 = arith.constant 2 : index
    %c0_110 = arith.constant 0 : index
    %174 = vector.load %arg10[%c0_108, %c2_109, %c0_110] : memref<8x10x8xf32, #tpu.memory_space<vmem>>, vector<8x8x8xf32>
    %c0_111 = arith.constant 0 : index
    %c2_112 = arith.constant 2 : index
    %c0_113 = arith.constant 0 : index
    %175 = vector.load %arg11[%c0_111, %c2_112, %c0_113] : memref<8x10x8xf32, #tpu.memory_space<vmem>>, vector<8x8x8xf32>
    %176 = vector.broadcast %4 : f32 to vector<8x8x8xf32>
    %177 = arith.mulf %174, %176 : vector<8x8x8xf32>
    %178 = vector.broadcast %5 : f32 to vector<8x8x8xf32>
    %179 = arith.mulf %175, %178 : vector<8x8x8xf32>
    %180 = arith.addf %177, %179 : vector<8x8x8xf32>
    %181 = vector.broadcast %10 : f32 to vector<8x8x8xf32>
    %182 = arith.mulf %174, %181 : vector<8x8x8xf32>
    %183 = vector.broadcast %11 : f32 to vector<8x8x8xf32>
    %184 = arith.mulf %175, %183 : vector<8x8x8xf32>
    %185 = arith.addf %182, %184 : vector<8x8x8xf32>
    %186 = arith.addf %172, %180 : vector<8x8x8xf32>
    %187 = arith.addf %173, %185 : vector<8x8x8xf32>
    %c0_114 = arith.constant 0 : index
    %c0_115 = arith.constant 0 : index
    %c0_116 = arith.constant 0 : index
    %188 = vector.load %arg4[%c0_114, %c0_115, %c0_116] : memref<8x8x8xf32, #tpu.memory_space<vmem>>, vector<8x8x8xf32>
    tpu.vector_store %arg4[%c0_114, %c0_115, %c0_116], %146 {strides = array<i32>} : memref<8x8x8xf32, #tpu.memory_space<vmem>>, vector<8x8x8xf32>,
    %c0_117 = arith.constant 0 : index
    %c0_118 = arith.constant 0 : index
    %c0_119 = arith.constant 0 : index
    %189 = vector.load %arg5[%c0_117, %c0_118, %c0_119] : memref<8x8x8xf32, #tpu.memory_space<vmem>>, vector<8x8x8xf32>
    tpu.vector_store %arg5[%c0_117, %c0_118, %c0_119], %147 {strides = array<i32>} : memref<8x8x8xf32, #tpu.memory_space<vmem>>, vector<8x8x8xf32>,
    %c0_120 = arith.constant 0 : index
    %c0_121 = arith.constant 0 : index
    %c0_122 = arith.constant 0 : index
    %190 = vector.load %arg6[%c0_120, %c0_121, %c0_122] : memref<8x8x8xf32, #tpu.memory_space<vmem>>, vector<8x8x8xf32>
    tpu.vector_store %arg6[%c0_120, %c0_121, %c0_122], %186 {strides = array<i32>} : memref<8x8x8xf32, #tpu.memory_space<vmem>>, vector<8x8x8xf32>,
    %c0_123 = arith.constant 0 : index
    %c0_124 = arith.constant 0 : index
    %c0_125 = arith.constant 0 : index
    %191 = vector.load %arg7[%c0_123, %c0_124, %c0_125] : memref<8x8x8xf32, #tpu.memory_space<vmem>>, vector<8x8x8xf32>
    tpu.vector_store %arg7[%c0_123, %c0_124, %c0_125], %187 {strides = array<i32>} : memref<8x8x8xf32, #tpu.memory_space<vmem>>, vector<8x8x8xf32>,
    return
  }
  func.func @transform_0(%arg0: i32) -> (i32, i32) {
    %c0_i32 = arith.constant 0 : i32
    %c0_i32_0 = arith.constant 0 : i32
    %c0_i32_1 = arith.constant 0 : i32
    return %c0_i32, %c0_i32_0 : i32, i32
  }
  func.func @transform_1(%arg0: i32) -> (i32, i32) {
    %c0_i32 = arith.constant 0 : i32
    %c0_i32_0 = arith.constant 0 : i32
    %c0_i32_1 = arith.constant 0 : i32
    return %c0_i32, %c0_i32_0 : i32, i32
  }
  func.func @transform_2(%arg0: i32) -> (i32, i32, i32, i32) {
    %c0_i32 = arith.constant 0 : i32
    %c0_i32_0 = arith.constant 0 : i32
    %c0_i32_1 = arith.constant 0 : i32
    %c0_i32_2 = arith.constant 0 : i32
    return %arg0, %c0_i32, %c0_i32_0, %c0_i32_1 : i32, i32, i32, i32
  }
  func.func @transform_3(%arg0: i32) -> (i32, i32, i32) {
    %c0_i32 = arith.constant 0 : i32
    %c0_i32_0 = arith.constant 0 : i32
    %c0_i32_1 = arith.constant 0 : i32
    return %arg0, %c0_i32, %c0_i32_0 : i32, i32, i32
  }
  func.func @transform_4(%arg0: i32) -> (i32, i32, i32) {
    %c0_i32 = arith.constant 0 : i32
    %c0_i32_0 = arith.constant 0 : i32
    %c0_i32_1 = arith.constant 0 : i32
    return %arg0, %c0_i32, %c0_i32_0 : i32, i32, i32
  }
  func.func @transform_5(%arg0: i32) -> (i32, i32, i32) {
    %c0_i32 = arith.constant 0 : i32
    %c0_i32_0 = arith.constant 0 : i32
    %c0_i32_1 = arith.constant 0 : i32
    return %arg0, %c0_i32, %c0_i32_0 : i32, i32, i32
  }
  func.func @transform_6(%arg0: i32) -> (i32, i32, i32) {
    %c0_i32 = arith.constant 0 : i32
    %c0_i32_0 = arith.constant 0 : i32
    %c0_i32_1 = arith.constant 0 : i32
    return %arg0, %c0_i32, %c0_i32_0 : i32, i32, i32
  }
}

</mosaic_0001>

<bundles_post_ra>
// kernel: _dwt2d_level_pallas.1
= control target key start
LH: loop header
LB: loop body
LE: loop exit
PB: predicated region body
PF: predicated region fallthrough
CT: control target
= control target key end

     0   :  { %12 = vsyncpa [#allocation8], 0  ;;  %s4545_s0 = inlined_call_operand.vmem [shape: f32[1,6], index: 0, kind: input, shape index: {}]   ;;  %s4546_s1 = inlined_call_operand.vmem [shape: f32[1,6], index: 1, kind: input, shape index: {}]   ;;  %s4547_s2 = inlined_call_operand.vmem [shape: f32[8,4,10,10], index: 2, kind: input, shape index: {}]   ;;  %s4548_s3 = inlined_call_operand.hbm [shape: f32[8,8,8], index: 3, kind: output, shape index: {0}]   ;;  %s4549_s4 = inlined_call_operand.hbm [shape: f32[8,8,8], index: 4, kind: output, shape index: {1}]   ;;  %s4550_s5 = inlined_call_operand.hbm [shape: f32[8,8,8], index: 5, kind: output, shape index: {2}]   ;;  %s4551_s6 = inlined_call_operand.hbm [shape: f32[8,8,8], index: 6, kind: output, shape index: {3}]  }
   0x1   :  { %13 = vsyncpa [#allocation10], 0 }
   0x2   :  { %14 = vsyncpa [#allocation7], 0 }
   0x3   :  { %15 = vsyncpa [#allocation13], 0 }
   0x4   :  { %16 = vsyncpa [#allocation16], 0  ;;  %s22_s23 = sshll.u32 %s4545_s0, 4  ;;  %s31_s26 = sshll.u32 %s4546_s1, 4  ;;  %s23_s23 = int_to_ptr.vmem [resolvable:$true] %s22_s23  ;;  %s32_s26 = int_to_ptr.vmem [resolvable:$true] %s31_s26 }
   0x5   :  { %s2232_s27 = smov [#allocation6]   ;;  %s2233_s28 = smov [#allocation9]  }
   0x6   :  { %25 = dma.vmem_to_smem %s23_s23, 16, %s2232_s27, [#allocation8]  }
   0x7   :  { %34 = dma.vmem_to_smem %s32_s26, 16, %s2233_s28, [#allocation10]  }
   0x8   :  { %2222 = dma.done.wait [#allocation8], 16  }
   0x9   :  { %2223 = vsyncadd [#allocation8], 4294967280 }
   0xa   :  { %2224 = dma.done.wait [#allocation10], 16  }
   0xb   :  { %2225 = vsyncadd [#allocation10], 4294967280 }
   0xc   :  { %45 = sfence }
   0xd   :  { %s1973_s29 = sld [smem:[#allocation6 + $0x2]]  ;;  %v2286_v0 = vld [vmem:[%s4547_s2 + $0x80] sm:$0xff]  ;;  %v2301_v3 = vld [vmem:[%s4547_s2 + $0x90] sm:$0xff]  ;;  %v2332_v14 = vld [vmem:[%s4547_s2 + $0x88] sm:$0x3]  ;;  %s2235_s23 = smov 126  }
   0xe   :  { %s1974_s30 = sld [smem:[#allocation6 + $0x3]]  ;;  %v2291_v1 = vld [vmem:[%s4547_s2 + $0x40] sm:$0xff]  ;;  %v2306_v4 = vld [vmem:[%s4547_s2 + $0x50] sm:$0xff]  ;;  %v2337_v15 = vld [vmem:[%s4547_s2 + $0x98] sm:$0x3]  ;;  %vm1353_vm0 = vcmask 64512  }
   0xf   :  { %v2296_v2 = vld [vmem:[%s4547_s2] sm:$0xff]  ;;  %v2311_v5 = vld [vmem:[%s4547_s2 + $0x10] sm:$0xff]  ;;  %v2342_v16 = vld [vmem:[%s4547_s2 + $0x48] sm:$0x3]  ;;  %s1978_s28 = sld [smem:[#allocation9 + $0x2]]  ;;  %vm1355_vm1 = vcmask 58368  }
  0x10   :  { %v2347_v17 = vld [vmem:[%s4547_s2 + $0x58] sm:$0x3]  ;;  %v2352_v21 = vld [vmem:[%s4547_s2 + $0x8] sm:$0x3]  ;;  %v2377_v31 = vld [vmem:[%s4547_s2 + $0x100] sm:$0xff]  ;;  %s1979_s8 = sld [smem:[#allocation9 + $0x3]] }
  0x11   :  { %v2357_v22 = vld [vmem:[%s4547_s2 + $0x18] sm:$0x3]  ;;  %v2382_v33 = vld [vmem:[%s4547_s2 + $0x110] sm:$0xff]  ;;  %v2387_v34 = vld [vmem:[%s4547_s2 + $0xc8] sm:$0x3]  ;;  %s1975_s21 = sld [smem:[#allocation6 + $0x4]] }
  0x12   :  { %v2392_v35 = vld [vmem:[%s4547_s2 + $0xd8] sm:$0x3]  ;;  %v2397_v36 = vld [vmem:[%s4547_s2 + $0xc0] sm:$0xff]  ;;  %v2402_v37 = vld [vmem:[%s4547_s2 + $0xd0] sm:$0xff]  ;;  %s1976_s22 = sld [smem:[#allocation6 + $0x5]]  ;;  %s1931_s0 = sshll.u32 %s4550_s5, 4  ;;  %s1932_s0 = int_to_ptr.hbm [resolvable:$true] %s1931_s0 }
  0x13   :  { %v2313_v6 = vstv %s1973_s29  ;;  %s2234_s29 = smov 127   ;;  %v2422_v46 = vld [vmem:[%s4547_s2 + $0x148] sm:$0x3]  ;;  %v2427_v48 = vld [vmem:[%s4547_s2 + $0x158] sm:$0x3]  ;;  %v2432_v49 = vld [vmem:[%s4547_s2 + $0x140] sm:$0xff] }
  0x14   :  { %4622 = vst [vmem:[#allocation22_spill] sm:$0xff] %v2313_v6  ;;  %v196_v7 = vmul.f32 %v2313_v6, %v2286_v0  ;;  %v2317_v8 = vstv %s1974_s30  ;;  %v194_v9 = vmul.f32 %v2313_v6, %v2291_v1  ;;  %v192_v10 = vmul.f32 %v2313_v6, %v2296_v2  ;;  %v2437_v50 = vld [vmem:[%s4547_s2 + $0x150] sm:$0xff]  ;;  %v2442_v51 = vld [vmem:[%s4547_s2 + $0x108] sm:$0x3]  ;;  %v2447_v52 = vld [vmem:[%s4547_s2 + $0x118] sm:$0x3] }
  0x15   :  { %4623 = vst [vmem:[#allocation23_spill] sm:$0xff] %v2317_v8  ;;  %v213_v11 = vmul.f32 %v2301_v3, %v2317_v8  ;;  %v211_v12 = vmul.f32 %v2306_v4, %v2317_v8  ;;  %v209_v13 = vmul.f32 %v2311_v5, %v2317_v8  ;;  %v197_v23 = vmul.f32 %v2313_v6, %v2332_v14  ;;  %v2467_v61 = vld [vmem:[%s4547_s2 + $0x1c0] sm:$0xff]  ;;  %v2472_v63 = vld [vmem:[%s4547_s2 + $0x1d0] sm:$0xff]  ;;  %s1980_s24 = sld [smem:[#allocation9 + $0x4]]  ;;  %s2241_s9 = smov [#allocation15]  }
  0x16   :  { %v214_v24 = vmul.f32 %v2337_v15, %v2317_v8  ;;  %v195_v25 = vmul.f32 %v2313_v6, %v2342_v16  ;;  %v212_v26 = vmul.f32 %v2347_v17, %v2317_v8  ;;  %v193_v27 = vmul.f32 %v2313_v6, %v2352_v21  ;;  %4624 = vst [vmem:[#allocation24_spill] sm:$0xff] %v2427_v48  ;;  %s1981_s25 = sld [smem:[#allocation9 + $0x5]]  ;;  %s1942_s1 = sshll.u32 %s2241_s9, 4  ;;  %s1943_s1 = int_to_ptr.vmem [resolvable:$true] %s1942_s1 }
  0x17   :  { %v229_v18 = vadd.f32 %v213_v11, %v196_v7  ;;  %v227_v19 = vadd.f32 %v211_v12, %v194_v9  ;;  %v225_v20 = vadd.f32 %v209_v13, %v192_v10  ;;  %v210_v28 = vmul.f32 %v2357_v22, %v2317_v8  ;;  %4625 = vst [vmem:[#allocation25_spill] sm:$0xff] %v2432_v49  ;;  %v2477_v7 = vld [vmem:[%s4547_s2 + $0x188] sm:$0x3]  ;;  %v2482_v9 = vld [vmem:[%s4547_s2 + $0x198] sm:$0x3]  ;;  %v2487_v10 = vld [vmem:[%s4547_s2 + $0x180] sm:$0xff] }
  0x18   :  { %v230_v29 = vadd.f32 %v214_v24, %v197_v23  ;;  %v228_v30 = vadd.f32 %v212_v26, %v195_v25  ;;  %v200_v38 = vmul.f32 %v2313_v6, %v2377_v31  ;;  %v217_v39 = vmul.f32 %v2382_v33, %v2317_v8  ;;  %4626 = vst [vmem:[#allocation26_spill] sm:$0xff] %v2437_v50  ;;  %v2492_v11 = vld [vmem:[%s4547_s2 + $0x190] sm:$0xff]  ;;  %s46_s26 = sld [smem:[#allocation6]] }
  0x19   :  { %315 = vrot.lane.b32.xlu2 %v229_v18, %s2234_s29  ;;  %311 = vrot.lane.b32.xlu1 %v227_v19, %s2234_s29  ;;  %v226_v32 = vadd.f32 %v210_v28, %v193_v27  ;;  %v199_v40 = vmul.f32 %v2313_v6, %v2387_v34  ;;  %v216_v41 = vmul.f32 %v2392_v35, %v2317_v8  ;;  %v2509_v26 = vstv %s1978_s28  ;;  %s1972_s27 = sld [smem:[#allocation6 + $0x1]]  ;;  %s2240_s28 = smov [#allocation14]  }
  0x1a   :  { %307 = vrot.lane.b32.xlu0 %v225_v20, %s2234_s29  ;;  %v198_v42 = vmul.f32 %v2313_v6, %v2397_v36  ;;  %v215_v43 = vmul.f32 %v2402_v37, %v2317_v8  ;;  %v233_v44 = vadd.f32 %v217_v39, %v200_v38  ;;  %v203_v53 = vmul.f32 %v2313_v6, %v2422_v46  ;;  %s3102_s15 = sld [smem:[#allocation9]]  ;;  %s1929_s30 = sshll.u32 %s2240_s28, 4  ;;  %s1930_s30 = int_to_ptr.vmem [resolvable:$true] %s1929_s30 }
  0x1b   :  { %v232_v45 = vadd.f32 %v216_v41, %v199_v40  ;;  %v220_v54 = vmul.f32 %v2427_v48, %v2317_v8  ;;  %v202_v55 = vmul.f32 %v2313_v6, %v2432_v49  ;;  %v219_v56 = vmul.f32 %v2437_v50, %v2317_v8  ;;  %4627 = vst [vmem:[#allocation27_spill] sm:$0xff] %v2467_v61  ;;  %s3121_s20 = sld [smem:[#allocation9 + $0x1]] }
  0x1c   :  { %v231_v47 = vadd.f32 %v215_v43, %v198_v42  ;;  %v201_v57 = vmul.f32 %v2313_v6, %v2442_v51  ;;  %v218_v58 = vmul.f32 %v2447_v52, %v2317_v8  ;;  %4628 = vst [vmem:[#allocation28_spill] sm:$0xff] %v2472_v63  ;;  %v206_v12 = vmul.f32 %v2313_v6, %v2467_v61 }
  0x1d   :  { %v236_v59 = vadd.f32 %v220_v54, %v203_v53  ;;  %v235_v60 = vadd.f32 %v219_v56, %v202_v55  ;;  %4629 = vst [vmem:[#allocation29_spill] sm:$0xff] %v2477_v7  ;;  %v223_v13 = vmul.f32 %v2472_v63, %v2317_v8  ;;  %v205_v18 = vmul.f32 %v2313_v6, %v2477_v7 }
  0x1e   :  { %v234_v62 = vadd.f32 %v218_v58, %v201_v57  ;;  %4630 = vst [vmem:[#allocation30_spill] sm:$0xff] %v2482_v9  ;;  %v222_v19 = vmul.f32 %v2482_v9, %v2317_v8  ;;  %v204_v20 = vmul.f32 %v2313_v6, %v2487_v10  ;;  %v221_v23 = vmul.f32 %v2492_v11, %v2317_v8 }
  0x1f   :  { %v239_v24 = vadd.f32 %v223_v13, %v206_v12  ;;  %4631 = vst [vmem:[#allocation31_spill] sm:$0xff] %v2509_v26  ;;  %v2511_v28 = vstv %s1979_s8  ;;  %v242_v39 = vmul.f32 %v2509_v26, %v2296_v2  ;;  %v245_v54 = vmul.f32 %v2509_v26, %v2342_v16 }
  0x20   :  { %v238_v25 = vadd.f32 %v222_v19, %v205_v18  ;;  %v237_v27 = vadd.f32 %v221_v23, %v204_v20  ;;  %4632 = vst [vmem:[#allocation32_spill] sm:$0xff] %v2511_v28  ;;  %v260_v38 = vmul.f32 %v2357_v22, %v2511_v28  ;;  %v259_v40 = vmul.f32 %v2311_v5, %v2511_v28 }
  0x21   :  { %317 = vrot.lane.b32.xlu2 %v230_v29, %s2234_s29  ;;  %313 = vrot.lane.b32.xlu1 %v228_v30, %s2234_s29  ;;  %v2516_v29 = vld [vmem:[%s4547_s2 + $0x1c8] sm:$0x3]  ;;  %v2521_v30 = vld [vmem:[%s4547_s2 + $0x1d8] sm:$0x3]  ;;  %v263_v53 = vmul.f32 %v2301_v3, %v2511_v28  ;;  %v262_v55 = vmul.f32 %v2347_v17, %v2511_v28  ;;  %v244_v56 = vmul.f32 %v2509_v26, %v2291_v1 }
  0x22   :  { %309 = vrot.lane.b32.xlu0 %v226_v32, %s2234_s29  ;;  %v243_v32 = vmul.f32 %v2509_v26, %v2352_v21  ;;  %v207_v41 = vmul.f32 %v2313_v6, %v2516_v29  ;;  %v224_v42 = vmul.f32 %v2521_v30, %v2317_v8  ;;  %v261_v57 = vmul.f32 %v2306_v4, %v2511_v28 }
  0x23   :  { %v266_v12 = vmul.f32 %v2392_v35, %v2511_v28  ;;  %v248_v13 = vmul.f32 %v2509_v26, %v2397_v36  ;;  %v265_v18 = vmul.f32 %v2402_v37, %v2511_v28  ;;  %v247_v19 = vmul.f32 %v2509_v26, %v2332_v14 }
  0x24   :  { %v276_v43 = vadd.f32 %v260_v38, %v243_v32  ;;  %v264_v20 = vmul.f32 %v2337_v15, %v2511_v28  ;;  %v269_v32 = vmul.f32 %v2437_v50, %v2511_v28  ;;  %v251_v38 = vmul.f32 %v2509_v26, %v2442_v51 }
  0x29   :  { %323 = vrot.lane.b32.xlu2 %v233_v44, %s2234_s29  ;;  %321 = vrot.lane.b32.xlu1 %v232_v45, %s2234_s29  ;;  %v275_v44 = vadd.f32 %v259_v40, %v242_v39  ;;  %v240_v45 = vadd.f32 %v224_v42, %v207_v41  ;;  %v268_v39 = vmul.f32 %v2447_v52, %v2511_v28 }
  0x2a   :  { %319 = vrot.lane.b32.xlu0 %v231_v47, %s2234_s29  ;;  %v246_v47 = vmul.f32 %v2509_v26, %v2286_v0  ;;  %v250_v40 = vmul.f32 %v2509_v26, %v2377_v31  ;;  %v267_v41 = vmul.f32 %v2382_v33, %v2511_v28 }
  0x2c   :  { %v279_v58 = vadd.f32 %v263_v53, %v246_v47  ;;  %v272_v47 = vmul.f32 %v2482_v9, %v2511_v28  ;;  %v254_v53 = vmul.f32 %v2509_v26, %v2487_v10 }
  0x31   :  { %329 = vrot.lane.b32.xlu2 %v236_v59, %s2234_s29  ;;  %327 = vrot.lane.b32.xlu1 %v235_v60, %s2234_s29  ;;  %v278_v59 = vadd.f32 %v262_v55, %v245_v54  ;;  %v277_v60 = vadd.f32 %v261_v57, %v244_v56  ;;  %v271_v54 = vmul.f32 %v2492_v11, %v2511_v28 }
  0x32   :  { %325 = vrot.lane.b32.xlu0 %v234_v62, %s2234_s29  ;;  %v249_v62 = vmul.f32 %v2509_v26, %v2387_v34  ;;  %v253_v55 = vmul.f32 %v2509_v26, %v2422_v46  ;;  %v270_v56 = vmul.f32 %v2427_v48, %v2511_v28 }
  0x34   :  { %v282_v23 = vadd.f32 %v266_v12, %v249_v62  ;;  %v2600_v62 = vstv %s1976_s22  ;;  %s2237_s22 = smov [#allocation11]  }
  0x35   :  { %4634 = vst [vmem:[#allocation34_spill] sm:$0xff] %v2600_v62 }
  0x39   :  { %335 = vrot.lane.b32.xlu2 %v239_v24, %s2234_s29  ;;  %333 = vrot.lane.b32.xlu1 %v238_v25, %s2234_s29  ;;  %v281_v24 = vadd.f32 %v265_v18, %v248_v13  ;;  %v280_v25 = vadd.f32 %v264_v20, %v247_v19  ;;  %v469_v13 = vmul.f32 %v2311_v5, %v2600_v62 }
  0x3a   :  { %331 = vrot.lane.b32.xlu0 %v237_v27, %s2234_s29  ;;  %v252_v27 = vmul.f32 %v2509_v26, %v2432_v49  ;;  %v257_v18 = vmul.f32 %v2509_v26, %v2516_v29  ;;  %v274_v19 = vmul.f32 %v2521_v30, %v2511_v28  ;;  %v256_v20 = vmul.f32 %v2509_v26, %v2467_v61 }
  0x3c   :  { %v285_v42 = vadd.f32 %v269_v32, %v252_v27 }
  0x41   :  { %389 = vrot.lane.b32.xlu2 %v276_v43, %s2234_s29  ;;  %387 = vrot.lane.b32.xlu1 %v275_v44, %s2234_s29  ;;  %v284_v43 = vadd.f32 %v268_v39, %v251_v38  ;;  %v283_v44 = vadd.f32 %v267_v41, %v250_v40  ;;  %v472_v38 = vmul.f32 %v2347_v17, %v2600_v62 }
  0x42   :  { %337 = vrot.lane.b32.xlu0 %v240_v45, %s2234_s29  ;;  %v255_v45 = vmul.f32 %v2509_v26, %v2477_v7  ;;  %v471_v40 = vmul.f32 %v2306_v4, %v2600_v62 }
  0x44   :  { %v288_v57 = vadd.f32 %v272_v47, %v255_v45 }
  0x49   :  { %395 = vrot.lane.b32.xlu2 %v279_v58, %s2234_s29  ;;  %393 = vrot.lane.b32.xlu1 %v278_v59, %s2234_s29  ;;  %v287_v58 = vadd.f32 %v271_v54, %v254_v53  ;;  %v2598_v59 = vstv %s1975_s21  ;;  %v475_v53 = vmul.f32 %v2402_v37, %v2600_v62  ;;  %s1918_s21 = sshll.u32 %s4549_s4, 4  ;;  %s1919_s21 = int_to_ptr.hbm [resolvable:$true] %s1918_s21 }
  0x4a   :  { %391 = vrot.lane.b32.xlu0 %v277_v60, %s2234_s29  ;;  %4633 = vst [vmem:[#allocation33_spill] sm:$0xff] %v2598_v59  ;;  %v286_v60 = vadd.f32 %v270_v56, %v253_v55  ;;  %v452_v12 = vmul.f32 %v2598_v59, %v2296_v2  ;;  %v455_v32 = vmul.f32 %v2598_v59, %v2342_v16 }
  0x4b   :  { %v454_v39 = vmul.f32 %v2598_v59, %v2291_v1  ;;  %v453_v41 = vmul.f32 %v2598_v59, %v2352_v21  ;;  %v458_v47 = vmul.f32 %v2598_v59, %v2397_v36  ;;  %v457_v54 = vmul.f32 %v2598_v59, %v2332_v14 }
  0x4c   :  { %v474_v55 = vmul.f32 %v2337_v15, %v2600_v62  ;;  %v456_v56 = vmul.f32 %v2598_v59, %v2286_v0 }
  0x51   :  { %401 = vrot.lane.b32.xlu2 %v282_v23, %s2234_s29  ;;  %399 = vrot.lane.b32.xlu1 %v281_v24, %s2234_s29  ;;  %v273_v23 = vmul.f32 %v2472_v63, %v2511_v28  ;;  %v485_v24 = vadd.f32 %v469_v13, %v452_v12  ;;  %v490_v12 = vadd.f32 %v474_v55, %v457_v54 }
  0x52   :  { %397 = vrot.lane.b32.xlu0 %v280_v25, %s2234_s29  ;;  %v290_v25 = vadd.f32 %v274_v19, %v257_v18  ;;  %v461_v18 = vmul.f32 %v2598_v59, %v2442_v51  ;;  %v478_v19 = vmul.f32 %v2447_v52, %v2600_v62 }
  0x53   :  { %v289_v27 = vadd.f32 %v273_v23, %v256_v20  ;;  %v460_v20 = vmul.f32 %v2598_v59, %v2377_v31  ;;  %v477_v23 = vmul.f32 %v2382_v33, %v2600_v62 }
  0x59   :  { %407 = vrot.lane.b32.xlu2 %v285_v42, %s2234_s29  ;;  %405 = vrot.lane.b32.xlu1 %v284_v43, %s2234_s29  ;;  %v470_v42 = vmul.f32 %v2357_v22, %v2600_v62  ;;  %v488_v43 = vadd.f32 %v472_v38, %v455_v32  ;;  %v494_v32 = vadd.f32 %v478_v19, %v461_v18 }
  0x5a   :  { %403 = vrot.lane.b32.xlu0 %v283_v44, %s2234_s29  ;;  %v487_v44 = vadd.f32 %v471_v40, %v454_v39  ;;  %v493_v38 = vadd.f32 %v477_v23, %v460_v20  ;;  %v464_v40 = vmul.f32 %v2598_v59, %v2487_v10  ;;  %v482_v18 = vmul.f32 %v2482_v9, %v2600_v62 }
  0x5b   :  { %v486_v45 = vadd.f32 %v470_v42, %v453_v41  ;;  %v481_v41 = vmul.f32 %v2492_v11, %v2600_v62  ;;  %v463_v42 = vmul.f32 %v2598_v59, %v2422_v46 }
  0x61   :  { %413 = vrot.lane.b32.xlu2 %v288_v57, %s2234_s29  ;;  %411 = vrot.lane.b32.xlu1 %v287_v58, %s2234_s29  ;;  %v473_v57 = vmul.f32 %v2301_v3, %v2600_v62 }
  0x62   :  { %409 = vrot.lane.b32.xlu0 %v286_v60, %s2234_s29  ;;  %v491_v60 = vadd.f32 %v475_v53, %v458_v47  ;;  %v497_v53 = vadd.f32 %v481_v41, %v464_v40 }
  0x63   :  { %v489_v13 = vadd.f32 %v473_v57, %v456_v56  ;;  %v467_v56 = vmul.f32 %v2598_v59, %v2516_v29  ;;  %v484_v57 = vmul.f32 %v2521_v30, %v2600_v62 }
  0x69   :  { %567 = vrot.lane.b32.xlu2 %v485_v24, %s2235_s23  ;;  %417 = vrot.lane.b32.xlu1 %v290_v25, %s2234_s29  ;;  %v459_v24 = vmul.f32 %v2598_v59, %v2387_v34  ;;  %v476_v25 = vmul.f32 %v2392_v35, %v2600_v62 }
  0x6a   :  { %415 = vrot.lane.b32.xlu0 %v289_v27, %s2234_s29 }
  0x6b   :  { %v492_v39 = vadd.f32 %v476_v25, %v459_v24  ;;  %v500_v24 = vadd.f32 %v484_v57, %v467_v56 }
  0x71   :  { %573 = vrot.lane.b32.xlu2 %v488_v43, %s2235_s23  ;;  %571 = vrot.lane.b32.xlu1 %v487_v44, %s2235_s23  ;;  %v480_v43 = vmul.f32 %v2427_v48, %v2600_v62  ;;  %v462_v44 = vmul.f32 %v2598_v59, %v2432_v49 }
  0x72   :  { %569 = vrot.lane.b32.xlu0 %v486_v45, %s2235_s23  ;;  %v479_v45 = vmul.f32 %v2437_v50, %v2600_v62 }
  0x73   :  { %v2647_v58 = vpop.permute.xlu2 %315  ;;  %v496_v54 = vadd.f32 %v480_v43, %v463_v42 }
  0x74   :  { %v495_v55 = vadd.f32 %v479_v45, %v462_v44 }
  0x79   :  { %579 = vrot.lane.b32.xlu2 %v491_v60, %s2235_s23  ;;  %577 = vrot.lane.b32.xlu1 %v490_v12, %s2235_s23  ;;  %v466_v60 = vmul.f32 %v2598_v59, %v2467_v61  ;;  %v483_v12 = vmul.f32 %v2472_v63, %v2600_v62 }
  0x7a   :  { %575 = vrot.lane.b32.xlu0 %v489_v13, %s2235_s23  ;;  %v465_v13 = vmul.f32 %v2598_v59, %v2477_v7 }
  0x7b   :  { %v2664_v27 = vpop.permute.xlu2 %317  ;;  %v499_v25 = vadd.f32 %v483_v12, %v466_v60 }
  0x81   :  { %585 = vrot.lane.b32.xlu2 %v494_v32, %s2235_s23  ;;  %583 = vrot.lane.b32.xlu1 %v493_v38, %s2235_s23  ;;  %v2704_v32 = vstv %s1980_s24  ;;  %v498_v38 = vadd.f32 %v482_v18, %v465_v13  ;;  %s4393_s24 = sshll.u32 %s2237_s22, 4  ;;  %s1904_s24 = int_to_ptr.vmem [resolvable:$true] %s4393_s24 }
  0x82   :  { %581 = vrot.lane.b32.xlu0 %v492_v39, %s2235_s23  ;;  %4636 = vst [vmem:[#allocation36_spill] sm:$0xff] %v2704_v32  ;;  %v2706_v39 = vstv %s1981_s25  ;;  %v504_v40 = vmul.f32 %v2704_v32, %v2291_v1  ;;  %v503_v42 = vmul.f32 %v2704_v32, %v2352_v21  ;;  %v502_v44 = vmul.f32 %v2704_v32, %v2296_v2 }
  0x83   :  { %v2681_v47 = vpop.permute.xlu2 %323  ;;  %4637 = vst [vmem:[#allocation37_spill] sm:$0xff] %v2706_v39  ;;  %v521_v41 = vmul.f32 %v2306_v4, %v2706_v39  ;;  %v520_v43 = vmul.f32 %v2357_v22, %v2706_v39  ;;  %v519_v45 = vmul.f32 %v2311_v5, %v2706_v39  ;;  %v507_v12 = vmul.f32 %v2704_v32, %v2332_v14 }
  0x84   :  { %v524_v13 = vmul.f32 %v2337_v15, %v2706_v39  ;;  %v506_v18 = vmul.f32 %v2704_v32, %v2286_v0  ;;  %v526_v62 = vmul.f32 %v2392_v35, %v2706_v39  ;;  %v513_v59 = vmul.f32 %v2704_v32, %v2422_v46 }
  0x85   :  { %v537_v56 = vadd.f32 %v521_v41, %v504_v40  ;;  %v536_v57 = vadd.f32 %v520_v43, %v503_v42  ;;  %v535_v60 = vadd.f32 %v519_v45, %v502_v44 }
  0x86   :  { %v540_v43 = vadd.f32 %v524_v13, %v507_v12  ;;  %v508_v12 = vmul.f32 %v2704_v32, %v2397_v36  ;;  %v525_v13 = vmul.f32 %v2402_v37, %v2706_v39 }
  0x89   :  { %591 = vrot.lane.b32.xlu2 %v497_v53, %s2235_s23  ;;  %589 = vrot.lane.b32.xlu1 %v496_v54, %s2235_s23 }
  0x8a   :  { %587 = vrot.lane.b32.xlu0 %v495_v55, %s2235_s23 }
  0x8b   :  { %v2698_v19 = vpop.permute.xlu2 %329  ;;  %v2700_v20 = vpop.permute.xlu1 %311 }
  0x8c   :  { %4635 = vst [vmem:[#allocation35_spill] sm:$0xff] %v2698_v19  ;;  %v2702_v23 = vpop.permute.xlu0 %307 }
  0x91   :  { %597 = vrot.lane.b32.xlu2 %v500_v24, %s2235_s23  ;;  %595 = vrot.lane.b32.xlu1 %v499_v25, %s2235_s23  ;;  %v523_v24 = vmul.f32 %v2301_v3, %v2706_v39  ;;  %v505_v25 = vmul.f32 %v2704_v32, %v2342_v16 }
  0x92   :  { %593 = vrot.lane.b32.xlu0 %v498_v38, %s2235_s23  ;;  %v522_v38 = vmul.f32 %v2347_v17, %v2706_v39 }
  0x93   :  { %v2723_v53 = vpop.permute.xlu2 %335  ;;  %v2725_v54 = vpop.permute.xlu1 %313  ;;  %v539_v44 = vadd.f32 %v523_v24, %v506_v18 }
  0x94   :  { %4638 = vst [vmem:[#allocation38_spill] sm:$0xff] %v2723_v53  ;;  %v2727_v55 = vpop.permute.xlu0 %309  ;;  %v538_v45 = vadd.f32 %v522_v38, %v505_v25  ;;  %v533_v53 = vmul.f32 %v2472_v63, %v2706_v39 }
  0x99   :  { %651 = vrot.lane.b32.xlu2 %v537_v56, %s2235_s23  ;;  %649 = vrot.lane.b32.xlu1 %v536_v57, %s2235_s23  ;;  %v510_v56 = vmul.f32 %v2704_v32, %v2377_v31  ;;  %v527_v57 = vmul.f32 %v2382_v33, %v2706_v39 }
  0x9a   :  { %647 = vrot.lane.b32.xlu0 %v535_v60, %s2235_s23  ;;  %v509_v60 = vmul.f32 %v2704_v32, %v2387_v34 }
  0x9b   :  { %v2744_v40 = vpop.permute.xlu2 %389  ;;  %v2746_v41 = vpop.permute.xlu1 %321  ;;  %v543_v38 = vadd.f32 %v527_v57, %v510_v56  ;;  %v528_v56 = vmul.f32 %v2447_v52, %v2706_v39 }
  0x9c   :  { %4639 = vst [vmem:[#allocation39_spill] sm:$0xff] %v2744_v40  ;;  %v2748_v42 = vpop.permute.xlu0 %319  ;;  %v529_v40 = vmul.f32 %v2437_v50, %v2706_v39 }
  0x9d   :  { %4640 = vst [vmem:[#allocation40_spill] sm:$0xff] %v2746_v41 }
  0xa1   :  { %657 = vrot.lane.b32.xlu2 %v540_v43, %s2235_s23  ;;  %655 = vrot.lane.b32.xlu1 %v539_v44, %s2235_s23  ;;  %v542_v43 = vadd.f32 %v526_v62, %v509_v60  ;;  %v541_v44 = vadd.f32 %v525_v13, %v508_v12  ;;  %v511_v62 = vmul.f32 %v2704_v32, %v2442_v51 }
  0xa2   :  { %653 = vrot.lane.b32.xlu0 %v538_v45, %s2235_s23  ;;  %v530_v45 = vmul.f32 %v2427_v48, %v2706_v39  ;;  %v2925_v48 = vld [vmem:[%s4547_s2 + $0xf8] sm:$0x3] }
  0xa3   :  { %v2765_v18 = vpop.permute.xlu2 %395  ;;  %v2767_v24 = vpop.permute.xlu1 %327  ;;  %4658 = vst [vmem:[#allocation58_spill] sm:$0xff] %v2925_v48 }
  0xa4   :  { %4641 = vst [vmem:[#allocation41_spill] sm:$0xff] %v2765_v18  ;;  %v2769_v25 = vpop.permute.xlu0 %325  ;;  %v512_v18 = vmul.f32 %v2704_v32, %v2432_v49  ;;  %v546_v13 = vadd.f32 %v530_v45, %v513_v59  ;;  %v532_v59 = vmul.f32 %v2482_v9, %v2706_v39  ;;  %v2821_v9 = vld [vmem:[%s4547_s2 + $0x38] sm:$0x3] }
  0xa5   :  { %4642 = vst [vmem:[#allocation42_spill] sm:$0xff] %v2767_v24 }
  0xa9   :  { %663 = vrot.lane.b32.xlu2 %v543_v38, %s2235_s23  ;;  %661 = vrot.lane.b32.xlu1 %v542_v43, %s2235_s23  ;;  %v545_v38 = vadd.f32 %v529_v40, %v512_v18  ;;  %v544_v43 = vadd.f32 %v528_v56, %v511_v62  ;;  %v514_v40 = vmul.f32 %v2704_v32, %v2487_v10 }
  0xaa   :  { %659 = vrot.lane.b32.xlu0 %v541_v44, %s2235_s23  ;;  %v516_v44 = vmul.f32 %v2704_v32, %v2467_v61  ;;  %v531_v18 = vmul.f32 %v2492_v11, %v2706_v39 }
  0xab   :  { %v2786_v57 = vpop.permute.xlu2 %401  ;;  %v2788_v60 = vpop.permute.xlu1 %333 }
  0xac   :  { %4643 = vst [vmem:[#allocation43_spill] sm:$0xff] %v2786_v57  ;;  %v2790_v12 = vpop.permute.xlu0 %331  ;;  %v515_v57 = vmul.f32 %v2704_v32, %v2477_v7 }
  0xad   :  { %4644 = vst [vmem:[#allocation44_spill] sm:$0xff] %v2788_v60  ;;  %v2816_v60 = vld [vmem:[%s4547_s2 + $0x28] sm:$0x3] }
  0xb1   :  { %669 = vrot.lane.b32.xlu2 %v546_v13, %s2235_s23  ;;  %667 = vrot.lane.b32.xlu1 %v545_v38, %s2235_s23  ;;  %v549_v13 = vadd.f32 %v533_v53, %v516_v44  ;;  %v548_v38 = vadd.f32 %v532_v59, %v515_v57  ;;  %v2831_v53 = vld [vmem:[%s4547_s2 + $0x30] sm:$0xff]  ;;  %v2833_v57 = vstv %s46_s26  ;;  %v842_v59 = vmul.f32 %v2816_v60, %v2313_v6  ;;  %s1905_s26 = sshll.u32 %s4548_s3, 4  ;;  %s2238_s3 = smov 128   ;;  %s1906_s26 = int_to_ptr.hbm [resolvable:$true] %s1905_s26 }
  0xb2   :  { %665 = vrot.lane.b32.xlu0 %v544_v43, %s2235_s23  ;;  %v547_v43 = vadd.f32 %v531_v18, %v514_v40  ;;  %4647 = vst [vmem:[#allocation47_spill] sm:$0xff] %v2831_v53  ;;  %v2835_v44 = vstv %s1972_s27  ;;  %v858_v40 = vmul.f32 %v2821_v9, %v2317_v8  ;;  %v92_v7 = vmul.f32 %v2833_v57, %v2296_v2  ;;  %v2865_v2 = vld [vmem:[%s4547_s2 + $0xa0] sm:$0xff]  ;;  %s2239_s27 = smov 8  }
  0xb3   :  { %v2807_v45 = vpop.permute.xlu2 %407  ;;  %v2809_v62 = vpop.permute.xlu1 %387  ;;  %4648 = vst [vmem:[#allocation48_spill] sm:$0xff] %v2833_v57  ;;  %v109_v24 = vmul.f32 %v2311_v5, %v2835_v44 }
  0xb4   :  { %4645 = vst [vmem:[#allocation45_spill] sm:$0xff] %v2807_v45  ;;  %v2811_v56 = vpop.permute.xlu0 %337  ;;  %v2826_v45 = vld [vmem:[%s4547_s2 + $0x20] sm:$0xff]  ;;  %v874_v50 = vadd.f32 %v858_v40, %v842_v59  ;;  %v95_v59 = vmul.f32 %v2833_v57, %v2342_v16  ;;  %v845_v40 = vmul.f32 %v2865_v2, %v2313_v6  ;;  %v112_v16 = vmul.f32 %v2347_v17, %v2835_v44  ;;  %v2919_v17 = vld [vmem:[%s4547_s2 + $0xe8] sm:$0x3] }
  0xb5   :  { %4646 = vst [vmem:[#allocation46_spill] sm:$0xff] %v2809_v62  ;;  %v841_v18 = vmul.f32 %v2826_v45, %v2313_v6  ;;  %v857_v62 = vmul.f32 %v2831_v53, %v2317_v8  ;;  %v125_v5 = vadd.f32 %v109_v24, %v92_v7  ;;  %v2885_v7 = vld [vmem:[%s4547_s2 + $0x60] sm:$0xff]  ;;  %v2890_v24 = vld [vmem:[%s4547_s2 + $0x70] sm:$0xff] }
  0xb6   :  { %4649 = vst [vmem:[#allocation49_spill] sm:$0xff] %v2835_v44 }
  0xb7   :  { %v873_v49 = vadd.f32 %v857_v62, %v841_v18  ;;  %4653 = vst [vmem:[#allocation53_spill] sm:$0xff] %v2865_v2  ;;  %v2880_v62 = vld [vmem:[%s4547_s2 + $0x78] sm:$0x3] }
  0xb8   :  { %4657 = vst [vmem:[#allocation57_spill] sm:$0xff] %v2919_v17 }
  0xb9   :  { %675 = vrot.lane.b32.xlu2 %v549_v13, %s2235_s23  ;;  %673 = vrot.lane.b32.xlu1 %v548_v38, %s2235_s23  ;;  %v517_v13 = vmul.f32 %v2704_v32, %v2516_v29  ;;  %v534_v38 = vmul.f32 %v2521_v30, %v2706_v39  ;;  %v2870_v32 = vld [vmem:[%s4547_s2 + $0xb0] sm:$0xff]  ;;  %v2875_v39 = vld [vmem:[%s4547_s2 + $0x68] sm:$0x3] }
  0xba   :  { %671 = vrot.lane.b32.xlu0 %v547_v43, %s2235_s23  ;;  %4654 = vst [vmem:[#allocation54_spill] sm:$0xff] %v2870_v32  ;;  %v861_v18 = vmul.f32 %v2870_v32, %v2317_v8 }
  0xbb   :  { %v2856_v63 = vpop.permute.xlu2 %413  ;;  %v2858_v19 = vpop.permute.xlu1 %393  ;;  %v550_v43 = vadd.f32 %v534_v38, %v517_v13  ;;  %v844_v13 = vmul.f32 %v2875_v39, %v2313_v6  ;;  %v860_v38 = vmul.f32 %v2880_v62, %v2317_v8 }
  0xbc   :  { %4650 = vst [vmem:[#allocation50_spill] sm:$0xff] %v2856_v63  ;;  %v2860_v61 = vpop.permute.xlu0 %391  ;;  %v355_v63 = vadd.f32 %v2702_v23, %v125_v5  ;;  %v128_v5 = vadd.f32 %v112_v16, %v95_v59  ;;  %v2945_v59 = vld [vmem:[%s4547_s2 + $0xb8] sm:$0x3] }
  0xbd   :  { %4651 = vst [vmem:[#allocation51_spill] sm:$0xff] %v2858_v19  ;;  %v876_v23 = vadd.f32 %v860_v38, %v844_v13  ;;  %v864_v13 = vmul.f32 %v2925_v48, %v2317_v8 }
  0xbe   :  { %4652 = vst [vmem:[#allocation52_spill] sm:$0xff] %v2860_v61  ;;  %v877_v61 = vadd.f32 %v861_v18, %v845_v40  ;;  %v98_v40 = vmul.f32 %v2833_v57, %v2397_v36  ;;  %v848_v18 = vmul.f32 %v2919_v17, %v2313_v6  ;;  %v115_v36 = vmul.f32 %v2402_v37, %v2835_v44  ;;  %v2974_v37 = vld [vmem:[%s4547_s2 + $0x160] sm:$0xff] }
  0xbf   :  { %4659 = vst [vmem:[#allocation59_spill] sm:$0xff] %v2945_v59 }
  0xc0   :  { %4662 = vst [vmem:[#allocation62_spill] sm:$0xff] %v2974_v37 }
  0xc1   :  { %955 = vrot.lane.b32.xlu2 %v874_v50, %s2234_s29  ;;  %953 = vrot.lane.b32.xlu1 %v873_v49, %s2234_s29  ;;  %v843_v50 = vmul.f32 %v2885_v7, %v2313_v6  ;;  %v859_v49 = vmul.f32 %v2890_v24, %v2317_v8 }
  0xc2   :  { %677 = vrot.lane.b32.xlu0 %v550_v43, %s2235_s23 }
  0xc3   :  { %v568_v19 = vpop.permute.xlu2 %567  ;;  %v2912_v41 = vpop.permute.xlu1 %399  ;;  %v875_v43 = vadd.f32 %v859_v49, %v843_v50  ;;  %v358_v50 = vadd.f32 %v2725_v54, %v128_v5  ;;  %v862_v49 = vmul.f32 %v2945_v59, %v2317_v8  ;;  %v2979_v5 = vld [vmem:[%s4547_s2 + $0x170] sm:$0xff] }
  0xc4   :  { %4655 = vst [vmem:[#allocation55_spill] sm:$0xff] %v2912_v41  ;;  %v615_v32 = vadd.f32 %v568_v19, %v355_v63  ;;  %v2914_v2 = vpop.permute.xlu0 %397  ;;  %v2930_v63 = vld [vmem:[%s4547_s2 + $0xe0] sm:$0xff]  ;;  %v2935_v19 = vld [vmem:[%s4547_s2 + $0xf0] sm:$0xff] }
  0xc5   :  { %4656 = vst [vmem:[#allocation56_spill] sm:$0xff] %v2914_v2  ;;  %v847_v38 = vmul.f32 %v2930_v63, %v2313_v6  ;;  %v863_v16 = vmul.f32 %v2935_v19, %v2317_v8  ;;  %v880_v2 = vadd.f32 %v864_v13, %v848_v18  ;;  %v2990_v18 = vld [vmem:[%s4547_s2 + $0x138] sm:$0x3]  ;;  %v2995_v13 = vld [vmem:[%s4547_s2 + $0x120] sm:$0xff] }
  0xc6   :  { %1354 = vst.msk [vmem:[#allocation2] sm:$0xff] %vm1353_vm0, %v615_v32  ;;  %v2940_v32 = vld [vmem:[%s4547_s2 + $0xa8] sm:$0x3] }
  0xc7   :  { %v879_v54 = vadd.f32 %v863_v16, %v847_v38  ;;  %4663 = vst [vmem:[#allocation63_spill] sm:$0xff] %v2979_v5  ;;  %v851_v38 = vmul.f32 %v2974_v37, %v2313_v6  ;;  %v867_v16 = vmul.f32 %v2979_v5, %v2317_v8 }
  0xc8   :  { %4664 = vst [vmem:[#allocation64_spill] sm:$0xff] %v2990_v18 }
  0xc9   :  { %961 = vrot.lane.b32.xlu2 %v877_v61, %s2234_s29  ;;  %959 = vrot.lane.b32.xlu1 %v876_v23, %s2234_s29  ;;  %v846_v61 = vmul.f32 %v2940_v32, %v2313_v6 }
  0xca   :  { %957 = vrot.lane.b32.xlu0 %v875_v43, %s2234_s29  ;;  %v131_v43 = vadd.f32 %v115_v36, %v98_v40  ;;  %v101_v40 = vmul.f32 %v2833_v57, %v2442_v51  ;;  %v118_v51 = vmul.f32 %v2447_v52, %v2835_v44  ;;  %v3029_v52 = vld [vmem:[%s4547_s2 + $0x1a8] sm:$0x3] }
  0xcb   :  { %v574_v23 = vpop.permute.xlu2 %573  ;;  %v2967_v41 = vpop.permute.xlu1 %405  ;;  %v878_v59 = vadd.f32 %v862_v49, %v846_v61  ;;  %v866_v61 = vmul.f32 %v2990_v18, %v2317_v8  ;;  %4668 = vst [vmem:[#allocation68_spill] sm:$0xff] %v3029_v52 }
  0xcc   :  { %4660 = vst [vmem:[#allocation60_spill] sm:$0xff] %v2967_v41  ;;  %v618_v48 = vadd.f32 %v574_v23, %v358_v50  ;;  %v2969_v17 = vpop.permute.xlu0 %403  ;;  %v2985_v50 = vld [vmem:[%s4547_s2 + $0x128] sm:$0x3]  ;;  %v361_v49 = vadd.f32 %v2748_v42, %v131_v43  ;;  %v134_v42 = vadd.f32 %v118_v51, %v101_v40  ;;  %v3035_v43 = vld [vmem:[%s4547_s2 + $0x1b8] sm:$0x3]  ;;  %v854_v51 = vmul.f32 %v3029_v52, %v2313_v6 }
  0xcd   :  { %4661 = vst [vmem:[#allocation61_spill] sm:$0xff] %v2969_v17  ;;  %v850_v36 = vmul.f32 %v2985_v50, %v2313_v6  ;;  %v883_v17 = vadd.f32 %v867_v16, %v851_v38  ;;  %v3045_v38 = vld [vmem:[%s4547_s2 + $0x1b0] sm:$0xff]  ;;  %v3055_v40 = vld [vmem:[%s4547_s2 + $0x178] sm:$0x3]  ;;  %v94_v16 = vmul.f32 %v2833_v57, %v2291_v1  ;;  %v110_v52 = vmul.f32 %v2357_v22, %v2835_v44 }
  0xce   :  { %1358 = vst.msk [vmem:[#allocation2 + $0x18] sm:$0x3] %vm1355_vm1, %v618_v48  ;;  %v3000_v48 = vld [vmem:[%s4547_s2 + $0x130] sm:$0xff]  ;;  %v3098_v22 = vld [vmem:[%s4547_s2 + $0x1f8] sm:$0x3] }
  0xcf   :  { %4665 = vst [vmem:[#allocation65_spill] sm:$0xff] %v3000_v48  ;;  %v865_v23 = vmul.f32 %v3000_v48, %v2317_v8  ;;  %v882_v18 = vadd.f32 %v866_v61, %v850_v36  ;;  %v111_v36 = vmul.f32 %v2306_v4, %v2835_v44  ;;  %v104_v61 = vmul.f32 %v2833_v57, %v2487_v10 }
  0xd0   :  { %4669 = vst [vmem:[#allocation69_spill] sm:$0xff] %v3035_v43  ;;  %v121_v10 = vmul.f32 %v2492_v11, %v2835_v44 }
  0xd1   :  { %967 = vrot.lane.b32.xlu2 %v880_v2, %s2234_s29  ;;  %965 = vrot.lane.b32.xlu1 %v879_v54, %s2234_s29  ;;  %v849_v2 = vmul.f32 %v2995_v13, %v2313_v6  ;;  %4671 = vst [vmem:[#allocation71_spill] sm:$0xff] %v3045_v38 }
  0xd2   :  { %963 = vrot.lane.b32.xlu0 %v878_v59, %s2234_s29  ;;  %v137_v48 = vadd.f32 %v121_v10, %v104_v61  ;;  %v114_v61 = vmul.f32 %v2337_v15, %v2835_v44  ;;  %v113_v10 = vmul.f32 %v2301_v3, %v2835_v44  ;;  %v100_v3 = vmul.f32 %v2833_v57, %v2377_v31 }
  0xd3   :  { %v580_v54 = vpop.permute.xlu2 %579  ;;  %v3022_v41 = vpop.permute.xlu1 %411  ;;  %v881_v59 = vadd.f32 %v865_v23, %v849_v2  ;;  %v870_v2 = vmul.f32 %v3035_v43, %v2317_v8  ;;  %v93_v43 = vmul.f32 %v2833_v57, %v2352_v21  ;;  %v3093_v21 = vld [vmem:[%s4547_s2 + $0x1e8] sm:$0x3]  ;;  %v908_v31 = vmul.f32 %v2880_v62, %v2511_v28 }
  0xd4   :  { %4666 = vst [vmem:[#allocation66_spill] sm:$0xff] %v3022_v41  ;;  %v621_v5 = vadd.f32 %v580_v54, %v361_v49  ;;  %v3024_v37 = vpop.permute.xlu0 %409  ;;  %v3040_v49 = vld [vmem:[%s4547_s2 + $0x1a0] sm:$0xff]  ;;  %v869_v54 = vmul.f32 %v3045_v38, %v2317_v8  ;;  %v364_v41 = vadd.f32 %v2769_v25, %v134_v42  ;;  %v127_v25 = vadd.f32 %v111_v36, %v94_v16  ;;  %v3112_v36 = vld [vmem:[%s4547_s2 + $0x1f0] sm:$0xff] }
  0xd5   :  { %4667 = vst [vmem:[#allocation67_spill] sm:$0xff] %v3024_v37  ;;  %v853_v23 = vmul.f32 %v3040_v49, %v2313_v6  ;;  %v3107_v16 = vld [vmem:[%s4547_s2 + $0x1e0] sm:$0xff]  ;;  %v856_v15 = vmul.f32 %v3093_v21, %v2313_v6 }
  0xd6   :  { %1361 = vst.msk [vmem:[#allocation2 + $0x30] sm:$0xff] %vm1353_vm0, %v621_v5  ;;  %v3050_v5 = vld [vmem:[%s4547_s2 + $0x168] sm:$0x3] }
  0xd7   :  { %4670 = vst [vmem:[#allocation70_spill] sm:$0xff] %v3040_v49  ;;  %v885_v49 = vadd.f32 %v869_v54, %v853_v23  ;;  %v855_v23 = vmul.f32 %v3107_v16, %v2313_v6  ;;  %v96_v54 = vmul.f32 %v2833_v57, %v2286_v0 }
  0xd8   :  { %4672 = vst [vmem:[#allocation72_spill] sm:$0xff] %v3050_v5 }
  0xd9   :  { %973 = vrot.lane.b32.xlu2 %v883_v17, %s2234_s29  ;;  %971 = vrot.lane.b32.xlu1 %v882_v18, %s2234_s29  ;;  %v852_v17 = vmul.f32 %v3050_v5, %v2313_v6  ;;  %v868_v18 = vmul.f32 %v3055_v40, %v2317_v8 }
  0xda   :  { %969 = vrot.lane.b32.xlu0 %v881_v59, %s2234_s29  ;;  %v886_v59 = vadd.f32 %v870_v2, %v854_v51  ;;  %v357_v51 = vadd.f32 %v2700_v20, %v127_v25  ;;  %v872_v20 = vmul.f32 %v3098_v22, %v2317_v8  ;;  %v124_v2 = vmul.f32 %v2521_v30, %v2835_v44 }
  0xdb   :  { %v586_v37 = vpop.permute.xlu2 %585  ;;  %v3085_v38 = vpop.permute.xlu1 %417  ;;  %v884_v5 = vadd.f32 %v868_v18, %v852_v17 }
  0xdc   :  { %4673 = vst [vmem:[#allocation73_spill] sm:$0xff] %v3085_v38  ;;  %v624_v42 = vadd.f32 %v586_v37, %v364_v41  ;;  %v3087_v11 = vpop.permute.xlu0 %415  ;;  %v97_v41 = vmul.f32 %v2833_v57, %v2332_v14  ;;  %v126_v37 = vadd.f32 %v110_v52, %v93_v43  ;;  %v107_v14 = vmul.f32 %v2833_v57, %v2516_v29 }
  0xdd   :  { %v889_v52 = vmul.f32 %v2826_v45, %v2509_v26  ;;  %v905_v43 = vmul.f32 %v2831_v53, %v2511_v28  ;;  %v367_v29 = vadd.f32 %v2790_v12, %v137_v48  ;;  %v888_v6 = vadd.f32 %v872_v20, %v856_v15 }
  0xde   :  { %1364 = vst.msk [vmem:[#allocation2 + $0x48] sm:$0x3] %vm1355_vm1, %v624_v42  ;;  %v356_v12 = vadd.f32 %v2727_v55, %v126_v37  ;;  %v130_v30 = vadd.f32 %v114_v61, %v97_v41  ;;  %v129_v38 = vadd.f32 %v113_v10, %v96_v54  ;;  %v3148_v53 = vstv %s3102_s15 }
  0xdf   :  { %v117_v41 = vmul.f32 %v2382_v33, %v2835_v44  ;;  %v144_v37 = vmul.f32 %v3148_v53, %v2291_v1  ;;  %v892_v61 = vmul.f32 %v2875_v39, %v2509_v26  ;;  %v891_v33 = vmul.f32 %v2885_v7, %v2509_v26 }
  0xe0   :  { %v360_v55 = vadd.f32 %v2664_v27, %v130_v30  ;;  %v907_v1 = vmul.f32 %v2890_v24, %v2511_v28  ;;  %v99_v15 = vmul.f32 %v2833_v57, %v2387_v34  ;;  %v116_v20 = vmul.f32 %v2392_v35, %v2835_v44  ;;  %v2040_v30 = vld [vmem:[%s4547_s2 + $0x88] sm:$0x3] }
  0xe1   :  { %979 = vrot.lane.b32.xlu2 %v886_v59, %s2234_s29  ;;  %977 = vrot.lane.b32.xlu1 %v885_v49, %s2234_s29  ;;  %v871_v49 = vmul.f32 %v3112_v36, %v2317_v8  ;;  %v921_v59 = vadd.f32 %v905_v43, %v889_v52  ;;  %v140_v8 = vadd.f32 %v124_v2, %v107_v14 }
  0xe2   :  { %975 = vrot.lane.b32.xlu0 %v884_v5, %s2234_s29  ;;  %v890_v52 = vmul.f32 %v2816_v60, %v2509_v26  ;;  %v359_v43 = vadd.f32 %v2647_v58, %v129_v38  ;;  %v924_v54 = vadd.f32 %v908_v31, %v892_v61  ;;  %v923_v10 = vadd.f32 %v907_v1, %v891_v33  ;;  %v4674_v38 = vld [vmem:[#allocation24_spill] sm:$0xff]  ;;  %v4678_v61 = vld [vmem:[#allocation54_spill] sm:$0xff] }
  0xe3   :  { %v592_v48 = vpop.permute.xlu2 %591  ;;  %v572_v17 = vpop.permute.xlu1 %571  ;;  %v887_v0 = vadd.f32 %v871_v49, %v855_v23  ;;  %v370_v27 = vadd.f32 %v2811_v56, %v140_v8  ;;  %v103_v58 = vmul.f32 %v2833_v57, %v2422_v46  ;;  %v132_v34 = vadd.f32 %v116_v20, %v99_v15  ;;  %v4679_v33 = vld [vmem:[#allocation40_spill] sm:$0xff] }
  0xe4   :  { %v627_v18 = vadd.f32 %v592_v48, %v367_v29  ;;  %v617_v5 = vadd.f32 %v572_v17, %v357_v51  ;;  %v570_v25 = vpop.permute.xlu0 %569  ;;  %v3160_v51 = vstv %s3121_s20  ;;  %v133_v29 = vadd.f32 %v117_v41, %v100_v3  ;;  %v2041_v3 = vld [vmem:[%s4547_s2 + $0x98] sm:$0x3] }
  0xe5   :  { %v616_v42 = vadd.f32 %v570_v25, %v356_v12  ;;  %v161_v14 = vmul.f32 %v2306_v4, %v3160_v51  ;;  %v120_v17 = vmul.f32 %v4674_v38, %v2835_v44  ;;  %v911_v46 = vmul.f32 %v2935_v19, %v2511_v28  ;;  %v4675_v25 = vld [vmem:[#allocation59_spill] sm:$0xff]  ;;  %v4677_v41 = vld [vmem:[#allocation53_spill] sm:$0xff] }
  0xe6   :  { %1367 = vst.msk [vmem:[#allocation2 + $0x60] sm:$0xff] %vm1353_vm0, %v627_v18  ;;  %v363_v35 = vadd.f32 %v2681_v47, %v133_v29  ;;  %v147_v18 = vmul.f32 %v2040_v30, %v3148_v53  ;;  %v894_v47 = vmul.f32 %v2940_v32, %v2509_v26  ;;  %v909_v31 = vmul.f32 %v4678_v61, %v2511_v28 }
  0xe7   :  { %1357 = vst.msk [vmem:[#allocation2 + $0x10] sm:$0xff] %vm1353_vm0, %v617_v5  ;;  %v177_v12 = vadd.f32 %v161_v14, %v144_v37  ;;  %v895_v5 = vmul.f32 %v2930_v63, %v2509_v26  ;;  %v893_v37 = vmul.f32 %v4677_v41, %v2509_v26  ;;  %v362_v1 = vadd.f32 %v4679_v33, %v132_v34  ;;  %v4683_v34 = vld [vmem:[#allocation35_spill] sm:$0xff] }
  0xe8   :  { %1356 = vst.msk [vmem:[#allocation2 + $0x8] sm:$0x3] %vm1355_vm1, %v616_v42  ;;  %v910_v42 = vmul.f32 %v4675_v25, %v2511_v28  ;;  %v136_v20 = vadd.f32 %v120_v17, %v103_v58  ;;  %v4684_v58 = vld [vmem:[#allocation28_spill] sm:$0xff] }
  0xe9   :  { %1033 = vrot.lane.b32.xlu2 %v921_v59, %s2234_s29  ;;  %983 = vrot.lane.b32.xlu1 %v888_v6, %s2234_s29  ;;  %v906_v6 = vmul.f32 %v2821_v9, %v2511_v28  ;;  %v4676_v59 = vld [vmem:[#allocation52_spill] sm:$0xff]  ;;  %v123_v17 = vmul.f32 %v4684_v58, %v2835_v44 }
  0xea   :  { %981 = vrot.lane.b32.xlu0 %v887_v0, %s2234_s29  ;;  %v437_v0 = vadd.f32 %v4676_v59, %v177_v12  ;;  %v366_v38 = vadd.f32 %v4683_v34, %v136_v20 }
  0xeb   :  { %v598_v8 = vpop.permute.xlu2 %597  ;;  %v578_v56 = vpop.permute.xlu1 %577  ;;  %v922_v48 = vadd.f32 %v906_v6, %v890_v52  ;;  %v4681_v52 = vld [vmem:[#allocation26_spill] sm:$0xff] }
  0xec   :  { %v630_v4 = vadd.f32 %v598_v8, %v370_v27  ;;  %v620_v2 = vadd.f32 %v578_v56, %v360_v55  ;;  %v576_v23 = vpop.permute.xlu0 %575  ;;  %v164_v55 = vmul.f32 %v2041_v3, %v3160_v51  ;;  %v4680_v27 = vld [vmem:[#allocation25_spill] sm:$0xff]  ;;  %v119_v6 = vmul.f32 %v4681_v52, %v2835_v44 }
  0xed   :  { %v619_v49 = vadd.f32 %v576_v23, %v359_v43  ;;  %v102_v14 = vmul.f32 %v2833_v57, %v4680_v27  ;;  %v926_v23 = vadd.f32 %v910_v42, %v894_v47  ;;  %v897_v47 = vmul.f32 %v2995_v13, %v2509_v26  ;;  %v4686_v42 = vld [vmem:[#allocation65_spill] sm:$0xff] }
  0xee   :  { %1370 = vst.msk [vmem:[#allocation2 + $0x78] sm:$0x3] %vm1355_vm1, %v630_v4  ;;  %v913_v59 = vmul.f32 %v4686_v42, %v2511_v28 }
  0xef   :  { %1360 = vst.msk [vmem:[#allocation2 + $0x28] sm:$0x3] %vm1355_vm1, %v620_v2  ;;  %v927_v2 = vadd.f32 %v911_v46, %v895_v5  ;;  %v4685_v5 = vld [vmem:[#allocation64_spill] sm:$0xff] }
  0xf0   :  { %1359 = vst.msk [vmem:[#allocation2 + $0x20] sm:$0xff] %vm1353_vm0, %v619_v49  ;;  %v180_v49 = vadd.f32 %v164_v55, %v147_v18  ;;  %v898_v18 = vmul.f32 %v2985_v50, %v2509_v26  ;;  %v914_v46 = vmul.f32 %v4685_v5, %v2511_v28  ;;  %v2043_v55 = vld [vmem:[%s4547_s2 + $0x110] sm:$0xff] }
  0xf1   :  { %1039 = vrot.lane.b32.xlu2 %v924_v54, %s2234_s29  ;;  %1037 = vrot.lane.b32.xlu1 %v923_v10, %s2234_s29  ;;  %v925_v54 = vadd.f32 %v909_v31, %v893_v37  ;;  %v4682_v10 = vld [vmem:[#allocation27_spill] sm:$0xff]  ;;  %v167_v37 = vmul.f32 %v2043_v55, %v3160_v51  ;;  %v4688_v31 = vld [vmem:[#allocation57_spill] sm:$0xff] }
  0xf2   :  { %1035 = vrot.lane.b32.xlu0 %v922_v48, %s2234_s29  ;;  %v106_v12 = vmul.f32 %v2833_v57, %v4682_v10  ;;  %v135_v48 = vadd.f32 %v119_v6, %v102_v14  ;;  %v896_v33 = vmul.f32 %v4688_v31, %v2509_v26  ;;  %v4690_v14 = vld [vmem:[#allocation42_spill] sm:$0xff]  ;;  %v4691_v6 = vld [vmem:[#allocation29_spill] sm:$0xff]  ;;  %v929_v10 = vadd.f32 %v913_v59, %v897_v47 }
  0xf3   :  { %v652_v43 = vpop.permute.xlu2 %651  ;;  %v584_v15 = vpop.permute.xlu1 %583  ;;  %v4694_v47 = vld [vmem:[#allocation70_spill] sm:$0xff] }
  0xf4   :  { %v697_v8 = vadd.f32 %v652_v43, %v437_v0  ;;  %v623_v56 = vadd.f32 %v584_v15, %v363_v35  ;;  %v582_v29 = vpop.permute.xlu0 %581  ;;  %v2042_v35 = vld [vmem:[%s4547_s2 + $0x100] sm:$0xff]  ;;  %v4687_v0 = vld [vmem:[#allocation56_spill] sm:$0xff]  ;;  %v365_v52 = vadd.f32 %v4690_v14, %v135_v48  ;;  %v105_v43 = vmul.f32 %v2833_v57, %v4691_v6  ;;  %v2044_v48 = vld [vmem:[%s4547_s2 + $0x8] sm:$0x3] }
  0xf5   :  { %v622_v4 = vadd.f32 %v582_v29, %v362_v1  ;;  %v150_v30 = vmul.f32 %v2042_v35, %v3148_v53  ;;  %v440_v3 = vadd.f32 %v4687_v0, %v180_v49  ;;  %v4689_v1 = vld [vmem:[#allocation58_spill] sm:$0xff]  ;;  %v139_v29 = vadd.f32 %v123_v17, %v106_v12  ;;  %v4697_v14 = vld [vmem:[#allocation61_spill] sm:$0xff] }
  0xf6   :  { %1389 = vst.msk [vmem:[#allocation4 + $0x10] sm:$0xff] %vm1353_vm0, %v697_v8  ;;  %v912_v27 = vmul.f32 %v4689_v1, %v2511_v28  ;;  %v4692_v15 = vld [vmem:[#allocation30_spill] sm:$0xff]  ;;  %v143_v35 = vmul.f32 %v2044_v48, %v3148_v53  ;;  %v901_v59 = vmul.f32 %v4694_v47, %v2509_v26  ;;  %v2047_v6 = vld [vmem:[%s4547_s2 + $0x158] sm:$0x3] }
  0xf7   :  { %1363 = vst.msk [vmem:[#allocation2 + $0x40] sm:$0xff] %vm1353_vm0, %v623_v56  ;;  %v122_v20 = vmul.f32 %v4692_v15, %v2835_v44  ;;  %v183_v34 = vadd.f32 %v167_v37, %v150_v30  ;;  %v4693_v12 = vld [vmem:[#allocation38_spill] sm:$0xff]  ;;  %v4696_v37 = vld [vmem:[#allocation72_spill] sm:$0xff] }
  0xf8   :  { %1362 = vst.msk [vmem:[#allocation2 + $0x38] sm:$0x3] %vm1355_vm1, %v622_v4  ;;  %v928_v58 = vadd.f32 %v912_v27, %v896_v33  ;;  %v369_v17 = vadd.f32 %v4693_v12, %v139_v29  ;;  %v900_v33 = vmul.f32 %v4696_v37, %v2509_v26  ;;  %v916_v27 = vmul.f32 %v3055_v40, %v2511_v28  ;;  %v4698_v15 = vld [vmem:[#allocation62_spill] sm:$0xff]  ;;  %v4700_v29 = vld [vmem:[#allocation44_spill] sm:$0xff] }
  0xf9   :  { %1045 = vrot.lane.b32.xlu2 %v927_v2, %s2234_s29  ;;  %1043 = vrot.lane.b32.xlu1 %v926_v23, %s2234_s29  ;;  %v138_v0 = vadd.f32 %v122_v20, %v105_v43  ;;  %v170_v43 = vmul.f32 %v2047_v6, %v3160_v51  ;;  %v899_v20 = vmul.f32 %v4698_v15, %v2509_v26 }
  0xfa   :  { %1041 = vrot.lane.b32.xlu0 %v925_v54, %s2234_s29  ;;  %v930_v54 = vadd.f32 %v914_v46, %v898_v18  ;;  %v2046_v18 = vld [vmem:[%s4547_s2 + $0x148] sm:$0x3] }
  0xfb   :  { %v658_v8 = vpop.permute.xlu2 %657  ;;  %v590_v56 = vpop.permute.xlu1 %589  ;;  %v153_v46 = vmul.f32 %v2046_v18, %v3148_v53 }
  0xfc   :  { %v700_v4 = vadd.f32 %v658_v8, %v440_v3  ;;  %v626_v2 = vadd.f32 %v590_v56, %v366_v38  ;;  %v588_v23 = vpop.permute.xlu0 %587  ;;  %v2045_v38 = vld [vmem:[%s4547_s2 + $0x18] sm:$0x3]  ;;  %v4695_v3 = vld [vmem:[#allocation71_spill] sm:$0xff] }
  0xfd   :  { %v625_v49 = vadd.f32 %v588_v23, %v365_v52  ;;  %v160_v30 = vmul.f32 %v2045_v38, %v3160_v51  ;;  %v917_v55 = vmul.f32 %v4695_v3, %v2511_v28  ;;  %v443_v52 = vadd.f32 %v4697_v14, %v183_v34  ;;  %v4699_v8 = vld [vmem:[#allocation63_spill] sm:$0xff] }
  0xfe   :  { %1392 = vst.msk [vmem:[#allocation4 + $0x28] sm:$0x3] %vm1355_vm1, %v700_v4  ;;  %v915_v56 = vmul.f32 %v4699_v8, %v2511_v28  ;;  %v368_v4 = vadd.f32 %v4700_v29, %v138_v0  ;;  %v932_v14 = vadd.f32 %v916_v27, %v900_v33  ;;  %v186_v6 = vadd.f32 %v170_v43, %v153_v46 }
  0xff   :  { %1366 = vst.msk [vmem:[#allocation2 + $0x58] sm:$0x3] %vm1355_vm1, %v626_v2  ;;  %v2048_v2 = vld [vmem:[%s4547_s2] sm:$0xff]  ;;  %v933_v0 = vadd.f32 %v917_v55, %v901_v59  ;;  %v904_v33 = vmul.f32 %v3093_v21, %v2509_v26  ;;  %v920_v27 = vmul.f32 %v3098_v22, %v2511_v28  ;;  %v919_v43 = vmul.f32 %v3112_v36, %v2511_v28 }
 0x100   :  { %1365 = vst.msk [vmem:[#allocation2 + $0x50] sm:$0xff] %vm1353_vm0, %v625_v49  ;;  %v142_v23 = vmul.f32 %v2048_v2, %v3148_v53  ;;  %v2049_v49 = vld [vmem:[%s4547_s2 + $0x10] sm:$0xff]  ;;  %v931_v29 = vadd.f32 %v915_v56, %v899_v20  ;;  %v2050_v2 = vld [vmem:[%s4547_s2 + $0x80] sm:$0xff]  ;;  %v4702_v20 = vld [vmem:[#allocation67_spill] sm:$0xff] }
 0x101   :  { %1051 = vrot.lane.b32.xlu2 %v930_v54, %s2234_s29  ;;  %1049 = vrot.lane.b32.xlu1 %v929_v10, %s2234_s29  ;;  %v159_v54 = vmul.f32 %v2049_v49, %v3160_v51  ;;  %v146_v44 = vmul.f32 %v2050_v2, %v3148_v53  ;;  %v2052_v59 = vld [vmem:[%s4547_s2 + $0x1c0] sm:$0xff]  ;;  %v446_v56 = vadd.f32 %v4702_v20, %v186_v6 }
 0x102   :  { %1047 = vrot.lane.b32.xlu0 %v928_v58, %s2234_s29  ;;  %v176_v58 = vadd.f32 %v160_v30, %v143_v35  ;;  %v4701_v35 = vld [vmem:[#allocation39_spill] sm:$0xff]  ;;  %v156_v55 = vmul.f32 %v2052_v59, %v3148_v53  ;;  %v936_v20 = vadd.f32 %v920_v27, %v904_v33 }
 0x103   :  { %v664_v10 = vpop.permute.xlu2 %663  ;;  %v596_v34 = vpop.permute.xlu1 %595  ;;  %v175_v49 = vadd.f32 %v159_v54, %v142_v23  ;;  %v4703_v54 = vld [vmem:[#allocation68_spill] sm:$0xff] }
 0x104   :  { %v703_v48 = vadd.f32 %v664_v10, %v443_v52  ;;  %v629_v12 = vadd.f32 %v596_v34, %v369_v17  ;;  %v594_v38 = vpop.permute.xlu0 %593  ;;  %v436_v30 = vadd.f32 %v4701_v35, %v176_v58  ;;  %v2051_v17 = vld [vmem:[%s4547_s2 + $0x90] sm:$0xff]  ;;  %v903_v52 = vmul.f32 %v3107_v16, %v2509_v26  ;;  %v4704_v34 = vld [vmem:[#allocation69_spill] sm:$0xff] }
 0x105   :  { %v628_v18 = vadd.f32 %v594_v38, %v368_v4  ;;  %v163_v46 = vmul.f32 %v2051_v17, %v3160_v51  ;;  %v2053_v4 = vld [vmem:[%s4547_s2 + $0x1d0] sm:$0xff]  ;;  %v902_v10 = vmul.f32 %v4703_v54, %v2509_v26  ;;  %v918_v58 = vmul.f32 %v4704_v34, %v2511_v28  ;;  %v2054_v38 = vld [vmem:[%s4547_s2 + $0x48] sm:$0x3] }
 0x106   :  { %1395 = vst.msk [vmem:[#allocation4 + $0x40] sm:$0xff] %vm1353_vm0, %v703_v48  ;;  %v173_v23 = vmul.f32 %v2053_v4, %v3160_v51  ;;  %v4705_v48 = vld [vmem:[#allocation46_spill] sm:$0xff] }
 0x107   :  { %1369 = vst.msk [vmem:[#allocation2 + $0x70] sm:$0xff] %vm1353_vm0, %v629_v12  ;;  %v435_v12 = vadd.f32 %v4705_v48, %v175_v49  ;;  %v935_v49 = vadd.f32 %v919_v43, %v903_v52  ;;  %v179_v4 = vadd.f32 %v163_v46, %v146_v44  ;;  %v934_v28 = vadd.f32 %v918_v58, %v902_v10  ;;  %v4706_v44 = vld [vmem:[#allocation33_spill] sm:$0xff] }
 0x108   :  { %1368 = vst.msk [vmem:[#allocation2 + $0x68] sm:$0x3] %vm1355_vm1, %v628_v18  ;;  %v145_v18 = vmul.f32 %v2054_v38, %v3148_v53  ;;  %v189_v48 = vadd.f32 %v173_v23, %v156_v55  ;;  %v1099_v46 = vmul.f32 %v2885_v7, %v4706_v44  ;;  %v4707_v55 = vld [vmem:[#allocation34_spill] sm:$0xff]  ;;  %v1098_v52 = vmul.f32 %v2816_v60, %v4706_v44 }
 0x109   :  { %1057 = vrot.lane.b32.xlu2 %v933_v0, %s2234_s29  ;;  %1055 = vrot.lane.b32.xlu1 %v932_v14, %s2234_s29  ;;  %v2055_v0 = vld [vmem:[%s4547_s2 + $0x58] sm:$0x3]  ;;  %v1115_v27 = vmul.f32 %v2890_v24, %v4707_v55  ;;  %v1114_v43 = vmul.f32 %v2821_v9, %v4707_v55  ;;  %v1097_v58 = vmul.f32 %v2826_v45, %v4706_v44 }
 0x10a   :  { %1053 = vrot.lane.b32.xlu0 %v931_v29, %s2234_s29  ;;  %v162_v14 = vmul.f32 %v2055_v0, %v3160_v51  ;;  %v2056_v0 = vld [vmem:[%s4547_s2 + $0xc8] sm:$0x3]  ;;  %v449_v10 = vadd.f32 %v3087_v11, %v189_v48  ;;  %v2059_v11 = vld [vmem:[%s4547_s2 + $0xd0] sm:$0xff] }
 0x10b   :  { %v670_v6 = vpop.permute.xlu2 %669  ;;  %v650_v29 = vpop.permute.xlu1 %649  ;;  %v149_v26 = vmul.f32 %v2056_v0, %v3148_v53  ;;  %v1131_v48 = vadd.f32 %v1115_v27, %v1099_v46  ;;  %v1117_v46 = vmul.f32 %v4678_v61, %v4707_v55  ;;  %v4711_v27 = vld [vmem:[#allocation43_spill] sm:$0xff] }
 0x10c   :  { %v706_v2 = vadd.f32 %v670_v6, %v446_v56  ;;  %v696_v35 = vadd.f32 %v650_v29, %v436_v30  ;;  %v648_v17 = vpop.permute.xlu0 %647  ;;  %v178_v38 = vadd.f32 %v162_v14, %v145_v18  ;;  %v2057_v30 = vld [vmem:[%s4547_s2 + $0xd8] sm:$0x3]  ;;  %v4710_v14 = vld [vmem:[#allocation51_spill] sm:$0xff]  ;;  %v2058_v29 = vld [vmem:[%s4547_s2 + $0xc0] sm:$0xff] }
 0x10d   :  { %v695_v59 = vadd.f32 %v648_v17, %v435_v12  ;;  %v166_v33 = vmul.f32 %v2057_v30, %v3160_v51  ;;  %v4708_v56 = vld [vmem:[#allocation41_spill] sm:$0xff]  ;;  %v4709_v12 = vld [vmem:[#allocation47_spill] sm:$0xff] }
 0x10e   :  { %1398 = vst.msk [vmem:[#allocation4 + $0x58] sm:$0x3] %vm1355_vm1, %v706_v2  ;;  %v439_v23 = vadd.f32 %v4708_v56, %v179_v4  ;;  %v1113_v18 = vmul.f32 %v4709_v12, %v4707_v55  ;;  %v438_v6 = vadd.f32 %v4710_v14, %v178_v38  ;;  %v148_v2 = vmul.f32 %v2058_v29, %v3148_v53  ;;  %v2060_v14 = vld [vmem:[%s4547_s2 + $0x140] sm:$0xff] }
 0x10f   :  { %1388 = vst.msk [vmem:[#allocation4 + $0x8] sm:$0x3] %vm1355_vm1, %v696_v35  ;;  %v1130_v38 = vadd.f32 %v1114_v43, %v1098_v52  ;;  %v182_v0 = vadd.f32 %v166_v33, %v149_v26  ;;  %v152_v29 = vmul.f32 %v2060_v14, %v3148_v53  ;;  %v1118_v26 = vmul.f32 %v4675_v25, %v4707_v55  ;;  %v2061_v43 = vld [vmem:[%s4547_s2 + $0x150] sm:$0xff] }
 0x110   :  { %1387 = vst.msk [vmem:[#allocation4] sm:$0xff] %vm1353_vm0, %v695_v59  ;;  %v1129_v30 = vadd.f32 %v1113_v18, %v1097_v58  ;;  %v1101_v33 = vmul.f32 %v4677_v41, %v4706_v44  ;;  %v1100_v58 = vmul.f32 %v2875_v39, %v4706_v44  ;;  %v1116_v18 = vmul.f32 %v2880_v62, %v4707_v55 }
 0x111   :  { %1063 = vrot.lane.b32.xlu2 %v936_v20, %s2234_s29  ;;  %1061 = vrot.lane.b32.xlu1 %v935_v49, %s2234_s29  ;;  %v442_v52 = vadd.f32 %v4711_v27, %v182_v0  ;;  %v2064_v27 = vld [vmem:[%s4547_s2 + $0x188] sm:$0x3] }
 0x112   :  { %1059 = vrot.lane.b32.xlu0 %v934_v28, %s2234_s29  ;;  %v165_v28 = vmul.f32 %v2059_v11, %v3160_v51  ;;  %v2062_v11 = vld [vmem:[%s4547_s2 + $0x108] sm:$0x3]  ;;  %v1133_v0 = vadd.f32 %v1117_v46, %v1101_v33  ;;  %v4713_v33 = vld [vmem:[#allocation45_spill] sm:$0xff] }
 0x113   :  { %v676_v35 = vpop.permute.xlu2 %675  ;;  %v656_v17 = vpop.permute.xlu1 %655 }
 0x114   :  { %v709_v59 = vadd.f32 %v676_v35, %v449_v10  ;;  %v699_v20 = vadd.f32 %v656_v17, %v439_v23  ;;  %v654_v49 = vpop.permute.xlu0 %653  ;;  %v181_v56 = vadd.f32 %v165_v28, %v148_v2  ;;  %v1102_v23 = vmul.f32 %v2940_v32, %v4706_v44  ;;  %v2063_v35 = vld [vmem:[%s4547_s2 + $0x118] sm:$0x3] }
 0x115   :  { %v698_v4 = vadd.f32 %v654_v49, %v438_v6  ;;  %v169_v10 = vmul.f32 %v2061_v43, %v3160_v51  ;;  %v4712_v6 = vld [vmem:[#allocation55_spill] sm:$0xff]  ;;  %v151_v28 = vmul.f32 %v2062_v11, %v3148_v53  ;;  %v168_v17 = vmul.f32 %v2063_v35, %v3160_v51 }
 0x116   :  { %1401 = vst.msk [vmem:[#allocation4 + $0x70] sm:$0xff] %vm1353_vm0, %v709_v59  ;;  %v441_v2 = vadd.f32 %v4712_v6, %v181_v56  ;;  %v1132_v56 = vadd.f32 %v1116_v18, %v1100_v58  ;;  %v155_v43 = vmul.f32 %v2064_v27, %v3148_v53  ;;  %v1103_v18 = vmul.f32 %v2930_v63, %v4706_v44 }
 0x117   :  { %1391 = vst.msk [vmem:[#allocation4 + $0x20] sm:$0xff] %vm1353_vm0, %v699_v20  ;;  %v184_v14 = vadd.f32 %v168_v17, %v151_v28  ;;  %v1119_v6 = vmul.f32 %v2935_v19, %v4707_v55  ;;  %v2066_v28 = vld [vmem:[%s4547_s2 + $0x180] sm:$0xff]  ;;  %v2067_v17 = vld [vmem:[%s4547_s2 + $0x190] sm:$0xff] }
 0x118   :  { %1390 = vst.msk [vmem:[#allocation4 + $0x18] sm:$0x3] %vm1355_vm1, %v698_v4  ;;  %v154_v35 = vmul.f32 %v2066_v28, %v3148_v53  ;;  %v2069_v28 = vld [vmem:[%s4547_s2 + $0x1d8] sm:$0x3] }
 0x119   :  { %1213 = vrot.lane.b32.xlu2 %v1131_v48, %s2235_s23  ;;  %1211 = vrot.lane.b32.xlu1 %v1130_v38, %s2235_s23  ;;  %v1134_v38 = vadd.f32 %v1118_v26, %v1102_v23  ;;  %v1104_v23 = vmul.f32 %v4688_v31, %v4706_v44  ;;  %v1120_v26 = vmul.f32 %v4689_v1, %v4707_v55 }
 0x11a   :  { %1209 = vrot.lane.b32.xlu0 %v1129_v30, %s2235_s23  ;;  %v185_v30 = vadd.f32 %v169_v10, %v152_v29  ;;  %v1121_v29 = vmul.f32 %v4686_v42, %v4707_v55  ;;  %v2065_v10 = vld [vmem:[%s4547_s2 + $0x198] sm:$0x3]  ;;  %v1135_v27 = vadd.f32 %v1119_v6, %v1103_v18  ;;  %v4716_v18 = vld [vmem:[#allocation66_spill] sm:$0xff] }
 0x11b   :  { %v3420_v59 = vpop.permute.xlu2 %955  ;;  %v662_v20 = vpop.permute.xlu1 %661  ;;  %v172_v58 = vmul.f32 %v2065_v10, %v3160_v51  ;;  %v1108_v10 = vmul.f32 %v4696_v37, %v4706_v44 }
 0x11c   :  { %v702_v49 = vadd.f32 %v662_v20, %v442_v52  ;;  %v660_v4 = vpop.permute.xlu0 %659  ;;  %v1105_v52 = vmul.f32 %v2995_v13, %v4706_v44  ;;  %v445_v46 = vadd.f32 %v4713_v33, %v185_v30  ;;  %v171_v20 = vmul.f32 %v2067_v17, %v3160_v51 }
 0x11d   :  { %v701_v48 = vadd.f32 %v660_v4, %v441_v2  ;;  %v4714_v2 = vld [vmem:[#allocation60_spill] sm:$0xff] }
 0x11e   :  { %1394 = vst.msk [vmem:[#allocation4 + $0x38] sm:$0x3] %vm1355_vm1, %v702_v49  ;;  %v444_v11 = vadd.f32 %v4714_v2, %v184_v14  ;;  %v1137_v30 = vadd.f32 %v1121_v29, %v1105_v52  ;;  %v188_v14 = vadd.f32 %v172_v58, %v155_v43  ;;  %v187_v33 = vadd.f32 %v171_v20, %v154_v35  ;;  %v4715_v29 = vld [vmem:[#allocation50_spill] sm:$0xff]  ;;  %v2068_v2 = vld [vmem:[%s4547_s2 + $0x1c8] sm:$0x3] }
 0x11f   :  { %1393 = vst.msk [vmem:[#allocation4 + $0x30] sm:$0xff] %vm1353_vm0, %v701_v48  ;;  %v1107_v52 = vmul.f32 %v4698_v15, %v4706_v44  ;;  %v1123_v43 = vmul.f32 %v4699_v8, %v4707_v55  ;;  %v1122_v58 = vmul.f32 %v4685_v5, %v4707_v55  ;;  %v174_v35 = vmul.f32 %v2069_v28, %v3160_v51 }
 0x120   :  { %v447_v6 = vadd.f32 %v4716_v18, %v187_v33  ;;  %v1127_v33 = vmul.f32 %v3112_v36, %v4707_v55 }
 0x121   :  { %1219 = vrot.lane.b32.xlu2 %v1134_v38, %s2235_s23  ;;  %1217 = vrot.lane.b32.xlu1 %v1133_v0, %s2235_s23 }
 0x122   :  { %1215 = vrot.lane.b32.xlu0 %v1132_v56, %s2235_s23  ;;  %v1136_v56 = vadd.f32 %v1120_v26, %v1104_v23  ;;  %v448_v23 = vadd.f32 %v4715_v29, %v188_v14  ;;  %v1106_v26 = vmul.f32 %v2985_v50, %v4706_v44  ;;  %v4717_v29 = vld [vmem:[#allocation73_spill] sm:$0xff] }
 0x123   :  { %v3457_v49 = vpop.permute.xlu2 %961  ;;  %v668_v4 = vpop.permute.xlu1 %667 }
 0x124   :  { %v705_v48 = vadd.f32 %v668_v4, %v445_v46  ;;  %v666_v38 = vpop.permute.xlu0 %665  ;;  %v1124_v46 = vmul.f32 %v3055_v40, %v4707_v55 }
 0x125   :  { %v704_v0 = vadd.f32 %v666_v38, %v444_v11  ;;  %v157_v11 = vmul.f32 %v2068_v2, %v3148_v53 }
 0x126   :  { %1397 = vst.msk [vmem:[#allocation4 + $0x50] sm:$0xff] %vm1353_vm0, %v705_v48 }
 0x127   :  { %1396 = vst.msk [vmem:[#allocation4 + $0x48] sm:$0x3] %vm1355_vm1, %v704_v0  ;;  %v1140_v0 = vadd.f32 %v1124_v46, %v1108_v10  ;;  %v190_v14 = vadd.f32 %v174_v35, %v157_v11  ;;  %v1110_v10 = vmul.f32 %v4703_v54, %v4706_v44  ;;  %v1126_v46 = vmul.f32 %v4704_v34, %v4707_v55  ;;  %v4718_v35 = vld [vmem:[#allocation36_spill] sm:$0xff] }
 0x129   :  { %1225 = vrot.lane.b32.xlu2 %v1137_v30, %s2235_s23  ;;  %1223 = vrot.lane.b32.xlu1 %v1136_v56, %s2235_s23  ;;  %v1139_v30 = vadd.f32 %v1123_v43, %v1107_v52  ;;  %v1138_v56 = vadd.f32 %v1122_v58, %v1106_v26  ;;  %v1109_v52 = vmul.f32 %v4694_v47, %v4706_v44 }
 0x12a   :  { %1221 = vrot.lane.b32.xlu0 %v1135_v27, %s2235_s23  ;;  %v1111_v27 = vmul.f32 %v3107_v16, %v4706_v44  ;;  %v1125_v43 = vmul.f32 %v4695_v3, %v4707_v55  ;;  %v1142_v11 = vadd.f32 %v1126_v46, %v1110_v10  ;;  %v1148_v46 = vmul.f32 %v2875_v39, %v4718_v35 }
 0x12b   :  { %v3486_v17 = vpop.permute.xlu2 %967  ;;  %v674_v20 = vpop.permute.xlu1 %673 }
 0x12c   :  { %v708_v4 = vadd.f32 %v674_v20, %v448_v23  ;;  %v672_v48 = vpop.permute.xlu0 %671  ;;  %v450_v23 = vadd.f32 %v4717_v29, %v190_v14  ;;  %v1143_v2 = vadd.f32 %v1127_v33, %v1111_v27  ;;  %v1141_v28 = vadd.f32 %v1125_v43, %v1109_v52 }
 0x12d   :  { %v707_v38 = vadd.f32 %v672_v48, %v447_v6  ;;  %v1146_v20 = vmul.f32 %v2816_v60, %v4718_v35  ;;  %v1128_v60 = vmul.f32 %v3098_v22, %v4707_v55  ;;  %v1147_v43 = vmul.f32 %v2885_v7, %v4718_v35 }
 0x12e   :  { %1400 = vst.msk [vmem:[#allocation4 + $0x68] sm:$0x3] %vm1355_vm1, %v708_v4  ;;  %v4719_v4 = vld [vmem:[#allocation37_spill] sm:$0xff] }
 0x12f   :  { %1399 = vst.msk [vmem:[#allocation4 + $0x60] sm:$0xff] %vm1353_vm0, %v707_v38  ;;  %v1162_v48 = vmul.f32 %v2821_v9, %v4719_v4  ;;  %v1145_v38 = vmul.f32 %v2826_v45, %v4718_v35  ;;  %v1165_v10 = vmul.f32 %v4678_v61, %v4719_v4  ;;  %v1164_v52 = vmul.f32 %v2880_v62, %v4719_v4 }
 0x130   :  { %v1152_v62 = vmul.f32 %v4688_v31, %v4718_v35  ;;  %v1168_v7 = vmul.f32 %v4689_v1, %v4719_v4  ;;  %v1166_v31 = vmul.f32 %v4675_v25, %v4719_v4  ;;  %v1154_v25 = vmul.f32 %v2985_v50, %v4718_v35 }
 0x131   :  { %1231 = vrot.lane.b32.xlu2 %v1140_v0, %s2235_s23  ;;  %1229 = vrot.lane.b32.xlu1 %v1139_v30, %s2235_s23  ;;  %v1161_v0 = vmul.f32 %v4709_v12, %v4719_v4  ;;  %v1112_v30 = vmul.f32 %v3093_v21, %v4706_v44  ;;  %v1178_v9 = vadd.f32 %v1162_v48, %v1146_v20 }
 0x132   :  { %1227 = vrot.lane.b32.xlu0 %v1138_v56, %s2235_s23  ;;  %v1149_v12 = vmul.f32 %v4677_v41, %v4718_v35  ;;  %v1163_v41 = vmul.f32 %v2890_v24, %v4719_v4  ;;  %v1151_v24 = vmul.f32 %v2930_v63, %v4718_v35  ;;  %v1184_v1 = vadd.f32 %v1168_v7, %v1152_v62 }
 0x133   :  { %v3506_v26 = vpop.permute.xlu2 %973  ;;  %v3508_v58 = vpop.permute.xlu1 %953  ;;  %v1177_v33 = vadd.f32 %v1161_v0, %v1145_v38  ;;  %v1144_v45 = vadd.f32 %v1128_v60, %v1112_v30  ;;  %v1170_v0 = vmul.f32 %v4685_v5, %v4719_v4  ;;  %v1153_v30 = vmul.f32 %v2995_v13, %v4718_v35 }
 0x134   :  { %v678_v18 = vpop.permute.xlu0 %677  ;;  %v1181_v61 = vadd.f32 %v1165_v10, %v1149_v12  ;;  %v1179_v39 = vadd.f32 %v1163_v41, %v1147_v43  ;;  %v1158_v5 = vmul.f32 %v4703_v54, %v4718_v35  ;;  %v1174_v13 = vmul.f32 %v4704_v34, %v4719_v4 }
 0x135   :  { %v710_v6 = vadd.f32 %v678_v18, %v450_v23  ;;  %v1173_v12 = vmul.f32 %v4695_v3, %v4719_v4  ;;  %v1156_v10 = vmul.f32 %v4696_v37, %v4718_v35  ;;  %v1172_v54 = vmul.f32 %v3055_v40, %v4719_v4 }
 0x136   :  { %v1190_v34 = vadd.f32 %v1174_v13, %v1158_v5  ;;  %v1160_v3 = vmul.f32 %v3093_v21, %v4718_v35  ;;  %v1176_v37 = vmul.f32 %v3098_v22, %v4719_v4  ;;  %v1159_v40 = vmul.f32 %v3107_v16, %v4718_v35  ;;  %v1419_v21 = vld [vmem:[#allocation2] sm:$0xff]  ;;  %v1422_v22 = vld [vmem:[#allocation2 + $0x30] sm:$0xff] }
 0x137   :  { %1402 = vst.msk [vmem:[#allocation4 + $0x78] sm:$0x3] %vm1355_vm1, %v710_v6  ;;  %v1180_v6 = vadd.f32 %v1164_v52, %v1148_v46 }
 0x138   :  { %v1192_v7 = vadd.f32 %v1176_v37, %v1160_v3  ;;  %v4742_v3 = vld [vmem:[#allocation31_spill] sm:$0xff] }
 0x139   :  { %1237 = vrot.lane.b32.xlu2 %v1143_v2, %s2235_s23  ;;  %1235 = vrot.lane.b32.xlu1 %v1142_v11, %s2235_s23  ;;  %v1167_v2 = vmul.f32 %v2935_v19, %v4719_v4  ;;  %v1150_v11 = vmul.f32 %v2940_v32, %v4718_v35  ;;  %v1155_v19 = vmul.f32 %v4698_v15, %v4718_v35 }
 0x13a   :  { %1233 = vrot.lane.b32.xlu0 %v1141_v28, %s2235_s23  ;;  %v1171_v32 = vmul.f32 %v4699_v8, %v4719_v4  ;;  %v1169_v15 = vmul.f32 %v4686_v42, %v4719_v4  ;;  %v1157_v42 = vmul.f32 %v4694_v47, %v4718_v35  ;;  %v1188_v47 = vadd.f32 %v1172_v54, %v1156_v10 }
 0x13b   :  { %v3526_v56 = vpop.permute.xlu2 %979  ;;  %v3528_v14 = vpop.permute.xlu1 %959  ;;  %v1183_v38 = vadd.f32 %v1167_v2, %v1151_v24  ;;  %v1182_v63 = vadd.f32 %v1166_v31, %v1150_v11  ;;  %v3637_v2 = vld [vmem:[%s4547_s2 + $0x60] sm:$0xff]  ;;  %v4728_v11 = vld [vmem:[#allocation49_spill] sm:$0xff] }
 0x13c   :  { %v3530_v27 = vpop.permute.xlu0 %957  ;;  %v1187_v8 = vadd.f32 %v1171_v32, %v1155_v19  ;;  %v1185_v50 = vadd.f32 %v1169_v15, %v1153_v30  ;;  %v1189_v41 = vadd.f32 %v1173_v12, %v1157_v42  ;;  %v747_v16 = vmul.f32 %v3637_v2, %v2833_v57  ;;  %v1420_v19 = vld [vmem:[#allocation2 + $0x10] sm:$0xff]  ;;  %v1563_v42 = vld [vmem:[#allocation2 + $0x2] sm:$0xff] }
 0x13d   :  { %v1484_v32 = vld [vmem:[#allocation2 + $0x11] sm:$0xff]  ;;  %v3659_v30 = vmul.f32 %v1419_v21, %v3148_v53  ;;  %v3662_v15 = vmul.f32 %v1422_v22, %v2833_v57  ;;  %v1421_v12 = vld [vmem:[#allocation2 + $0x20] sm:$0xff]  ;;  %v3674_v54 = vmul.f32 %v1420_v19, %v2833_v57 }
 0x13e   :  { %v3683_v37 = vmul.f32 %v1484_v32, %v4742_v3 }
 0x13f   :  { %4733 = vst [vmem:[#allocation65_spill] sm:$0xff] %v3659_v30 }
 0x140   :  { %4734 = vst [vmem:[#allocation56_spill] sm:$0xff] %v3662_v15 }
 0x141   :  { %1291 = vrot.lane.b32.xlu2 %v1178_v9, %s2235_s23  ;;  %1289 = vrot.lane.b32.xlu1 %v1177_v33, %s2235_s23  ;;  %4738 = vst [vmem:[#allocation29_spill] sm:$0xff] %v3674_v54 }
 0x142   :  { %1239 = vrot.lane.b32.xlu0 %v1144_v45, %s2235_s23  ;;  %v1186_v45 = vadd.f32 %v1170_v0, %v1154_v25  ;;  %v3656_v0 = vmul.f32 %v1419_v21, %v2833_v57  ;;  %4743 = vst [vmem:[#allocation70_spill] sm:$0xff] %v3683_v37 }
 0x143   :  { %v3547_v29 = vpop.permute.xlu2 %1033  ;;  %v3549_v23 = vpop.permute.xlu1 %965 }
 0x144   :  { %v3551_v18 = vpop.permute.xlu0 %963  ;;  %4732 = vst [vmem:[#allocation64_spill] sm:$0xff] %v3656_v0 }
 0x149   :  { %1297 = vrot.lane.b32.xlu2 %v1181_v61, %s2235_s23  ;;  %1295 = vrot.lane.b32.xlu1 %v1180_v6, %s2235_s23  ;;  %v1175_v61 = vmul.f32 %v3112_v36, %v4719_v4  ;;  %v3644_v36 = vld [vmem:[%s4547_s2 + $0x70] sm:$0xff] }
 0x14a   :  { %1293 = vrot.lane.b32.xlu0 %v1179_v39, %s2235_s23  ;;  %v763_v31 = vmul.f32 %v3644_v36, %v4728_v11 }
 0x14b   :  { %v3568_v28 = vpop.permute.xlu2 %1039  ;;  %v3570_v20 = vpop.permute.xlu1 %971  ;;  %v1191_v24 = vadd.f32 %v1175_v61, %v1159_v40  ;;  %v1485_v40 = vld [vmem:[#allocation2 + $0x21] sm:$0xff] }
 0x14c   :  { %4720 = vst [vmem:[#allocation24_spill] sm:$0xff] %v3568_v28  ;;  %v3572_v48 = vpop.permute.xlu0 %969  ;;  %v779_v10 = vadd.f32 %v763_v31, %v747_v16  ;;  %v1644_v16 = vld [vmem:[#allocation4 + $0x10] sm:$0xff]  ;;  %v3698_v31 = vmul.f32 %v1563_v42, %v4706_v44 }
 0x14d   :  { %4721 = vst [vmem:[#allocation59_spill] sm:$0xff] %v3570_v20 }
 0x14e   :  { %4748 = vst [vmem:[#allocation63_spill] sm:$0xff] %v3698_v31 }
 0x151   :  { %1303 = vrot.lane.b32.xlu2 %v1184_v1, %s2235_s23  ;;  %1301 = vrot.lane.b32.xlu1 %v1183_v38, %s2235_s23  ;;  %v1425_v1 = vld [vmem:[#allocation2 + $0x60] sm:$0xff] }
 0x152   :  { %1299 = vrot.lane.b32.xlu0 %v1182_v63, %s2235_s23  ;;  %v3668_v5 = vmul.f32 %v1425_v1, %v2833_v57  ;;  %v3671_v13 = vmul.f32 %v1425_v1, %v3148_v53  ;;  %v3701_v1 = vmul.f32 %v1563_v42, %v4718_v35 }
 0x153   :  { %v3589_v60 = vpop.permute.xlu2 %1045  ;;  %v3591_v9 = vpop.permute.xlu1 %977 }
 0x154   :  { %4722 = vst [vmem:[#allocation52_spill] sm:$0xff] %v3589_v60  ;;  %v3593_v33 = vpop.permute.xlu0 %975  ;;  %v3728_v60 = vmul.f32 %v1485_v40, %v4742_v3 }
 0x155   :  { %4723 = vst [vmem:[#allocation53_spill] sm:$0xff] %v3591_v9  ;;  %v1424_v9 = vld [vmem:[#allocation2 + $0x50] sm:$0xff] }
 0x156   :  { %4736 = vst [vmem:[#allocation58_spill] sm:$0xff] %v3668_v5 }
 0x157   :  { %4737 = vst [vmem:[#allocation42_spill] sm:$0xff] %v3671_v13  ;;  %v1567_v13 = vld [vmem:[#allocation2 + $0x42] sm:$0xff] }
 0x158   :  { %4749 = vst [vmem:[#allocation44_spill] sm:$0xff] %v3701_v1  ;;  %v3773_v37 = vmul.f32 %v1567_v13, %v4706_v44 }
 0x159   :  { %1309 = vrot.lane.b32.xlu2 %v1187_v8, %s2235_s23  ;;  %1307 = vrot.lane.b32.xlu1 %v1186_v45, %s2235_s23  ;;  %v1564_v8 = vld [vmem:[#allocation2 + $0x12] sm:$0xff]  ;;  %v1483_v45 = vld [vmem:[#allocation2 + $0x1] sm:$0xff]  ;;  %4755 = vst [vmem:[#allocation33_spill] sm:$0xff] %v3728_v60 }
 0x15a   :  { %1305 = vrot.lane.b32.xlu0 %v1185_v50, %s2235_s23  ;;  %v3665_v50 = vmul.f32 %v1422_v22, %v3148_v53  ;;  %v3686_v61 = vmul.f32 %v1564_v8, %v4706_v44  ;;  %v3695_v21 = vmul.f32 %v1483_v45, %v4742_v3  ;;  %v1565_v22 = vld [vmem:[#allocation2 + $0x22] sm:$0xff]  ;;  %4766 = vst [vmem:[#allocation73_spill] sm:$0xff] %v3773_v37 }
 0x15b   :  { %v3610_v46 = vpop.permute.xlu2 %1051  ;;  %v3612_v52 = vpop.permute.xlu1 %983  ;;  %v3791_v37 = vmul.f32 %v1567_v13, %v4718_v35 }
 0x15c   :  { %4724 = vst [vmem:[#allocation54_spill] sm:$0xff] %v3610_v46  ;;  %v3614_v43 = vpop.permute.xlu0 %981  ;;  %v3716_v46 = vld [vmem:[%s4547_s2 + $0xa8] sm:$0x3] }
 0x15d   :  { %4725 = vst [vmem:[#allocation40_spill] sm:$0xff] %v3612_v52  ;;  %v750_v42 = vmul.f32 %v3716_v46, %v2833_v57  ;;  %v1566_v52 = vld [vmem:[#allocation2 + $0x32] sm:$0xff] }
 0x15e   :  { %4735 = vst [vmem:[#allocation57_spill] sm:$0xff] %v3665_v50 }
 0x15f   :  { %4744 = vst [vmem:[#allocation71_spill] sm:$0xff] %v3686_v61 }
 0x160   :  { %4747 = vst [vmem:[#allocation62_spill] sm:$0xff] %v3695_v21 }
 0x161   :  { %1315 = vrot.lane.b32.xlu2 %v1190_v34, %s2235_s23  ;;  %1313 = vrot.lane.b32.xlu1 %v1189_v41, %s2235_s23  ;;  %v3677_v34 = vmul.f32 %v1420_v19, %v3148_v53  ;;  %v4740_v41 = vld [vmem:[#allocation22_spill] sm:$0xff]  ;;  %v3704_v19 = vmul.f32 %v1421_v12, %v2833_v57  ;;  %4753 = vst [vmem:[#allocation69_spill] sm:$0xff] %v3716_v46 }
 0x162   :  { %1311 = vrot.lane.b32.xlu0 %v1188_v47, %s2235_s23  ;;  %v3680_v47 = vmul.f32 %v1484_v32, %v4740_v41  ;;  %v3707_v32 = vmul.f32 %v1421_v12, %v3148_v53  ;;  %v3723_v12 = vld [vmem:[%s4547_s2 + $0xb8] sm:$0x3]  ;;  %v3742_v46 = vmul.f32 %v1644_v16, %v3148_v53  ;;  %4767 = vst [vmem:[#allocation37_spill] sm:$0xff] %v3791_v37  ;;  %v1647_v37 = vld [vmem:[#allocation4 + $0x40] sm:$0xff] }
 0x163   :  { %v3627_v6 = vpop.permute.xlu2 %1057  ;;  %v3629_v39 = vpop.permute.xlu1 %1037  ;;  %4739 = vst [vmem:[#allocation30_spill] sm:$0xff] %v3677_v34  ;;  %v3876_v60 = vmul.f32 %v1647_v37, %v3148_v53 }
 0x164   :  { %4726 = vst [vmem:[#allocation25_spill] sm:$0xff] %v3627_v6  ;;  %v3631_v62 = vpop.permute.xlu0 %1035  ;;  %v1003_v6 = vadd.f32 %v3530_v27, %v779_v10  ;;  %v3731_v27 = vmul.f32 %v1565_v22, %v4706_v44  ;;  %v3734_v10 = vmul.f32 %v1565_v22, %v4718_v35 }
 0x165   :  { %4727 = vst [vmem:[#allocation26_spill] sm:$0xff] %v3629_v39  ;;  %v3737_v39 = vmul.f32 %v1644_v16, %v2833_v57 }
 0x166   :  { %4741 = vst [vmem:[#allocation38_spill] sm:$0xff] %v3680_v47  ;;  %v1488_v47 = vld [vmem:[#allocation2 + $0x51] sm:$0xff] }
 0x167   :  { %4750 = vst [vmem:[#allocation39_spill] sm:$0xff] %v3704_v19 }
 0x168   :  { %4751 = vst [vmem:[#allocation67_spill] sm:$0xff] %v3707_v32  ;;  %v1569_v32 = vld [vmem:[#allocation2 + $0x62] sm:$0xff] }
 0x169   :  { %1319 = vrot.lane.b32.xlu1 %v1192_v7, %s2235_s23  ;;  %v3689_v7 = vmul.f32 %v1564_v8, %v4718_v35  ;;  %v3710_v8 = vmul.f32 %v1485_v40, %v4740_v41  ;;  %4754 = vst [vmem:[#allocation46_spill] sm:$0xff] %v3723_v12  ;;  %v3747_v40 = vld [vmem:[%s4547_s2 + $0x28] sm:$0x3] }
 0x16a   :  { %1317 = vrot.lane.b32.xlu0 %v1191_v24, %s2235_s23  ;;  %v3692_v24 = vmul.f32 %v1483_v45, %v4740_v41  ;;  %v1487_v45 = vld [vmem:[#allocation2 + $0x41] sm:$0xff]  ;;  %4756 = vst [vmem:[#allocation34_spill] sm:$0xff] %v3731_v27  ;;  %v746_v22 = vmul.f32 %v3747_v40, %v2833_v57  ;;  %v3806_v27 = vmul.f32 %v1424_v9, %v2833_v57  ;;  %s1944_s23 = sshll.u32 %s4551_s6, 4  ;;  %s1945_s23 = int_to_ptr.hbm [resolvable:$true] %s1944_s23 }
 0x16b   :  { %v3649_v38 = vpop.permute.xlu2 %1063  ;;  %v3651_v63 = vpop.permute.xlu1 %1043  ;;  %4745 = vst [vmem:[#allocation72_spill] sm:$0xff] %v3689_v7  ;;  %v3767_v7 = vmul.f32 %v1487_v45, %v4740_v41  ;;  %v3770_v61 = vmul.f32 %v1487_v45, %v4742_v3 }
 0x16c   :  { %4729 = vst [vmem:[#allocation27_spill] sm:$0xff] %v3649_v38  ;;  %v3653_v25 = vpop.permute.xlu0 %1041  ;;  %v1423_v38 = vld [vmem:[#allocation2 + $0x40] sm:$0xff] }
 0x16d   :  { %4730 = vst [vmem:[#allocation35_spill] sm:$0xff] %v3651_v63  ;;  %v766_v63 = vmul.f32 %v3723_v12, %v4728_v11  ;;  %v1486_v12 = vld [vmem:[#allocation2 + $0x31] sm:$0xff]  ;;  %v3761_v50 = vmul.f32 %v1423_v38, %v2833_v57  ;;  %v3764_v15 = vmul.f32 %v1423_v38, %v3148_v53 }
 0x16e   :  { %4731 = vst [vmem:[#allocation28_spill] sm:$0xff] %v3653_v25 }
 0x16f   :  { %4746 = vst [vmem:[#allocation61_spill] sm:$0xff] %v3692_v24 }
 0x170   :  { %4752 = vst [vmem:[#allocation68_spill] sm:$0xff] %v3710_v8 }
 0x171   :  { %4757 = vst [vmem:[#allocation41_spill] sm:$0xff] %v3734_v10  ;;  %v3803_v10 = vmul.f32 %v1566_v52, %v4718_v35 }
 0x172   :  { %4758 = vst [vmem:[#allocation47_spill] sm:$0xff] %v3737_v39  ;;  %v3754_v39 = vld [vmem:[%s4547_s2 + $0x38] sm:$0x3] }
 0x173   :  { %v1214_v5 = vpop.permute.xlu2 %1213  ;;  %v3739_v28 = vpop.permute.xlu1 %1049  ;;  %4760 = vst [vmem:[#allocation43_spill] sm:$0xff] %v3742_v46 }
 0x174   :  { %4759 = vst [vmem:[#allocation51_spill] sm:$0xff] %v3739_v28  ;;  %v762_v28 = vmul.f32 %v3754_v39, %v4728_v11  ;;  %v1259_v16 = vadd.f32 %v1214_v5, %v1003_v6  ;;  %v3758_v46 = vpop.permute.xlu0 %1047  ;;  %v1568_v6 = vld [vmem:[#allocation2 + $0x52] sm:$0xff]  ;;  %v3778_v5 = vld [vmem:[%s4547_s2 + $0xa0] sm:$0xff] }
 0x175   :  { %4761 = vst [vmem:[#allocation55_spill] sm:$0xff] %v3758_v46  ;;  %v749_v38 = vmul.f32 %v3778_v5, %v2833_v57  ;;  %v3800_v46 = vmul.f32 %v1566_v52, %v4706_v44  ;;  %v3823_v52 = vmul.f32 %v1568_v6, %v4718_v35 }
 0x176   :  { %4762 = vst [vmem:[#allocation45_spill] sm:$0xff] %v3761_v50  ;;  %v3797_v50 = vmul.f32 %v1486_v12, %v4742_v3  ;;  %v3811_v13 = vadd.f32 %v762_v28, %v746_v22  ;;  %v3831_v22 = vld [vmem:[%s4547_s2 + $0x120] sm:$0xff] }
 0x177   :  { %4763 = vst [vmem:[#allocation60_spill] sm:$0xff] %v3764_v15  ;;  %v3794_v15 = vmul.f32 %v1486_v12, %v4740_v41  ;;  %v3817_v12 = vmul.f32 %v1488_v47, %v4742_v3 }
 0x178   :  { %4764 = vst [vmem:[#allocation50_spill] sm:$0xff] %v3767_v7  ;;  %v3785_v7 = vld [vmem:[%s4547_s2 + $0xb0] sm:$0xff] }
 0x179   :  { %4765 = vst [vmem:[#allocation66_spill] sm:$0xff] %v3770_v61  ;;  %v765_v45 = vmul.f32 %v3785_v7, %v4728_v11  ;;  %v782_v61 = vadd.f32 %v766_v63, %v750_v42  ;;  %v3809_v63 = vmul.f32 %v1424_v9, %v3148_v53  ;;  %v3814_v42 = vmul.f32 %v1488_v47, %v4740_v41 }
 0x17a   :  { %1373 = vst.msk [vmem:[#allocation3 + $0x10] sm:$0xff] %vm1353_vm0, %v1259_v16  ;;  %v3820_v16 = vmul.f32 %v1568_v6, %v4706_v44  ;;  %v753_v47 = vmul.f32 %v3831_v22, %v2833_v57  ;;  %v3838_v6 = vld [vmem:[%s4547_s2 + $0x130] sm:$0xff] }
 0x17b   :  { %4768 = vst [vmem:[#allocation49_spill] sm:$0xff] %v3794_v15  ;;  %v3825_v9 = vadd.f32 %v765_v45, %v749_v38  ;;  %v1006_v28 = vadd.f32 %v3551_v18, %v782_v61  ;;  %v1489_v38 = vld [vmem:[#allocation2 + $0x61] sm:$0xff]  ;;  %v3852_v45 = vld [vmem:[%s4547_s2 + $0xf8] sm:$0x3]  ;;  %v3873_v15 = vmul.f32 %v1647_v37, %v2833_v57 }
 0x17c   :  { %4769 = vst [vmem:[#allocation22_spill] sm:$0xff] %v3797_v50  ;;  %v3845_v18 = vld [vmem:[%s4547_s2 + $0xe8] sm:$0x3]  ;;  %v3870_v50 = vpop.permute.xlu1 %1055  ;;  %v3881_v34 = vpop.permute.xlu0 %1053  ;;  %v1643_v37 = vld [vmem:[#allocation4] sm:$0xff] }
 0x17d   :  { %4770 = vst [vmem:[#allocation31_spill] sm:$0xff] %v3800_v46  ;;  %v1570_v46 = vld [vmem:[#allocation2 + $0x72] sm:$0xff]  ;;  %v752_v61 = vmul.f32 %v3845_v18, %v2833_v57 }
 0x17e   :  { %4771 = vst [vmem:[#allocation74_spill] sm:$0xff] %v3803_v10  ;;  %v1426_v10 = vld [vmem:[#allocation2 + $0x70] sm:$0xff] }
 0x17f   :  { %4772 = vst [vmem:[#allocation75_spill] sm:$0xff] %v3806_v27  ;;  %v1490_v27 = vld [vmem:[#allocation2 + $0x71] sm:$0xff]  ;;  %v3879_v8 = vmul.f32 %v1426_v10, %v2833_v57  ;;  %v3884_v54 = vmul.f32 %v1426_v10, %v3148_v53  ;;  %v1707_v10 = vld [vmem:[#allocation4 + $0x1] sm:$0xff] }
 0x180   :  { %4773 = vst [vmem:[#allocation76_spill] sm:$0xff] %v3809_v63  ;;  %v1220_v63 = vpop.permute.xlu2 %1219  ;;  %v3887_v25 = vmul.f32 %v1490_v27, %v4740_v41 }
 0x181   :  { %4774 = vst [vmem:[#allocation77_spill] sm:$0xff] %v3814_v42  ;;  %v1262_v19 = vadd.f32 %v1220_v63, %v1006_v28  ;;  %v3899_v63 = vmul.f32 %v1489_v38, %v4740_v41  ;;  %v3902_v28 = vmul.f32 %v1489_v38, %v4742_v3  ;;  %v3919_v38 = vmul.f32 %v1643_v37, %v3148_v53 }
 0x182   :  { %4775 = vst [vmem:[#allocation78_spill] sm:$0xff] %v3817_v12  ;;  %v3866_v12 = vld [vmem:[%s4547_s2 + $0x30] sm:$0xff] }
 0x183   :  { %4776 = vst [vmem:[#allocation79_spill] sm:$0xff] %v3820_v16  ;;  %v761_v42 = vmul.f32 %v3866_v12, %v4728_v11 }
 0x184   :  { %4777 = vst [vmem:[#allocation80_spill] sm:$0xff] %v3823_v52  ;;  %v769_v52 = vmul.f32 %v3838_v6, %v4728_v11  ;;  %v3996_v1 = vpop.permute.xlu0 %1059 }
 0x185   :  { %4778 = vst [vmem:[#allocation81_spill] sm:$0xff] %v3831_v22  ;;  %v768_v22 = vmul.f32 %v3852_v45, %v4728_v11 }
 0x186   :  { %4779 = vst [vmem:[#allocation82_spill] sm:$0xff] %v3838_v6  ;;  %v3859_v6 = vld [vmem:[%s4547_s2 + $0x20] sm:$0xff] }
 0x187   :  { %v745_v16 = vmul.f32 %v3859_v6, %v2833_v57  ;;  %4780 = vst [vmem:[#allocation83_spill] sm:$0xff] %v3870_v50  ;;  %v3890_v50 = vmul.f32 %v1490_v27, %v4742_v3  ;;  %v3906_v27 = vmul.f32 %v1569_v32, %v4706_v44 }
 0x188   :  { %4781 = vst [vmem:[#allocation84_spill] sm:$0xff] %v3873_v15  ;;  %v3893_v15 = vmul.f32 %v1570_v46, %v4706_v44 }
 0x189   :  { %4782 = vst [vmem:[#allocation85_spill] sm:$0xff] %v3876_v60  ;;  %v3896_v60 = vmul.f32 %v1570_v46, %v4718_v35  ;;  %v3913_v46 = vadd.f32 %v761_v42, %v745_v16  ;;  %v3936_v16 = vmul.f32 %v1707_v10, %v4740_v41 }
 0x18a   :  { %4783 = vst [vmem:[#allocation86_spill] sm:$0xff] %v3879_v8  ;;  %v785_v8 = vadd.f32 %v769_v52, %v753_v47 }
 0x18b   :  { %4784 = vst [vmem:[#allocation87_spill] sm:$0xff] %v3881_v34  ;;  %v3986_v34 = vpop.permute.xlu1 %1061 }
 0x18c   :  { %4785 = vst [vmem:[#allocation88_spill] sm:$0xff] %v3884_v54  ;;  %v1787_v54 = vld [vmem:[#allocation4 + $0x2] sm:$0xff] }
 0x18d   :  { %4786 = vst [vmem:[#allocation89_spill] sm:$0xff] %v3887_v25  ;;  %v3942_v47 = vmul.f32 %v1787_v54, %v4706_v44  ;;  %v1709_v25 = vld [vmem:[#allocation4 + $0x21] sm:$0xff] }
 0x18e   :  { %4787 = vst [vmem:[#allocation90_spill] sm:$0xff] %v3890_v50  ;;  %v3911_v50 = vadd.f32 %v768_v22, %v752_v61  ;;  %v3939_v22 = vmul.f32 %v1707_v10, %v4742_v3  ;;  %v3945_v61 = vmul.f32 %v1787_v54, %v4718_v35  ;;  %v3955_v10 = vld [vmem:[%s4547_s2 + $0x168] sm:$0x3]  ;;  %v4002_v31 = vmul.f32 %v1709_v25, %v4742_v3 }
 0x18f   :  { %4788 = vst [vmem:[#allocation91_spill] sm:$0xff] %v3893_v15  ;;  %v3909_v15 = vmul.f32 %v1569_v32, %v4718_v35  ;;  %v3931_v32 = vld [vmem:[%s4547_s2 + $0x170] sm:$0xff]  ;;  %v756_v54 = vmul.f32 %v3955_v10, %v2833_v57 }
 0x190   :  { %4789 = vst [vmem:[#allocation92_spill] sm:$0xff] %v3896_v60  ;;  %v3916_v60 = vmul.f32 %v1643_v37, %v2833_v57  ;;  %v771_v42 = vmul.f32 %v3931_v32, %v4728_v11  ;;  %v1645_v37 = vld [vmem:[#allocation4 + $0x20] sm:$0xff] }
 0x191   :  { %4790 = vst [vmem:[#allocation93_spill] sm:$0xff] %v3899_v63  ;;  %v1226_v63 = vpop.permute.xlu2 %1225 }
 0x192   :  { %4791 = vst [vmem:[#allocation94_spill] sm:$0xff] %v3902_v28  ;;  %v3978_v28 = vld [vmem:[%s4547_s2 + $0x1b8] sm:$0x3] }
 0x193   :  { %1376 = vst.msk [vmem:[#allocation3 + $0x28] sm:$0x3] %vm1355_vm1, %v1262_v19  ;;  %v3924_v19 = vld [vmem:[%s4547_s2 + $0x160] sm:$0xff] }
 0x194   :  { %4792 = vst [vmem:[#allocation95_spill] sm:$0xff] %v3906_v27  ;;  %v755_v52 = vmul.f32 %v3924_v19, %v2833_v57  ;;  %v1788_v27 = vld [vmem:[#allocation4 + $0x12] sm:$0xff] }
 0x195   :  { %4793 = vst [vmem:[#allocation96_spill] sm:$0xff] %v3909_v15 }
 0x196   :  { %4794 = vst [vmem:[#allocation97_spill] sm:$0xff] %v3916_v60  ;;  %v2086_v60 = vld [vmem:[%s4547_s2 + $0x68] sm:$0x3] }
 0x197   :  { %4795 = vst [vmem:[#allocation98_spill] sm:$0xff] %v3919_v38  ;;  %v1789_v38 = vld [vmem:[#allocation4 + $0x22] sm:$0xff]  ;;  %v748_v15 = vmul.f32 %v2086_v60, %v2833_v57 }
 0x198   :  { %4796 = vst [vmem:[#allocation99_spill] sm:$0xff] %v3924_v19  ;;  %v3994_v19 = vadd.f32 %v771_v42, %v755_v52  ;;  %v4005_v21 = vmul.f32 %v1789_v38, %v4706_v44  ;;  %v1646_v42 = vld [vmem:[#allocation4 + $0x30] sm:$0xff] }
 0x199   :  { %4797 = vst [vmem:[#allocation100_spill] sm:$0xff] %v3931_v32  ;;  %v3989_v32 = vmul.f32 %v1645_v37, %v2833_v57 }
 0x19a   :  { %4798 = vst [vmem:[#allocation101_spill] sm:$0xff] %v3936_v16  ;;  %v1009_v16 = vadd.f32 %v3572_v48, %v785_v8  ;;  %v1002_v48 = vadd.f32 %v3420_v59, %v3811_v13  ;;  %v3971_v8 = vld [vmem:[%s4547_s2 + $0x1a8] sm:$0x3]  ;;  %v2091_v59 = vld [vmem:[%s4547_s2 + $0x78] sm:$0x3] }
 0x19b   :  { %4799 = vst [vmem:[#allocation102_spill] sm:$0xff] %v3939_v22  ;;  %v1708_v22 = vld [vmem:[#allocation4 + $0x11] sm:$0xff]  ;;  %v764_v13 = vmul.f32 %v2091_v59, %v4728_v11 }
 0x19c   :  { %4800 = vst [vmem:[#allocation103_spill] sm:$0xff] %v3942_v47  ;;  %v1265_v20 = vadd.f32 %v1226_v63, %v1009_v16  ;;  %v4014_v52 = vmul.f32 %v1708_v22, %v4742_v3  ;;  %v4017_v63 = vmul.f32 %v1788_v27, %v4706_v44  ;;  %v1710_v16 = vld [vmem:[#allocation4 + $0x31] sm:$0xff] }
 0x19d   :  { %4801 = vst [vmem:[#allocation104_spill] sm:$0xff] %v3945_v61  ;;  %v3962_v61 = vld [vmem:[%s4547_s2 + $0x178] sm:$0x3] }
 0x19e   :  { %4802 = vst [vmem:[#allocation105_spill] sm:$0xff] %v3955_v10  ;;  %v772_v47 = vmul.f32 %v3962_v61, %v4728_v11  ;;  %v758_v10 = vmul.f32 %v3971_v8, %v2833_v57 }
 0x19f   :  { %4803 = vst [vmem:[#allocation106_spill] sm:$0xff] %v3962_v61  ;;  %v774_v61 = vmul.f32 %v3978_v28, %v4728_v11 }
 0x1a0   :  { %4804 = vst [vmem:[#allocation107_spill] sm:$0xff] %v3971_v8  ;;  %v3992_v8 = vmul.f32 %v1645_v37, %v3148_v53  ;;  %v4011_v37 = vmul.f32 %v1708_v22, %v4740_v41  ;;  %v793_v22 = vmul.f32 %v3859_v6, %v3148_v53  ;;  %v4045_v6 = vmul.f32 %v1646_v42, %v3148_v53 }
 0x1a1   :  { %4805 = vst [vmem:[#allocation108_spill] sm:$0xff] %v3978_v28  ;;  %v3999_v28 = vmul.f32 %v1709_v25, %v4740_v41  ;;  %v4021_v25 = vmul.f32 %v1788_v27, %v4718_v35 }
 0x1a2   :  { %4806 = vst [vmem:[#allocation109_spill] sm:$0xff] %v3986_v34  ;;  %v4008_v34 = vmul.f32 %v1789_v38, %v4718_v35  ;;  %v4025_v38 = vadd.f32 %v3457_v49, %v3825_v9  ;;  %v2093_v49 = vld [vmem:[%s4547_s2 + $0xf0] sm:$0xff] }
 0x1a3   :  { %4807 = vst [vmem:[#allocation110_spill] sm:$0xff] %v3989_v32  ;;  %v767_v9 = vmul.f32 %v2093_v49, %v4728_v11  ;;  %v1001_v32 = vadd.f32 %v3508_v58, %v3913_v46  ;;  %v4088_v58 = vld [vmem:[#allocation4 + $0x42] sm:$0xff] }
 0x1a4   :  { %4808 = vst [vmem:[#allocation111_spill] sm:$0xff] %v3992_v8  ;;  %v788_v8 = vadd.f32 %v772_v47, %v756_v54  ;;  %v1790_v47 = vld [vmem:[#allocation4 + $0x32] sm:$0xff] }
 0x1a5   :  { %4809 = vst [vmem:[#allocation112_spill] sm:$0xff] %v3996_v1 }
 0x1a6   :  { %4810 = vst [vmem:[#allocation113_spill] sm:$0xff] %v3999_v28  ;;  %v1012_v54 = vadd.f32 %v3593_v33, %v788_v8  ;;  %v4070_v33 = vld [vmem:[#allocation4 + $0x50] sm:$0xff]  ;;  %v1711_v8 = vld [vmem:[#allocation4 + $0x41] sm:$0xff] }
 0x1a7   :  { %4811 = vst [vmem:[#allocation114_spill] sm:$0xff] %v4002_v31  ;;  %v809_v31 = vmul.f32 %v3866_v12, %v3160_v51  ;;  %v4048_v12 = vmul.f32 %v1710_v16, %v4740_v41  ;;  %v4096_v0 = vmul.f32 %v4070_v33, %v2833_v57 }
 0x1a8   :  { %4812 = vst [vmem:[#allocation115_spill] sm:$0xff] %v4005_v21  ;;  %v780_v21 = vadd.f32 %v764_v13, %v748_v15  ;;  %v4042_v15 = vmul.f32 %v1646_v42, %v2833_v57  ;;  %v4056_v13 = vld [vmem:[%s4547_s2 + $0x1e0] sm:$0xff]  ;;  %v4063_v42 = vld [vmem:[%s4547_s2 + $0x1f0] sm:$0xff] }
 0x1a9   :  { %4813 = vst [vmem:[#allocation116_spill] sm:$0xff] %v4008_v34  ;;  %v4027_v34 = vadd.f32 %v774_v61, %v758_v10  ;;  %v796_v61 = vmul.f32 %v2086_v60, %v3148_v53  ;;  %v812_v10 = vmul.f32 %v2091_v59, %v3160_v51  ;;  %v759_v28 = vmul.f32 %v4056_v13, %v2833_v57 }
 0x1aa   :  { %4814 = vst [vmem:[#allocation117_spill] sm:$0xff] %v4011_v37  ;;  %v775_v60 = vmul.f32 %v4063_v42, %v4728_v11  ;;  %v4068_v59 = vmul.f32 %v1710_v16, %v4742_v3  ;;  %v1232_v16 = vpop.permute.xlu2 %1231  ;;  %v4092_v37 = vadd.f32 %v3486_v17, %v3911_v50  ;;  %v825_v1 = vadd.f32 %v809_v31, %v793_v22 }
 0x1ab   :  { %4815 = vst [vmem:[#allocation118_spill] sm:$0xff] %v4014_v52  ;;  %v1268_v46 = vadd.f32 %v1232_v16, %v1012_v54  ;;  %v1210_v52 = vpop.permute.xlu0 %1209  ;;  %v4109_v17 = vmul.f32 %v4088_v58, %v4706_v44 }
 0x1ac   :  { %4816 = vst [vmem:[#allocation119_spill] sm:$0xff] %v4017_v63  ;;  %v4083_v63 = vmul.f32 %v1790_v47, %v4706_v44  ;;  %v1257_v30 = vadd.f32 %v1210_v52, %v1001_v32  ;;  %v4117_v32 = vadd.f32 %v3506_v26, %v3994_v19  ;;  %v2098_v52 = vld [vmem:[%s4547_s2 + $0x1a0] sm:$0xff]  ;;  %v794_v19 = vmul.f32 %v3747_v40, %v3148_v53 }
 0x1ad   :  { %1379 = vst.msk [vmem:[#allocation3 + $0x40] sm:$0xff] %vm1353_vm0, %v1265_v20  ;;  %v2092_v20 = vld [vmem:[%s4547_s2 + $0xe0] sm:$0xff]  ;;  %v757_v22 = vmul.f32 %v2098_v52, %v2833_v57 }
 0x1ae   :  { %4817 = vst [vmem:[#allocation120_spill] sm:$0xff] %v4021_v25  ;;  %v751_v27 = vmul.f32 %v2092_v20, %v2833_v57  ;;  %v799_v31 = vmul.f32 %v2092_v20, %v3148_v53 }
 0x1af   :  { %4818 = vst [vmem:[#allocation121_spill] sm:$0xff] %v4042_v15  ;;  %v2097_v15 = vld [vmem:[%s4547_s2 + $0x138] sm:$0x3] }
 0x1b0   :  { %4819 = vst [vmem:[#allocation122_spill] sm:$0xff] %v4045_v6  ;;  %v770_v25 = vmul.f32 %v2097_v15, %v4728_v11  ;;  %v783_v24 = vadd.f32 %v767_v9, %v751_v27  ;;  %v818_v26 = vmul.f32 %v2097_v15, %v3160_v51  ;;  %v1004_v9 = vadd.f32 %v3528_v14, %v780_v21  ;;  %v4146_v15 = vld [vmem:[%s4547_s2 + $0x1f8] sm:$0x3] }
 0x1b1   :  { %4820 = vst [vmem:[#allocation123_spill] sm:$0xff] %v4048_v12  ;;  %v2096_v12 = vld [vmem:[%s4547_s2 + $0x128] sm:$0x3]  ;;  %v776_v40 = vmul.f32 %v4146_v15, %v4728_v11  ;;  %v805_v14 = vmul.f32 %v2098_v52, %v3148_v53 }
 0x1b2   :  { %4821 = vst [vmem:[#allocation124_spill] sm:$0xff] %v4056_v13  ;;  %v754_v6 = vmul.f32 %v2096_v12, %v2833_v57  ;;  %v802_v27 = vmul.f32 %v2096_v12, %v3148_v53  ;;  %v797_v12 = vmul.f32 %v3778_v5, %v3148_v53 }
 0x1b3   :  { %4822 = vst [vmem:[#allocation125_spill] sm:$0xff] %v4063_v42  ;;  %v4086_v42 = vmul.f32 %v1790_v47, %v4718_v35  ;;  %v4101_v47 = vadd.f32 %v812_v10, %v796_v61  ;;  %v791_v35 = vadd.f32 %v775_v60, %v759_v28  ;;  %v815_v28 = vmul.f32 %v2093_v49, %v3160_v51  ;;  %v1238_v10 = vpop.permute.xlu2 %1237 }
 0x1b4   :  { %4823 = vst [vmem:[#allocation126_spill] sm:$0xff] %v4068_v59  ;;  %v1212_v59 = vpop.permute.xlu1 %1211  ;;  %v4111_v50 = vadd.f32 %v770_v25, %v754_v6  ;;  %v2099_v25 = vld [vmem:[%s4547_s2 + $0x1b0] sm:$0xff]  ;;  %v810_v49 = vmul.f32 %v3754_v39, %v3160_v51  ;;  %v4139_v6 = vld [vmem:[%s4547_s2 + $0x1e8] sm:$0x3]  ;;  %v813_v61 = vmul.f32 %v3785_v7, %v3160_v51  ;;  %v4166_v16 = vadd.f32 %v818_v26, %v802_v27  ;;  %s2236_s2 = smov [#allocation12]  }
 0x1b5   :  { %4824 = vst [vmem:[#allocation127_spill] sm:$0xff] %v4083_v63  ;;  %v1258_v13 = vadd.f32 %v1212_v59, %v1002_v48  ;;  %v4099_v63 = vmul.f32 %v1711_v8, %v4740_v41  ;;  %v4105_v48 = vmul.f32 %v1711_v8, %v4742_v3  ;;  %v773_v20 = vmul.f32 %v2099_v25, %v4728_v11  ;;  %v4826_v27 = vld [vmem:[#allocation23_spill] sm:$0xff]  ;;  %s4381_s18 = sshll.u32 %s2236_s2, 4  ;;  %s1917_s18 = int_to_ptr.vmem [resolvable:$true] %s4381_s18 }
 0x1b6   :  { %4825 = vst [vmem:[#allocation128_spill] sm:$0xff] %v4096_v0  ;;  %v1015_v39 = vadd.f32 %v3614_v43, %v791_v35  ;;  %v821_v21 = vmul.f32 %v2099_v25, %v3160_v51  ;;  %v1216_v35 = vpop.permute.xlu0 %1215  ;;  %v4164_v43 = vadd.f32 %v3526_v56, %v4027_v34  ;;  %v826_v5 = vadd.f32 %v810_v49, %v794_v19  ;;  %v4827_v19 = vld [vmem:[#allocation32_spill] sm:$0xff] }
 0x1b7   :  { %1382 = vst.msk [vmem:[#allocation3 + $0x58] sm:$0x3] %vm1355_vm1, %v1268_v46  ;;  %v4159_v60 = vadd.f32 %v773_v20, %v757_v22  ;;  %v1260_v46 = vadd.f32 %v1216_v35, %v1004_v9  ;;  %v4169_v7 = vadd.f32 %v3547_v29, %v825_v1  ;;  %v1007_v56 = vadd.f32 %v3549_v23, %v783_v24  ;;  %v4833_v35 = vld [vmem:[#allocation44_spill] sm:$0xff] }
 0x1b8   :  { %1372 = vst.msk [vmem:[#allocation3 + $0x8] sm:$0x3] %vm1355_vm1, %v1258_v13  ;;  %v4157_v13 = vadd.f32 %v815_v28, %v799_v31  ;;  %v1271_v59 = vadd.f32 %v1238_v10, %v1015_v39  ;;  %v4175_v31 = vmul.f32 %v3637_v2, %v3148_v53  ;;  %v4183_v34 = vadd.f32 %v821_v21, %v805_v14  ;;  %v1428_v2 = vld [vmem:[#allocation3 + $0x10] sm:$0xff]  ;;  %v4829_v39 = vld [vmem:[#allocation65_spill] sm:$0xff] }
 0x1b9   :  { %1371 = vst.msk [vmem:[#allocation3] sm:$0xff] %vm1353_vm0, %v1257_v30  ;;  %v760_v30 = vmul.f32 %v4139_v6, %v2833_v57  ;;  %v829_v28 = vadd.f32 %v813_v61, %v797_v12  ;;  %v800_v29 = vmul.f32 %v3845_v18, %v3148_v53  ;;  %v1082_v24 = vadd.f32 %v3631_v62, %v826_v5  ;;  %v4830_v21 = vld [vmem:[#allocation61_spill] sm:$0xff]  ;;  %v4831_v61 = vld [vmem:[#allocation62_spill] sm:$0xff]  ;;  %v4832_v62 = vld [vmem:[#allocation63_spill] sm:$0xff] }
 0x1ba   :  { %1385 = vst.msk [vmem:[#allocation3 + $0x70] sm:$0xff] %vm1353_vm0, %v1271_v59  ;;  %v816_v18 = vmul.f32 %v3852_v45, %v3160_v51  ;;  %v1468_v59 = vmul.f32 %v1428_v2, %v3160_v51 }
 0x1bb   :  { %v4171_v52 = vadd.f32 %v776_v40, %v760_v30  ;;  %1374 = vst.msk [vmem:[#allocation3 + $0x18] sm:$0x3] %vm1355_vm1, %v1260_v46  ;;  %v4828_v30 = vld [vmem:[#allocation64_spill] sm:$0xff]  ;;  %v1292_v5 = vpop.permute.xlu2 %1291 }
 0x1bc   :  { %v1218_v54 = vpop.permute.xlu1 %1217 }
 0x1bd   :  { %v1261_v8 = vadd.f32 %v1218_v54, %v4025_v38  ;;  %v4179_v38 = vmul.f32 %v3644_v36, %v3160_v51  ;;  %v1444_v54 = vmul.f32 %v1428_v2, %v4728_v11 }
 0x1bf   :  { %1375 = vst.msk [vmem:[#allocation3 + $0x20] sm:$0xff] %vm1353_vm0, %v1261_v8 }
 0x1c0   :  { %v1427_v1 = vld [vmem:[#allocation3] sm:$0xff] }
 0x1c1   :  { %v1491_v22 = vld [vmem:[#allocation3 + $0x1] sm:$0xff]  ;;  %v1443_v20 = vmul.f32 %v1427_v1, %v4728_v11  ;;  %v1467_v36 = vmul.f32 %v1427_v1, %v3160_v51  ;;  %v1338_v1 = vadd.f32 %v1292_v5, %v1082_v24 }
 0x1c2   :  { %v1571_v25 = vld [vmem:[#allocation3 + $0x2] sm:$0xff]  ;;  %v1507_v26 = vmul.f32 %v1491_v22, %v4826_v27  ;;  %v1531_v23 = vmul.f32 %v1491_v22, %v4827_v19 }
 0x1c3   :  { %v1587_v49 = vmul.f32 %v1571_v25, %v4707_v55  ;;  %v1611_v9 = vmul.f32 %v1571_v25, %v4719_v4  ;;  %v1451_v40 = vadd.f32 %v1443_v20, %v4828_v30  ;;  %v1475_v14 = vadd.f32 %v1467_v36, %v4829_v39  ;;  %v1222_v25 = vpop.permute.xlu0 %1221  ;;  %v4835_v39 = vld [vmem:[#allocation99_spill] sm:$0xff]  ;;  %1404 = vst.msk [vmem:[#allocation5 + $0x8] sm:$0x3] %vm1355_vm1, %v1338_v1 }
 0x1c4   :  { %v1515_v12 = vadd.f32 %v1507_v26, %v4830_v21  ;;  %v1539_v10 = vadd.f32 %v1531_v23, %v4831_v61  ;;  %v1224_v46 = vpop.permute.xlu1 %1223  ;;  %v4834_v26 = vld [vmem:[#allocation59_spill] sm:$0xff]  ;;  %v832_v23 = vadd.f32 %v816_v18, %v800_v29  ;;  %v803_v21 = vmul.f32 %v4835_v39, %v3148_v53  ;;  %v4836_v61 = vld [vmem:[#allocation28_spill] sm:$0xff] }
 0x1c5   :  { %v1595_v8 = vadd.f32 %v1587_v49, %v4832_v62  ;;  %v1619_v45 = vadd.f32 %v1611_v9, %v4833_v35  ;;  %v1264_v22 = vadd.f32 %v1224_v46, %v4092_v37  ;;  %v1010_v30 = vadd.f32 %v4834_v26, %v4111_v50  ;;  %v4837_v9 = vld [vmem:[#allocation100_spill] sm:$0xff]  ;;  %v4840_v1 = vld [vmem:[#allocation39_spill] sm:$0xff] }
 0x1c6   :  { %v1555_v20 = vadd.f32 %v1539_v10, %v1475_v14  ;;  %v1547_v36 = vadd.f32 %v1515_v12, %v1451_v40  ;;  %v1263_v2 = vadd.f32 %v1222_v25, %v1007_v56  ;;  %v1085_v49 = vadd.f32 %v4836_v61, %v829_v28  ;;  %v1429_v35 = vld [vmem:[#allocation3 + $0x20] sm:$0xff]  ;;  %v1492_v18 = vld [vmem:[#allocation3 + $0x11] sm:$0xff] }
 0x1c7   :  { %v819_v62 = vmul.f32 %v4837_v9, %v3160_v51  ;;  %v1493_v24 = vld [vmem:[#allocation3 + $0x21] sm:$0xff]  ;;  %v1445_v14 = vmul.f32 %v1429_v35, %v4728_v11  ;;  %v1469_v50 = vmul.f32 %v1429_v35, %v3160_v51  ;;  %1378 = vst.msk [vmem:[#allocation3 + $0x38] sm:$0x3] %vm1355_vm1, %v1264_v22  ;;  %v4838_v28 = vld [vmem:[#allocation29_spill] sm:$0xff]  ;;  %v4842_v39 = vld [vmem:[#allocation68_spill] sm:$0xff] }
 0x1c8   :  { %v1573_v5 = vld [vmem:[#allocation3 + $0x22] sm:$0xff]  ;;  %v1635_v37 = vadd.f32 %v1619_v45, %v1555_v20  ;;  %v1627_v40 = vadd.f32 %v1595_v8, %v1547_v36  ;;  %v1509_v29 = vmul.f32 %v1493_v24, %v4826_v27  ;;  %v1533_v56 = vmul.f32 %v1493_v24, %v4827_v19  ;;  %v1572_v8 = vld [vmem:[#allocation3 + $0x12] sm:$0xff]  ;;  %1377 = vst.msk [vmem:[#allocation3 + $0x30] sm:$0xff] %vm1353_vm0, %v1263_v2 }
 0x1c9   :  { %v1452_v12 = vadd.f32 %v1444_v54, %v4838_v28  ;;  %v4839_v10 = vld [vmem:[#allocation30_spill] sm:$0xff]  ;;  %v1589_v25 = vmul.f32 %v1573_v5, %v4707_v55  ;;  %v1613_v45 = vmul.f32 %v1573_v5, %v4719_v4  ;;  %v1453_v20 = vadd.f32 %v1445_v14, %v4840_v1  ;;  %v4841_v36 = vld [vmem:[#allocation67_spill] sm:$0xff]  ;;  %v4843_v9 = vld [vmem:[#allocation33_spill] sm:$0xff] }
 0x1ca   :  { %v1476_v46 = vadd.f32 %v1468_v59, %v4839_v10  ;;  %v1477_v26 = vadd.f32 %v1469_v50, %v4841_v36  ;;  %v1517_v61 = vadd.f32 %v1509_v29, %v4842_v39  ;;  %v1541_v35 = vadd.f32 %v1533_v56, %v4843_v9  ;;  %1875 = vst.msk [vmem:[#allocation12] sm:$0xff] %vm1353_vm0, %v1635_v37  ;;  %v4844_v54 = vld [vmem:[#allocation34_spill] sm:$0xff]  ;;  %v4845_v59 = vld [vmem:[#allocation41_spill] sm:$0xff]  ;;  %v1298_v50 = vpop.permute.xlu2 %1297 }
 0x1cb   :  { %v1597_v22 = vadd.f32 %v1589_v25, %v4844_v54  ;;  %v1621_v24 = vadd.f32 %v1613_v45, %v4845_v59  ;;  %v1508_v28 = vmul.f32 %v1492_v18, %v4826_v27  ;;  %v1532_v5 = vmul.f32 %v1492_v18, %v4827_v19  ;;  %1867 = vst.msk [vmem:[#allocation11] sm:$0xff] %vm1353_vm0, %v1627_v40  ;;  %v4846_v1 = vld [vmem:[#allocation38_spill] sm:$0xff]  ;;  %v1228_v9 = vpop.permute.xlu0 %1227  ;;  %v4848_v18 = vld [vmem:[#allocation53_spill] sm:$0xff] }
 0x1cc   :  { %v1588_v2 = vmul.f32 %v1572_v8, %v4707_v55  ;;  %v1612_v14 = vmul.f32 %v1572_v8, %v4719_v4  ;;  %v1230_v29 = vpop.permute.xlu1 %1229  ;;  %v1557_v10 = vadd.f32 %v1541_v35, %v1477_v26  ;;  %v1549_v56 = vadd.f32 %v1517_v61, %v1453_v20  ;;  %v4847_v36 = vld [vmem:[#allocation70_spill] sm:$0xff]  ;;  %v4849_v8 = vld [vmem:[#allocation107_spill] sm:$0xff] }
 0x1cd   :  { %v1516_v37 = vadd.f32 %v1508_v28, %v4846_v1  ;;  %v1540_v25 = vadd.f32 %v1532_v5, %v4847_v36  ;;  %v1341_v39 = vadd.f32 %v1298_v50, %v1085_v49  ;;  %v1267_v45 = vadd.f32 %v1230_v29, %v4117_v32  ;;  %v4850_v35 = vld [vmem:[#allocation55_spill] sm:$0xff]  ;;  %v4851_v49 = vld [vmem:[#allocation108_spill] sm:$0xff]  ;;  %v4855_v36 = vld [vmem:[#allocation57_spill] sm:$0xff] }
 0x1ce   :  { %v1013_v54 = vadd.f32 %v4848_v18, %v4159_v60  ;;  %v835_v40 = vadd.f32 %v819_v62, %v803_v21  ;;  %v1266_v59 = vadd.f32 %v1228_v9, %v1010_v30  ;;  %v1637_v0 = vadd.f32 %v1621_v24, %v1557_v10  ;;  %v4852_v5 = vld [vmem:[#allocation71_spill] sm:$0xff]  ;;  %v4853_v29 = vld [vmem:[#allocation72_spill] sm:$0xff]  ;;  %v1431_v24 = vld [vmem:[#allocation3 + $0x40] sm:$0xff] }
 0x1cf   :  { %v806_v57 = vmul.f32 %v4849_v8, %v3148_v53  ;;  %1407 = vst.msk [vmem:[#allocation5 + $0x20] sm:$0xff] %vm1353_vm0, %v1341_v39  ;;  %v1556_v20 = vadd.f32 %v1540_v25, %v1476_v46  ;;  %v1548_v26 = vadd.f32 %v1516_v37, %v1452_v12  ;;  %v1629_v61 = vadd.f32 %v1597_v22, %v1549_v56  ;;  %v1430_v21 = vld [vmem:[#allocation3 + $0x30] sm:$0xff]  ;;  %v4856_v39 = vld [vmem:[#allocation49_spill] sm:$0xff]  ;;  %v4857_v9 = vld [vmem:[#allocation22_spill] sm:$0xff] }
 0x1d0   :  { %v1088_v28 = vadd.f32 %v4850_v35, %v832_v23  ;;  %v822_v32 = vmul.f32 %v4851_v49, %v3160_v51  ;;  %v1596_v50 = vadd.f32 %v1588_v2, %v4852_v5  ;;  %v1620_v60 = vadd.f32 %v1612_v14, %v4853_v29  ;;  %v1494_v30 = vld [vmem:[#allocation3 + $0x31] sm:$0xff]  ;;  %1381 = vst.msk [vmem:[#allocation3 + $0x50] sm:$0xff] %vm1353_vm0, %v1267_v45  ;;  %v4858_v35 = vld [vmem:[#allocation31_spill] sm:$0xff] }
 0x1d1   :  { %v1574_v62 = vld [vmem:[#allocation3 + $0x32] sm:$0xff]  ;;  %v1446_v10 = vmul.f32 %v1430_v21, %v4728_v11  ;;  %v1470_v12 = vmul.f32 %v1430_v21, %v3160_v51  ;;  %v1510_v46 = vmul.f32 %v1494_v30, %v4826_v27  ;;  %v1534_v23 = vmul.f32 %v1494_v30, %v4827_v19  ;;  %1380 = vst.msk [vmem:[#allocation3 + $0x48] sm:$0x3] %vm1355_vm1, %v1266_v59 }
 0x1d2   :  { %v1590_v22 = vmul.f32 %v1574_v62, %v4707_v55  ;;  %v1614_v2 = vmul.f32 %v1574_v62, %v4719_v4  ;;  %v1636_v14 = vadd.f32 %v1620_v60, %v1556_v20  ;;  %1877 = vst.msk [vmem:[#allocation12 + $0x10] sm:$0xff] %vm1353_vm0, %v1637_v0  ;;  %v1628_v56 = vadd.f32 %v1596_v50, %v1548_v26  ;;  %v4854_v1 = vld [vmem:[#allocation56_spill] sm:$0xff]  ;;  %v4859_v20 = vld [vmem:[#allocation74_spill] sm:$0xff]  ;;  %v1304_v0 = vpop.permute.xlu2 %1303 }
 0x1d3   :  { %v1454_v37 = vadd.f32 %v1446_v10, %v4854_v1  ;;  %v1478_v25 = vadd.f32 %v1470_v12, %v4855_v36  ;;  %v1518_v45 = vadd.f32 %v1510_v46, %v4856_v39  ;;  %v1542_v18 = vadd.f32 %v1534_v23, %v4857_v9  ;;  %1869 = vst.msk [vmem:[#allocation11 + $0x10] sm:$0xff] %vm1353_vm0, %v1629_v61  ;;  %v1234_v60 = vpop.permute.xlu0 %1233  ;;  %v4860_v61 = vld [vmem:[#allocation40_spill] sm:$0xff]  ;;  %v4862_v12 = vld [vmem:[#allocation46_spill] sm:$0xff] }
 0x1d4   :  { %v1447_v59 = vmul.f32 %v1431_v24, %v4728_v11  ;;  %v1471_v8 = vmul.f32 %v1431_v24, %v3160_v51  ;;  %v1598_v49 = vadd.f32 %v1590_v22, %v4858_v35  ;;  %v1622_v5 = vadd.f32 %v1614_v2, %v4859_v20  ;;  %v1236_v26 = vpop.permute.xlu1 %1235  ;;  %1876 = vst.msk [vmem:[#allocation12 + $0x8] sm:$0xff] %vm1353_vm0, %v1636_v14  ;;  %v4861_v24 = vld [vmem:[#allocation69_spill] sm:$0xff]  ;;  %v4863_v22 = vld [vmem:[#allocation87_spill] sm:$0xff] }
 0x1d5   :  { %v1344_v50 = vadd.f32 %v1304_v0, %v1088_v28  ;;  %v1270_v29 = vadd.f32 %v1236_v26, %v4164_v43  ;;  %v1558_v21 = vadd.f32 %v1542_v18, %v1478_v25  ;;  %v1550_v30 = vadd.f32 %v1518_v45, %v1454_v37  ;;  %1868 = vst.msk [vmem:[#allocation11 + $0x8] sm:$0xff] %vm1353_vm0, %v1628_v56  ;;  %v4868_v26 = vld [vmem:[#allocation77_spill] sm:$0xff] }
 0x1d6   :  { %v1016_v62 = vadd.f32 %v4860_v61, %v4171_v52  ;;  %v798_v10 = vmul.f32 %v4861_v24, %v3148_v53  ;;  %v814_v46 = vmul.f32 %v4862_v12, %v3160_v51  ;;  %v1269_v23 = vadd.f32 %v1234_v60, %v1013_v54  ;;  %v4864_v54 = vld [vmem:[#allocation45_spill] sm:$0xff]  ;;  %v4869_v60 = vld [vmem:[#allocation78_spill] sm:$0xff] }
 0x1d7   :  { %v1091_v2 = vadd.f32 %v4863_v22, %v835_v40  ;;  %v838_v28 = vadd.f32 %v822_v32, %v806_v57  ;;  %v1432_v14 = vld [vmem:[#allocation3 + $0x50] sm:$0xff]  ;;  %1410 = vst.msk [vmem:[#allocation5 + $0x38] sm:$0x3] %vm1355_vm1, %v1344_v50  ;;  %v1638_v37 = vadd.f32 %v1622_v5, %v1558_v21  ;;  %v1630_v56 = vadd.f32 %v1598_v49, %v1550_v30  ;;  %v4866_v49 = vld [vmem:[#allocation75_spill] sm:$0xff] }
 0x1d8   :  { %v1496_v43 = vld [vmem:[#allocation3 + $0x51] sm:$0xff]  ;;  %v1448_v36 = vmul.f32 %v1432_v14, %v4728_v11  ;;  %v1472_v52 = vmul.f32 %v1432_v14, %v3160_v51  ;;  %v1495_v45 = vld [vmem:[#allocation3 + $0x41] sm:$0xff]  ;;  %1384 = vst.msk [vmem:[#allocation3 + $0x68] sm:$0x3] %vm1355_vm1, %v1270_v29  ;;  %v1455_v57 = vadd.f32 %v1447_v59, %v4864_v54 }
 0x1d9   :  { %v1576_v1 = vld [vmem:[#allocation3 + $0x52] sm:$0xff]  ;;  %v1512_v25 = vmul.f32 %v1496_v43, %v4826_v27  ;;  %v1536_v39 = vmul.f32 %v1496_v43, %v4827_v19  ;;  %v1575_v35 = vld [vmem:[#allocation3 + $0x42] sm:$0xff]  ;;  %1383 = vst.msk [vmem:[#allocation3 + $0x60] sm:$0xff] %vm1353_vm0, %v1269_v23  ;;  %v1511_v61 = vmul.f32 %v1495_v45, %v4826_v27  ;;  %v1535_v24 = vmul.f32 %v1495_v45, %v4827_v19 }
 0x1da   :  { %v4865_v40 = vld [vmem:[#allocation60_spill] sm:$0xff]  ;;  %v1592_v9 = vmul.f32 %v1576_v1, %v4707_v55  ;;  %v1616_v18 = vmul.f32 %v1576_v1, %v4719_v4  ;;  %v1456_v20 = vadd.f32 %v1448_v36, %v4866_v49  ;;  %1878 = vst.msk [vmem:[#allocation12 + $0x18] sm:$0xff] %vm1353_vm0, %v1638_v37  ;;  %v4870_v59 = vld [vmem:[#allocation79_spill] sm:$0xff]  ;;  %v1591_v12 = vmul.f32 %v1575_v35, %v4707_v55  ;;  %v1310_v22 = vpop.permute.xlu2 %1309  ;;  %v4872_v36 = vld [vmem:[#allocation50_spill] sm:$0xff] }
 0x1db   :  { %v1479_v32 = vadd.f32 %v1471_v8, %v4865_v40  ;;  %v4867_v5 = vld [vmem:[#allocation76_spill] sm:$0xff]  ;;  %v1520_v50 = vadd.f32 %v1512_v25, %v4868_v26  ;;  %v1544_v21 = vadd.f32 %v1536_v39, %v4869_v60  ;;  %1870 = vst.msk [vmem:[#allocation11 + $0x18] sm:$0xff] %vm1353_vm0, %v1630_v56  ;;  %v1615_v23 = vmul.f32 %v1575_v35, %v4719_v4  ;;  %v1240_v40 = vpop.permute.xlu0 %1239  ;;  %v4875_v26 = vld [vmem:[#allocation81_spill] sm:$0xff] }
 0x1dc   :  { %v1480_v0 = vadd.f32 %v1472_v52, %v4867_v5  ;;  %v1600_v29 = vadd.f32 %v1592_v9, %v4870_v59  ;;  %v4871_v8 = vld [vmem:[#allocation80_spill] sm:$0xff]  ;;  %v1290_v14 = vpop.permute.xlu1 %1289  ;;  %v1519_v37 = vadd.f32 %v1511_v61, %v4872_v36  ;;  %v4873_v52 = vld [vmem:[#allocation66_spill] sm:$0xff]  ;;  %v1347_v39 = vadd.f32 %v1310_v22, %v1091_v2  ;;  %v4877_v60 = vld [vmem:[#allocation73_spill] sm:$0xff] }
 0x1dd   :  { %v1624_v30 = vadd.f32 %v1616_v18, %v4871_v8  ;;  %v1552_v1 = vadd.f32 %v1520_v50, %v1456_v20  ;;  %v1543_v25 = vadd.f32 %v1535_v24, %v4873_v52  ;;  %v1337_v54 = vadd.f32 %v1290_v14, %v4169_v7  ;;  %v4874_v45 = vld [vmem:[#allocation24_spill] sm:$0xff]  ;;  %v4879_v24 = vld [vmem:[#allocation58_spill] sm:$0xff]  ;;  %v4881_v14 = vld [vmem:[#allocation93_spill] sm:$0xff] }
 0x1de   :  { %v1560_v43 = vadd.f32 %v1544_v21, %v1480_v0  ;;  %v1084_v9 = vadd.f32 %v4874_v45, %v4101_v47  ;;  %v827_v56 = vadd.f32 %v4179_v38, %v4175_v31  ;;  %v1272_v18 = vadd.f32 %v1240_v40, %v1016_v62  ;;  %1413 = vst.msk [vmem:[#allocation5 + $0x50] sm:$0xff] %vm1353_vm0, %v1347_v39  ;;  %v4876_v7 = vld [vmem:[#allocation112_spill] sm:$0xff]  ;;  %v4878_v47 = vld [vmem:[#allocation37_spill] sm:$0xff]  ;;  %v4884_v39 = vld [vmem:[#allocation95_spill] sm:$0xff] }
 0x1df   :  { %v830_v49 = vadd.f32 %v814_v46, %v798_v10  ;;  %v1559_v20 = vadd.f32 %v1543_v25, %v1479_v32  ;;  %v1551_v5 = vadd.f32 %v1519_v37, %v1455_v57  ;;  %v1632_v0 = vadd.f32 %v1600_v29, %v1552_v1  ;;  %1403 = vst.msk [vmem:[#allocation5] sm:$0xff] %vm1353_vm0, %v1337_v54  ;;  %v1434_v62 = vld [vmem:[#allocation3 + $0x70] sm:$0xff]  ;;  %v4882_v1 = vld [vmem:[#allocation94_spill] sm:$0xff] }
 0x1e0   :  { %v1640_v35 = vadd.f32 %v1624_v30, %v1560_v43  ;;  %v4311_v2 = vmul.f32 %v4875_v26, %v3148_v53  ;;  %v1094_v50 = vadd.f32 %v4876_v7, %v838_v28  ;;  %v1599_v21 = vadd.f32 %v1591_v12, %v4877_v60  ;;  %v1433_v8 = vld [vmem:[#allocation3 + $0x60] sm:$0xff]  ;;  %1386 = vst.msk [vmem:[#allocation3 + $0x78] sm:$0x3] %vm1355_vm1, %v1272_v18  ;;  %v4885_v40 = vld [vmem:[#allocation96_spill] sm:$0xff] }
 0x1e1   :  { %v1623_v59 = vadd.f32 %v1615_v23, %v4878_v47  ;;  %v1497_v31 = vld [vmem:[#allocation3 + $0x61] sm:$0xff]  ;;  %v1449_v10 = vmul.f32 %v1433_v8, %v4728_v11  ;;  %v1473_v46 = vmul.f32 %v1433_v8, %v3160_v51  ;;  %1872 = vst.msk [vmem:[#allocation11 + $0x28] sm:$0xff] %vm1353_vm0, %v1632_v0  ;;  %v1450_v25 = vmul.f32 %v1434_v62, %v4728_v11  ;;  %v4886_v0 = vld [vmem:[#allocation52_spill] sm:$0xff] }
 0x1e2   :  { %v1577_v38 = vld [vmem:[#allocation3 + $0x62] sm:$0xff]  ;;  %v1513_v57 = vmul.f32 %v1497_v31, %v4826_v27  ;;  %v1537_v32 = vmul.f32 %v1497_v31, %v4827_v19  ;;  %1880 = vst.msk [vmem:[#allocation12 + $0x28] sm:$0xff] %vm1353_vm0, %v1640_v35  ;;  %v1631_v61 = vadd.f32 %v1599_v21, %v1551_v5  ;;  %v1316_v18 = vpop.permute.xlu2 %1315 }
 0x1e3   :  { %v1593_v28 = vmul.f32 %v1577_v38, %v4707_v55  ;;  %v1617_v29 = vmul.f32 %v1577_v38, %v4719_v4  ;;  %v1639_v30 = vadd.f32 %v1623_v59, %v1559_v20  ;;  %v1457_v12 = vadd.f32 %v1449_v10, %v4879_v24  ;;  %v4880_v23 = vld [vmem:[#allocation42_spill] sm:$0xff]  ;;  %v1294_v26 = vpop.permute.xlu0 %1293  ;;  %v4888_v59 = vld [vmem:[#allocation105_spill] sm:$0xff] }
 0x1e4   :  { %v1481_v22 = vadd.f32 %v1473_v46, %v4880_v23  ;;  %v1521_v43 = vadd.f32 %v1513_v57, %v4881_v14  ;;  %v1545_v36 = vadd.f32 %v1537_v32, %v4882_v1  ;;  %v4883_v37 = vld [vmem:[#allocation26_spill] sm:$0xff]  ;;  %v1296_v35 = vpop.permute.xlu1 %1295  ;;  %v1350_v20 = vadd.f32 %v1316_v18, %v1094_v50  ;;  %1871 = vst.msk [vmem:[#allocation11 + $0x20] sm:$0xff] %vm1353_vm0, %v1631_v61 }
 0x1e5   :  { %v1083_v52 = vadd.f32 %v4883_v37, %v827_v56  ;;  %v1601_v54 = vadd.f32 %v1593_v28, %v4884_v39  ;;  %v1625_v45 = vadd.f32 %v1617_v29, %v4885_v40  ;;  %1879 = vst.msk [vmem:[#allocation12 + $0x20] sm:$0xff] %vm1353_vm0, %v1639_v30  ;;  %v1340_v5 = vadd.f32 %v1296_v35, %v1084_v9  ;;  %v4887_v21 = vld [vmem:[#allocation82_spill] sm:$0xff] }
 0x1e6   :  { %v1561_v7 = vadd.f32 %v1545_v36, %v1481_v22  ;;  %v1553_v60 = vadd.f32 %v1521_v43, %v1457_v12  ;;  %v1087_v56 = vadd.f32 %v4886_v0, %v4157_v13  ;;  %v817_v47 = vmul.f32 %v4887_v21, %v3160_v51  ;;  %v4889_v38 = vld [vmem:[#allocation106_spill] sm:$0xff]  ;;  %1416 = vst.msk [vmem:[#allocation5 + $0x68] sm:$0x3] %vm1355_vm1, %v1350_v20  ;;  %v4890_v12 = vld [vmem:[#allocation35_spill] sm:$0xff]  ;;  %v4892_v36 = vld [vmem:[#allocation97_spill] sm:$0xff] }
 0x1e7   :  { %v804_v8 = vmul.f32 %v4888_v59, %v3148_v53  ;;  %v1339_v31 = vadd.f32 %v1294_v26, %v1083_v52  ;;  %v820_v10 = vmul.f32 %v4889_v38, %v3160_v51  ;;  %v1474_v9 = vmul.f32 %v1434_v62, %v3160_v51  ;;  %v1651_v50 = vld [vmem:[#allocation5] sm:$0xff]  ;;  %v1498_v24 = vld [vmem:[#allocation3 + $0x71] sm:$0xff]  ;;  %1406 = vst.msk [vmem:[#allocation5 + $0x18] sm:$0x3] %vm1355_vm1, %v1340_v5 }
 0x1e8   :  { %v1715_v46 = vld [vmem:[#allocation5 + $0x1] sm:$0xff]  ;;  %v1641_v32 = vadd.f32 %v1625_v45, %v1561_v7  ;;  %v1633_v28 = vadd.f32 %v1601_v54, %v1553_v60  ;;  %v1667_v13 = vmul.f32 %v1651_v50, %v4728_v11  ;;  %v1691_v29 = vmul.f32 %v1651_v50, %v3160_v51  ;;  %v1578_v1 = vld [vmem:[#allocation3 + $0x72] sm:$0xff] }
 0x1e9   :  { %v1795_v57 = vld [vmem:[#allocation5 + $0x2] sm:$0xff]  ;;  %v1731_v30 = vmul.f32 %v1715_v46, %v4826_v27  ;;  %v1755_v61 = vmul.f32 %v1715_v46, %v4827_v19  ;;  %v1086_v62 = vadd.f32 %v4890_v12, %v830_v49  ;;  %1405 = vst.msk [vmem:[#allocation5 + $0x10] sm:$0xff] %vm1353_vm0, %v1339_v31  ;;  %v4894_v54 = vld [vmem:[#allocation101_spill] sm:$0xff]  ;;  %v4896_v49 = vld [vmem:[#allocation88_spill] sm:$0xff]  ;;  %v1514_v5 = vmul.f32 %v1498_v24, %v4826_v27 }
 0x1ea   :  { %v4891_v23 = vld [vmem:[#allocation86_spill] sm:$0xff]  ;;  %v1811_v14 = vmul.f32 %v1795_v57, %v4707_v55  ;;  %v1835_v43 = vmul.f32 %v1795_v57, %v4719_v4  ;;  %v1675_v37 = vadd.f32 %v1667_v13, %v4892_v36  ;;  %1881 = vst.msk [vmem:[#allocation12 + $0x30] sm:$0xff] %vm1353_vm0, %v1641_v32  ;;  %v1482_v35 = vadd.f32 %v1474_v9, %v4896_v49  ;;  %v4898_v31 = vld [vmem:[#allocation104_spill] sm:$0xff]  ;;  %v4899_v50 = vld [vmem:[#allocation89_spill] sm:$0xff] }
 0x1eb   :  { %v1458_v22 = vadd.f32 %v1450_v25, %v4891_v23  ;;  %v4893_v52 = vld [vmem:[#allocation98_spill] sm:$0xff]  ;;  %v1739_v40 = vadd.f32 %v1731_v30, %v4894_v54  ;;  %v4897_v25 = vld [vmem:[#allocation103_spill] sm:$0xff]  ;;  %v1538_v26 = vmul.f32 %v1498_v24, %v4827_v19  ;;  %1873 = vst.msk [vmem:[#allocation11 + $0x30] sm:$0xff] %vm1353_vm0, %v1633_v28  ;;  %v1594_v60 = vmul.f32 %v1578_v1, %v4707_v55  ;;  %v1300_v13 = vpop.permute.xlu0 %1299 }
 0x1ec   :  { %v1699_v39 = vadd.f32 %v1691_v29, %v4893_v52  ;;  %v4895_v45 = vld [vmem:[#allocation102_spill] sm:$0xff]  ;;  %v1819_v20 = vadd.f32 %v1811_v14, %v4897_v25  ;;  %v1618_v0 = vmul.f32 %v1578_v1, %v4719_v4  ;;  %v1302_v21 = vpop.permute.xlu1 %1301  ;;  %v1843_v38 = vadd.f32 %v1835_v43, %v4898_v31  ;;  %v4910_v31 = vld [vmem:[#allocation124_spill] sm:$0xff] }
 0x1ed   :  { %v1763_v18 = vadd.f32 %v1755_v61, %v4895_v45  ;;  %v1771_v7 = vadd.f32 %v1739_v40, %v1675_v37  ;;  %v1522_v46 = vadd.f32 %v1514_v5, %v4899_v50  ;;  %v4900_v9 = vld [vmem:[#allocation90_spill] sm:$0xff]  ;;  %v1343_v32 = vadd.f32 %v1302_v21, %v1087_v56  ;;  %v4909_v21 = vld [vmem:[#allocation51_spill] sm:$0xff]  ;;  %v4911_v50 = vld [vmem:[#allocation125_spill] sm:$0xff] }
 0x1ee   :  { %v1546_v57 = vadd.f32 %v1538_v26, %v4900_v9  ;;  %v4373_v29 = vmul.f32 %v4139_v6, %v3148_v53  ;;  %v4377_v28 = vmul.f32 %v4146_v15, %v3160_v51  ;;  %v1342_v61 = vadd.f32 %v1300_v13, %v1086_v62  ;;  %v4901_v23 = vld [vmem:[#allocation54_spill] sm:$0xff]  ;;  %v4903_v62 = vld [vmem:[#allocation92_spill] sm:$0xff] }
 0x1ef   :  { %v1779_v59 = vadd.f32 %v1763_v18, %v1699_v39  ;;  %v1851_v30 = vadd.f32 %v1819_v20, %v1771_v7  ;;  %v833_v24 = vadd.f32 %v817_v47, %v4311_v2  ;;  %1409 = vst.msk [vmem:[#allocation5 + $0x30] sm:$0xff] %vm1353_vm0, %v1343_v32  ;;  %v1554_v6 = vadd.f32 %v1522_v46, %v1458_v22  ;;  %v4902_v2 = vld [vmem:[#allocation91_spill] sm:$0xff]  ;;  %v1653_v45 = vld [vmem:[#allocation5 + $0x20] sm:$0xff]  ;;  %v4906_v20 = vld [vmem:[#allocation117_spill] sm:$0xff] }
 0x1f0   :  { %v1562_v12 = vadd.f32 %v1546_v57, %v1482_v35  ;;  %v1090_v15 = vadd.f32 %v4901_v23, %v4166_v16  ;;  %v4388_v14 = vadd.f32 %v820_v10, %v804_v8  ;;  %v1602_v47 = vadd.f32 %v1594_v60, %v4902_v2  ;;  %v1652_v1 = vld [vmem:[#allocation5 + $0x10] sm:$0xff]  ;;  %1408 = vst.msk [vmem:[#allocation5 + $0x28] sm:$0x3] %vm1355_vm1, %v1342_v61  ;;  %v4904_v18 = vld [vmem:[#allocation47_spill] sm:$0xff]  ;;  %v4907_v26 = vld [vmem:[#allocation118_spill] sm:$0xff] }
 0x1f1   :  { %v1859_v56 = vadd.f32 %v1843_v38, %v1779_v59  ;;  %1883 = vst.msk [vmem:[#allocation14] sm:$0xff] %vm1353_vm0, %v1851_v30  ;;  %v1626_v43 = vadd.f32 %v1618_v0, %v4903_v62  ;;  %v1716_v36 = vld [vmem:[#allocation5 + $0x11] sm:$0xff]  ;;  %v1668_v16 = vmul.f32 %v1652_v1, %v4728_v11  ;;  %v1692_v8 = vmul.f32 %v1652_v1, %v3160_v51  ;;  %v4905_v35 = vld [vmem:[#allocation43_spill] sm:$0xff] }
 0x1f2   :  { %v1796_v37 = vld [vmem:[#allocation5 + $0x12] sm:$0xff]  ;;  %v1732_v10 = vmul.f32 %v1716_v36, %v4826_v27  ;;  %v1756_v22 = vmul.f32 %v1716_v36, %v4827_v19  ;;  %v1634_v40 = vadd.f32 %v1602_v47, %v1554_v6  ;;  %v1089_v59 = vadd.f32 %v4909_v21, %v833_v24  ;;  %v4912_v32 = vld [vmem:[#allocation119_spill] sm:$0xff] }
 0x1f3   :  { %v1812_v52 = vmul.f32 %v1796_v37, %v4707_v55  ;;  %v1836_v39 = vmul.f32 %v1796_v37, %v4719_v4  ;;  %v1642_v54 = vadd.f32 %v1626_v43, %v1562_v12  ;;  %1891 = vst.msk [vmem:[#allocation15] sm:$0xff] %vm1353_vm0, %v1859_v56  ;;  %v1676_v49 = vadd.f32 %v1668_v16, %v4904_v18  ;;  %v4908_v60 = vld [vmem:[#allocation25_spill] sm:$0xff]  ;;  %v1306_v61 = vpop.permute.xlu0 %1305  ;;  %v4913_v6 = vld [vmem:[#allocation120_spill] sm:$0xff]  ;;  %v4916_v18 = vld [vmem:[#allocation123_spill] sm:$0xff] }
 0x1f4   :  { %v1700_v25 = vadd.f32 %v1692_v8, %v4905_v35  ;;  %v1740_v5 = vadd.f32 %v1732_v10, %v4906_v20  ;;  %v1764_v7 = vadd.f32 %v1756_v22, %v4907_v26  ;;  %v1093_v0 = vadd.f32 %v4908_v60, %v4183_v34  ;;  %v1308_v9 = vpop.permute.xlu1 %1307  ;;  %1874 = vst.msk [vmem:[#allocation11 + $0x38] sm:$0xff] %vm1353_vm0, %v1634_v40  ;;  %v4915_v40 = vld [vmem:[#allocation122_spill] sm:$0xff] }
 0x1f5   :  { %v807_v38 = vmul.f32 %v4910_v31, %v3148_v53  ;;  %v823_v46 = vmul.f32 %v4911_v50, %v3160_v51  ;;  %1882 = vst.msk [vmem:[#allocation12 + $0x38] sm:$0xff] %vm1353_vm0, %v1642_v54  ;;  %v1820_v13 = vadd.f32 %v1812_v52, %v4912_v32  ;;  %v1346_v30 = vadd.f32 %v1308_v9, %v1090_v15  ;;  %1911 = dma.vmem_to_hbm [thread:$0]  %s1904_s24, 1024, %s1906_s26, [#allocation7], %s2238_s3, %s2238_s3, %s2239_s27   ;;  %v4920_v31 = vld [vmem:[#allocation113_spill] sm:$0xff]  ;;  %v4921_v32 = vld [vmem:[#allocation83_spill] sm:$0xff] }
 0x1f6   :  { %v1772_v57 = vadd.f32 %v1740_v5, %v1676_v49  ;;  %1924 = dma.vmem_to_hbm [thread:$0]  %s1917_s18, 1024, %s1919_s21, [#allocation13], %s2238_s3, %s2238_s3, %s2239_s27   ;;  %v1780_v34 = vadd.f32 %v1764_v7, %v1700_v25  ;;  %v1669_v24 = vmul.f32 %v1653_v45, %v4728_v11  ;;  %v1693_v12 = vmul.f32 %v1653_v45, %v3160_v51  ;;  %v1654_v23 = vld [vmem:[#allocation5 + $0x30] sm:$0xff]  ;;  %v4917_v25 = vld [vmem:[#allocation110_spill] sm:$0xff]  ;;  %v4919_v7 = vld [vmem:[#allocation127_spill] sm:$0xff] }
 0x1f7   :  { %v1844_v56 = vadd.f32 %v1836_v39, %v4913_v6  ;;  %v1718_v2 = vld [vmem:[#allocation5 + $0x31] sm:$0xff]  ;;  %v1345_v15 = vadd.f32 %v1306_v61, %v1089_v59  ;;  %v1670_v43 = vmul.f32 %v1654_v23, %v4728_v11  ;;  %v1694_v1 = vmul.f32 %v1654_v23, %v3160_v51  ;;  %1412 = vst.msk [vmem:[#allocation5 + $0x48] sm:$0x3] %vm1355_vm1, %v1346_v30  ;;  %v1717_v10 = vld [vmem:[#allocation5 + $0x21] sm:$0xff] }
 0x1f8   :  { %v1798_v47 = vld [vmem:[#allocation5 + $0x32] sm:$0xff]  ;;  %v1852_v62 = vadd.f32 %v1820_v13, %v1772_v57  ;;  %v1734_v36 = vmul.f32 %v1718_v2, %v4826_v27  ;;  %v1758_v37 = vmul.f32 %v1718_v2, %v4827_v19  ;;  %v1797_v22 = vld [vmem:[#allocation5 + $0x22] sm:$0xff]  ;;  %v1733_v35 = vmul.f32 %v1717_v10, %v4826_v27 }
 0x1f9   :  { %v1814_v16 = vmul.f32 %v1798_v47, %v4707_v55  ;;  %v1838_v8 = vmul.f32 %v1798_v47, %v4719_v4  ;;  %1411 = vst.msk [vmem:[#allocation5 + $0x40] sm:$0xff] %vm1353_vm0, %v1345_v15  ;;  %v1860_v52 = vadd.f32 %v1844_v56, %v1780_v34  ;;  %v4914_v39 = vld [vmem:[#allocation121_spill] sm:$0xff]  ;;  %v1702_v45 = vadd.f32 %v1694_v1, %v4915_v40  ;;  %v4918_v5 = vld [vmem:[#allocation126_spill] sm:$0xff]  ;;  %v4922_v30 = vld [vmem:[#allocation111_spill] sm:$0xff] }
 0x1fa   :  { %1884 = vst.msk [vmem:[#allocation14 + $0x8] sm:$0xff] %vm1353_vm0, %v1852_v62  ;;  %v1678_v54 = vadd.f32 %v1670_v43, %v4914_v39  ;;  %v1742_v49 = vadd.f32 %v1734_v36, %v4916_v18  ;;  %v1677_v20 = vadd.f32 %v1669_v24, %v4917_v25  ;;  %v1766_v26 = vadd.f32 %v1758_v37, %v4918_v5  ;;  %v4923_v34 = vld [vmem:[#allocation114_spill] sm:$0xff]  ;;  %v4924_v15 = vld [vmem:[#allocation115_spill] sm:$0xff] }
 0x1fb   :  { %v1822_v60 = vadd.f32 %v1814_v16, %v4919_v7  ;;  %v1757_v21 = vmul.f32 %v1717_v10, %v4827_v19  ;;  %1892 = vst.msk [vmem:[#allocation15 + $0x8] sm:$0xff] %vm1353_vm0, %v1860_v52  ;;  %v1741_v50 = vadd.f32 %v1733_v35, %v4920_v31  ;;  %v1813_v9 = vmul.f32 %v1797_v22, %v4707_v55  ;;  %v1312_v43 = vpop.permute.xlu0 %1311  ;;  %v4472_v35 = vld [vmem:[#allocation4 + $0x52] sm:$0xff]  ;;  %v1649_v25 = vld [vmem:[#allocation4 + $0x60] sm:$0xff]  ;;  %v4929_v31 = vld [vmem:[#allocation27_spill] sm:$0xff] }
 0x1fc   :  { %v1774_v59 = vadd.f32 %v1742_v49, %v1678_v54  ;;  %v1837_v57 = vmul.f32 %v1797_v22, %v4719_v4  ;;  %v1092_v13 = vadd.f32 %v4921_v32, %v4388_v14  ;;  %v1701_v61 = vadd.f32 %v1693_v12, %v4922_v30  ;;  %v1314_v6 = vpop.permute.xlu1 %1313  ;;  %v4925_v12 = vld [vmem:[#allocation116_spill] sm:$0xff]  ;;  %v1713_v32 = vld [vmem:[#allocation4 + $0x61] sm:$0xff] }
 0x1fd   :  { %v1765_v24 = vadd.f32 %v1757_v21, %v4923_v34  ;;  %v1782_v56 = vadd.f32 %v1766_v26, %v1702_v45  ;;  %v1846_v23 = vadd.f32 %v1838_v8, %v4086_v42  ;;  %v1773_v47 = vadd.f32 %v1741_v50, %v1677_v20  ;;  %v1712_v54 = vld [vmem:[#allocation4 + $0x51] sm:$0xff] }
 0x1fe   :  { %v1854_v2 = vadd.f32 %v1822_v60, %v1774_v59  ;;  %v1821_v62 = vadd.f32 %v1813_v9, %v4924_v15  ;;  %v840_v1 = vadd.f32 %v4377_v28, %v4373_v29  ;;  %v1349_v36 = vadd.f32 %v1314_v6, %v1093_v0  ;;  %v4926_v0 = vld [vmem:[#allocation36_spill] sm:$0xff]  ;;  %v4928_v26 = vld [vmem:[#allocation85_spill] sm:$0xff] }
 0x1ff   :  { %v1348_v37 = vadd.f32 %v1312_v43, %v1092_v13  ;;  %v1781_v16 = vadd.f32 %v1765_v24, %v1701_v61  ;;  %v839_v14 = vadd.f32 %v823_v46, %v807_v38  ;;  %v1845_v10 = vadd.f32 %v1837_v57, %v4925_v12  ;;  %v4927_v20 = vld [vmem:[#allocation84_spill] sm:$0xff]  ;;  %v4930_v9 = vld [vmem:[#allocation109_spill] sm:$0xff]  ;;  %v1793_v13 = vld [vmem:[#allocation4 + $0x62] sm:$0xff] }
 0x200   :  { %1886 = vst.msk [vmem:[#allocation14 + $0x18] sm:$0xff] %vm1353_vm0, %v1854_v2  ;;  %v1853_v22 = vadd.f32 %v1821_v62, %v1773_v47  ;;  %v1655_v52 = vld [vmem:[#allocation5 + $0x40] sm:$0xff]  ;;  %v1862_v8 = vadd.f32 %v1846_v23, %v1782_v56  ;;  %v1831_v38 = vmul.f32 %v4088_v58, %v4926_v0  ;;  %v1688_v58 = vmul.f32 %v4070_v33, %v3148_v53  ;;  %v4931_v6 = vld [vmem:[#allocation48_spill] sm:$0xff] }
 0x201   :  { %v1719_v39 = vld [vmem:[#allocation5 + $0x41] sm:$0xff]  ;;  %v1671_v40 = vmul.f32 %v1655_v52, %v4728_v11  ;;  %v1695_v45 = vmul.f32 %v1655_v52, %v3160_v51  ;;  %1415 = vst.msk [vmem:[#allocation5 + $0x60] sm:$0xff] %vm1353_vm0, %v1349_v36  ;;  %v1861_v49 = vadd.f32 %v1845_v10, %v1781_v16  ;;  %v1728_v59 = vmul.f32 %v1712_v54, %v4740_v41  ;;  %v1656_v15 = vld [vmem:[#allocation5 + $0x50] sm:$0xff] }
 0x202   :  { %v1799_v42 = vld [vmem:[#allocation5 + $0x42] sm:$0xff]  ;;  %v1735_v29 = vmul.f32 %v1719_v39, %v4826_v27  ;;  %v1759_v28 = vmul.f32 %v1719_v39, %v4827_v19  ;;  %1885 = vst.msk [vmem:[#allocation14 + $0x10] sm:$0xff] %vm1353_vm0, %v1853_v22  ;;  %v1096_v50 = vadd.f32 %v4929_v31, %v840_v1  ;;  %v1095_v57 = vadd.f32 %v4930_v9, %v839_v14  ;;  %v1714_v9 = vld [vmem:[#allocation4 + $0x71] sm:$0xff] }
 0x203   :  { %v1815_v46 = vmul.f32 %v1799_v42, %v4707_v55  ;;  %v1839_v18 = vmul.f32 %v1799_v42, %v4719_v4  ;;  %v1679_v5 = vadd.f32 %v1671_v40, %v4927_v20  ;;  %v1703_v7 = vadd.f32 %v1695_v45, %v4928_v26  ;;  %1414 = vst.msk [vmem:[#allocation5 + $0x58] sm:$0x3] %vm1355_vm1, %v1348_v37  ;;  %v1318_v2 = vpop.permute.xlu0 %1317 }
 0x204   :  { %v1743_v60 = vadd.f32 %v1735_v29, %v4099_v63  ;;  %v1767_v21 = vadd.f32 %v1759_v28, %v4105_v48  ;;  %1893 = vst.msk [vmem:[#allocation15 + $0x10] sm:$0xff] %vm1353_vm0, %v1861_v49  ;;  %v1320_v48 = vpop.permute.xlu1 %1319  ;;  %v1752_v33 = vmul.f32 %v1712_v54, %v4742_v3  ;;  %v1808_v24 = vmul.f32 %v4472_v35, %v4706_v44 }
 0x205   :  { %v1823_v63 = vadd.f32 %v1815_v46, %v4109_v17  ;;  %v1847_v61 = vadd.f32 %v1839_v18, %v1831_v38  ;;  %1894 = vst.msk [vmem:[#allocation15 + $0x18] sm:$0xff] %vm1353_vm0, %v1862_v8  ;;  %v1665_v56 = vmul.f32 %v1649_v25, %v4931_v6  ;;  %v1352_v23 = vadd.f32 %v1320_v48, %v1096_v50 }
 0x206   :  { %v1775_v30 = vadd.f32 %v1743_v60, %v1679_v5  ;;  %v1783_v34 = vadd.f32 %v1767_v21, %v1703_v7  ;;  %v1689_v47 = vmul.f32 %v1649_v25, %v3148_v53  ;;  %v1351_v43 = vadd.f32 %v1318_v2, %v1095_v57  ;;  %v1650_v7 = vld [vmem:[#allocation4 + $0x70] sm:$0xff] }
 0x207   :  { %v1729_v1 = vmul.f32 %v1713_v32, %v4740_v41  ;;  %v1753_v36 = vmul.f32 %v1713_v32, %v4742_v3  ;;  %v1809_v37 = vmul.f32 %v1793_v13, %v4706_v44  ;;  %v1833_v16 = vmul.f32 %v1793_v13, %v4926_v0  ;;  %1418 = vst.msk [vmem:[#allocation5 + $0x78] sm:$0x3] %vm1355_vm1, %v1352_v23  ;;  %v4932_v57 = vld [vmem:[#allocation128_spill] sm:$0xff] }
 0x208   :  { %v1855_v62 = vadd.f32 %v1823_v63, %v1775_v30  ;;  %v1863_v17 = vadd.f32 %v1847_v61, %v1783_v34  ;;  %v1657_v14 = vld [vmem:[#allocation5 + $0x60] sm:$0xff]  ;;  %v1672_v8 = vmul.f32 %v1656_v15, %v4728_v11  ;;  %v1696_v54 = vmul.f32 %v1656_v15, %v3160_v51  ;;  %1417 = vst.msk [vmem:[#allocation5 + $0x70] sm:$0xff] %vm1353_vm0, %v1351_v43  ;;  %v1794_v23 = vld [vmem:[#allocation4 + $0x72] sm:$0xff] }
 0x209   :  { %v1721_v12 = vld [vmem:[#allocation5 + $0x61] sm:$0xff]  ;;  %v1673_v22 = vmul.f32 %v1657_v14, %v4728_v11  ;;  %v1697_v52 = vmul.f32 %v1657_v14, %v3160_v51  ;;  %v1832_v61 = vmul.f32 %v4472_v35, %v4926_v0  ;;  %v1730_v43 = vmul.f32 %v1714_v9, %v4740_v41 }
 0x20a   :  { %v1801_v10 = vld [vmem:[#allocation5 + $0x62] sm:$0xff]  ;;  %1887 = vst.msk [vmem:[#allocation14 + $0x20] sm:$0xff] %vm1353_vm0, %v1855_v62  ;;  %v1737_v39 = vmul.f32 %v1721_v12, %v4826_v27  ;;  %v1761_v42 = vmul.f32 %v1721_v12, %v4827_v19  ;;  %v1720_v29 = vld [vmem:[#allocation5 + $0x51] sm:$0xff]  ;;  %v1680_v32 = vadd.f32 %v1672_v8, %v4932_v57  ;;  %v1704_v13 = vadd.f32 %v1696_v54, %v1688_v58 }
 0x20b   :  { %v1817_v40 = vmul.f32 %v1801_v10, %v4707_v55  ;;  %v1841_v45 = vmul.f32 %v1801_v10, %v4719_v4  ;;  %v1800_v28 = vld [vmem:[#allocation5 + $0x52] sm:$0xff]  ;;  %v1681_v38 = vadd.f32 %v1673_v22, %v1665_v56  ;;  %v1705_v46 = vadd.f32 %v1697_v52, %v1689_v47  ;;  %1895 = vst.msk [vmem:[#allocation15 + $0x20] sm:$0xff] %vm1353_vm0, %v1863_v17 }
 0x20c   :  { %v1745_v18 = vadd.f32 %v1737_v39, %v1729_v1  ;;  %v1769_v49 = vadd.f32 %v1761_v42, %v1753_v36  ;;  %v1736_v5 = vmul.f32 %v1720_v29, %v4826_v27  ;;  %v1760_v26 = vmul.f32 %v1720_v29, %v4827_v19 }
 0x20d   :  { %v1825_v25 = vadd.f32 %v1817_v40, %v1809_v37  ;;  %v1849_v20 = vadd.f32 %v1841_v45, %v1833_v16  ;;  %v1816_v21 = vmul.f32 %v1800_v28, %v4707_v55  ;;  %v1840_v31 = vmul.f32 %v1800_v28, %v4719_v4 }
 0x20e   :  { %v1777_v60 = vadd.f32 %v1745_v18, %v1681_v38  ;;  %v1785_v50 = vadd.f32 %v1769_v49, %v1705_v46  ;;  %v1744_v30 = vadd.f32 %v1736_v5, %v1728_v59  ;;  %v1768_v63 = vadd.f32 %v1760_v26, %v1752_v33 }
 0x20f   :  { %v1666_v56 = vmul.f32 %v1650_v7, %v4931_v6  ;;  %v1824_v47 = vadd.f32 %v1816_v21, %v1808_v24  ;;  %v1690_v62 = vmul.f32 %v1650_v7, %v3148_v53  ;;  %v1754_v17 = vmul.f32 %v1714_v9, %v4742_v3  ;;  %v1658_v59 = vld [vmem:[#allocation5 + $0x70] sm:$0xff] }
 0x210   :  { %v1857_v48 = vadd.f32 %v1825_v25, %v1777_v60  ;;  %v1865_v34 = vadd.f32 %v1849_v20, %v1785_v50  ;;  %v1776_v2 = vadd.f32 %v1744_v30, %v1680_v32  ;;  %v1784_v15 = vadd.f32 %v1768_v63, %v1704_v13  ;;  %v1722_v33 = vld [vmem:[#allocation5 + $0x71] sm:$0xff] }
 0x211   :  { %v1848_v58 = vadd.f32 %v1840_v31, %v1832_v61  ;;  %v1802_v35 = vld [vmem:[#allocation5 + $0x72] sm:$0xff]  ;;  %v1674_v36 = vmul.f32 %v1658_v59, %v4728_v11  ;;  %v1698_v6 = vmul.f32 %v1658_v59, %v3160_v51  ;;  %v1738_v24 = vmul.f32 %v1722_v33, %v4826_v27 }
 0x212   :  { %1889 = vst.msk [vmem:[#allocation14 + $0x30] sm:$0xff] %vm1353_vm0, %v1857_v48  ;;  %v1856_v1 = vadd.f32 %v1824_v47, %v1776_v2  ;;  %v1762_v53 = vmul.f32 %v1722_v33, %v4827_v19  ;;  %v1818_v41 = vmul.f32 %v1802_v35, %v4707_v55  ;;  %v1842_v3 = vmul.f32 %v1802_v35, %v4719_v4 }
 0x213   :  { %1897 = vst.msk [vmem:[#allocation15 + $0x30] sm:$0xff] %vm1353_vm0, %v1865_v34  ;;  %v1864_v37 = vadd.f32 %v1848_v58, %v1784_v15  ;;  %v1810_v16 = vmul.f32 %v1794_v23, %v4706_v44  ;;  %v1682_v14 = vadd.f32 %v1674_v36, %v1666_v56  ;;  %v1706_v12 = vadd.f32 %v1698_v6, %v1690_v62 }
 0x214   :  { %1888 = vst.msk [vmem:[#allocation14 + $0x28] sm:$0xff] %vm1353_vm0, %v1856_v1  ;;  %v1746_v11 = vadd.f32 %v1738_v24, %v1730_v43  ;;  %v1834_v51 = vmul.f32 %v1794_v23, %v4926_v0  ;;  %v1770_v10 = vadd.f32 %v1762_v53, %v1754_v17 }
 0x215   :  { %1896 = vst.msk [vmem:[#allocation15 + $0x28] sm:$0xff] %vm1353_vm0, %v1864_v37  ;;  %v1826_v4 = vadd.f32 %v1818_v41, %v1810_v16 }
 0x216   :  { %v1778_v55 = vadd.f32 %v1746_v11, %v1682_v14  ;;  %v1850_v44 = vadd.f32 %v1842_v3, %v1834_v51  ;;  %v1786_v27 = vadd.f32 %v1770_v10, %v1706_v12 }
 0x218   :  { %v1858_v19 = vadd.f32 %v1826_v4, %v1778_v55  ;;  %v1866_v0 = vadd.f32 %v1850_v44, %v1786_v27 }
 0x21a   :  { %1890 = vst.msk [vmem:[#allocation14 + $0x38] sm:$0xff] %vm1353_vm0, %v1858_v19 }
 0x21b   :  { %1937 = dma.vmem_to_hbm [thread:$0]  %s1930_s30, 1024, %s1932_s0, [#allocation13], %s2238_s3, %s2238_s3, %s2239_s27   ;;  %1898 = vst.msk [vmem:[#allocation15 + $0x38] sm:$0xff] %vm1353_vm0, %v1866_v0 }
 0x21c   :  { %1950 = dma.vmem_to_hbm [thread:$0]  %s1943_s1, 1024, %s1945_s23, [#allocation16], %s2238_s3, %s2238_s3, %s2239_s27  }
 0x21d   :  { %2226 = dma.done.wait [#allocation7], 1024  }
 0x21e   :  { %2227 = vsyncadd [#allocation7], 4294966272 }
 0x21f   :  { %2228 = dma.done.wait [#allocation13], 2048  }
 0x220   :  { %2229 = vsyncadd [#allocation13], 4294965248 }
 0x221   :  { %2230 = dma.done.wait [#allocation16], 1024  }
 0x222   :  { %2231 = vsyncadd [#allocation16], 4294966272 }
 0x223   :  { %1967 = vsyncpa [#allocation7], 1 }
 0x224   :  { %1968 = vsyncpa [#allocation13], 1 }
 0x225   :  { %1969 = vsyncpa [#allocation16], 1 }
 0x226   :  { %1970 = vsyncpa [#allocation8], 1 }
 0x227   :  { %1971 = vsyncpa [#allocation10], 1 }

</bundles_post_ra>
